<compile_context>
chip_gen: v7x
topology: tpu7x:2x2x1
jax: 0.10.0
libtpu: 0.0.40
codegen_flags: <defaults>
</compile_context>

<pallas_src>
import math
import jax
import jax.numpy as jnp
from jax.experimental import pallas as pl
from jax.experimental.pallas import tpu as pltpu


# ---------------- fused Pallas kernel (one batch element per grid step) ----

def _noisy_dqn_fused_kernel(xpe_ref, xpo_ref, gx_ref,
                            w1_ref, b1_ref, w2_ref, b2_ref,
                            wf1_ref, bf1_ref, wf2_ref, bf2_ref,
                            o_ref, h1e_ref, h1o_ref):
    # ---- conv1: Conv2d(1, 32, k=4, s=1, p=2) + ReLU ------------------------
    # h1 has shape (32, 5, 501); it is kept in VMEM, split by width parity:
    #   h1e_ref[y, c, 1+m] = relu(h1)[c, y, 2m]    (m = 0..250), col 0   = 0-pad
    #   h1o_ref[y, c, 1+m] = relu(h1)[c, y, 2m+1]  (m = 0..249), col 0/251 = 0-pad
    xe = xpe_ref[0]                      # (8, 252) even cols of padded input
    xo = xpo_ref[0]                      # (8, 252) odd  cols of padded input
    w1 = w1_ref[...]                     # (32, 16) tap order t = kj*4 + ki
    b1 = b1_ref[...]                     # (32, 1)
    zc = jnp.zeros((32, 1), jnp.float32)

    for y in range(5):
        # im2col patches built only from contiguous static lane slices.
        pe = jnp.concatenate([xe[y:y + 4, 0:251], xo[y:y + 4, 0:251],
                              xe[y:y + 4, 1:252], xo[y:y + 4, 1:252]],
                             axis=0)                                    # (16, 251)
        po = jnp.concatenate([xo[y:y + 4, 0:250], xe[y:y + 4, 1:251],
                              xo[y:y + 4, 1:251], xe[y:y + 4, 2:252]],
                             axis=0)                                    # (16, 250)
        he = jnp.maximum(
            jnp.dot(w1, pe, preferred_element_type=jnp.float32) + b1, 0.0)
        ho = jnp.maximum(
            jnp.dot(w1, po, preferred_element_type=jnp.float32) + b1, 0.0)
        h1e_ref[y] = jnp.concatenate([zc, he], axis=1).astype(jnp.bfloat16)
        h1o_ref[y] = jnp.concatenate([zc, ho, zc], axis=1).astype(jnp.bfloat16)

    # ---- conv2: Conv2d(32, 32, k=4, s=2, p=2) + ReLU + global max ----------
    # 251 spatial positions sit on the MXU N/lane axis; AdaptiveMaxPool2d((1,1))
    # is fused as a running elementwise max + final lane-axis reduce.
    b2 = b2_ref[...]                     # (32, 1)
    mx = None
    for y2 in range(3):
        acc = jnp.zeros((32, 251), jnp.float32)
        for ki in range(4):
            rs = 2 * y2 + ki - 2         # index into the 5 real (non-pad) h1 rows
            if rs < 0 or rs > 4:
                continue                 # zero-padded rows contribute nothing
            he_row = h1e_ref[rs]         # (32, 252) bf16
            ho_row = h1o_ref[rs]         # (32, 252) bf16
            taps = ((0, he_row[:, 0:251]), (1, ho_row[:, 0:251]),
                    (2, he_row[:, 1:252]), (3, ho_row[:, 1:252]))
            for kj, sl in taps:
                acc = acc + jnp.dot(w2_ref[ki * 4 + kj], sl,
                                    preferred_element_type=jnp.float32)
        row = jnp.maximum(acc + b2, 0.0)
        mx = row if mx is None else jnp.maximum(mx, row)
    conv_col = jnp.max(mx, axis=1, keepdims=True)            # (32, 1)

    # ---- NoisyLinear(34, 32) -> ReLU -> NoisyLinear(32, A) (column form) ---
    fc_in = jnp.concatenate([conv_col, gx_ref[0]], axis=0)   # (34, 1)
    h = jnp.maximum(
        jnp.dot(wf1_ref[...], fc_in, preferred_element_type=jnp.float32)
        + bf1_ref[...], 0.0)                                 # (32, 1)
    o_ref[0] = (jnp.dot(wf2_ref[...], h, preferred_element_type=jnp.float32)
                + bf2_ref[...])                              # (A, 1)


# ---------------- JAX glue ----------------

def noisy_dqn_forward(x, params, noise_key):
    """x: (B, 2002) = 2000 obs values (-> (1,4,500) image) + 2 extra features."""
    B = x.shape[0]
    fx = (x[:, :-2].astype(jnp.float32) / 5.0).reshape(B, 4, 500)
    gx = x[:, -2:].astype(jnp.float32).reshape(B, 2, 1)

    # Pad by 2 and split the padded width by parity so the stride-2 conv2 only
    # ever needs contiguous lane slices inside the kernel.
    xpad = jnp.pad(fx, ((0, 0), (2, 2), (2, 2)))              # (B, 8, 504)
    xpe = xpad[:, :, 0::2]                                    # (B, 8, 252)
    xpo = xpad[:, :, 1::2]                                    # (B, 8, 252)

    # Conv weights pre-permuted to the kernel's tap ordering.
    w1p = params["w_c1"].reshape(32, 4, 4).transpose(0, 2, 1).reshape(32, 16)
    b1 = params["b_c1"].reshape(32, 1)
    w2r = (params["w_c2"].transpose(2, 3, 0, 1).reshape(16, 32, 32)
           .astype(jnp.bfloat16))                             # [ki*4+kj, co, ci]
    b2 = params["b_c2"].reshape(32, 1)

    # NoisyLinear effective weights (independent Gaussian noise variant, same
    # math as torch: W + sigma_w * eps, b + sigma_b * eps).  PyTorch resamples
    # the epsilon buffers in-place each forward; here noise comes from a key.
    k1, k2, k3, k4 = jax.random.split(noise_key, 4)
    wf1 = params["w_n1"] + params["sig_w1"] * jax.random.normal(k1, params["w_n1"].shape)
    bf1 = (params["b_n1"] + params["sig_b1"] * jax.random.normal(k2, params["b_n1"].shape)).reshape(32, 1)
    wf2 = params["w_n2"] + params["sig_w2"] * jax.random.normal(k3, params["w_n2"].shape)
    bf2 = (params["b_n2"] + params["sig_b2"] * jax.random.normal(k4, params["b_n2"].shape)).reshape(-1, 1)
    A = wf2.shape[0]

    out = pl.pallas_call(
        _noisy_dqn_fused_kernel,
        out_shape=jax.ShapeDtypeStruct((B, A, 1), jnp.float32),
        grid=(B,),
        in_specs=[
            pl.BlockSpec((1, 8, 252), lambda b: (b, 0, 0)),      # xpe
            pl.BlockSpec((1, 8, 252), lambda b: (b, 0, 0)),      # xpo
            pl.BlockSpec((1, 2, 1), lambda b: (b, 0, 0)),        # gx
            pl.BlockSpec((32, 16), lambda b: (0, 0)),            # conv1 W
            pl.BlockSpec((32, 1), lambda b: (0, 0)),             # conv1 b
            pl.BlockSpec((16, 32, 32), lambda b: (0, 0, 0)),     # conv2 W taps
            pl.BlockSpec((32, 1), lambda b: (0, 0)),             # conv2 b
            pl.BlockSpec((32, 34), lambda b: (0, 0)),            # noisy fc1 W
            pl.BlockSpec((32, 1), lambda b: (0, 0)),             # noisy fc1 b
            pl.BlockSpec((A, 32), lambda b: (0, 0)),             # noisy fc2 W
            pl.BlockSpec((A, 1), lambda b: (0, 0)),              # noisy fc2 b
        ],
        out_specs=pl.BlockSpec((1, A, 1), lambda b: (b, 0, 0)),
        scratch_shapes=[pltpu.VMEM((5, 32, 252), jnp.bfloat16),  # h1, even cols
                        pltpu.VMEM((5, 32, 252), jnp.bfloat16)], # h1, odd  cols
        compiler_params=pltpu.CompilerParams(
            dimension_semantics=("parallel",)),
    )(xpe, xpo, gx, w1p, b1, w2r, b2, wf1, bf1, wf2, bf2)
    return out.reshape(B, A)


# ---------------- parameter init (mirrors the torch module) ----------------

def init_params(key, n_actions, sigma_init=0.017):
    ks = jax.random.split(key, 8)
    bnd = 1.0 / math.sqrt(1 * 4 * 4)
    w_c1 = jax.random.uniform(ks[0], (32, 1, 4, 4), jnp.float32, -bnd, bnd)
    b_c1 = jax.random.uniform(ks[1], (32,), jnp.float32, -bnd, bnd)
    bnd = 1.0 / math.sqrt(32 * 4 * 4)
    w_c2 = jax.random.uniform(ks[2], (32, 32, 4, 4), jnp.float32, -bnd, bnd)
    b_c2 = jax.random.uniform(ks[3], (32,), jnp.float32, -bnd, bnd)
    std = math.sqrt(3.0 / 34.0)
    w_n1 = jax.random.uniform(ks[4], (32, 34), jnp.float32, -std, std)
    b_n1 = jax.random.uniform(ks[5], (32,), jnp.float32, -std, std)
    sig_w1 = jnp.full((32, 34), sigma_init, jnp.float32)
    sig_b1 = jnp.full((32,), sigma_init, jnp.float32)
    std = math.sqrt(3.0 / 32.0)
    w_n2 = jax.random.uniform(ks[6], (n_actions, 32), jnp.float32, -std, std)
    b_n2 = jax.random.uniform(ks[7], (n_actions,), jnp.float32, -std, std)
    sig_w2 = jnp.full((n_actions, 32), sigma_init, jnp.float32)
    sig_b2 = jnp.full((n_actions,), sigma_init, jnp.float32)
    return dict(w_c1=w_c1, b_c1=b_c1, w_c2=w_c2, b_c2=b_c2,
                w_n1=w_n1, b_n1=b_n1, sig_w1=sig_w1, sig_b1=sig_b1,
                w_n2=w_n2, b_n2=b_n2, sig_w2=sig_w2, sig_b2=sig_b2)


# ---------------- pure-JAX reference (for correctness check) ---------------

def _reference_forward(x, params, noise_key):
    B = x.shape[0]
    fx = (x[:, :-2].astype(jnp.float32) / 5.0).reshape(B, 1, 4, 500)
    gx = x[:, -2:].astype(jnp.float32)
    hp = jax.lax.Precision.HIGHEST
    h = jax.lax.conv_general_dilated(fx, params["w_c1"], (1, 1), [(2, 2), (2, 2)],
                                     dimension_numbers=("NCHW", "OIHW", "NCHW"),
                                     precision=hp)
    h = jax.nn.relu(h + params["b_c1"][None, :, None, None])
    h = jax.lax.conv_general_dilated(h, params["w_c2"], (2, 2), [(2, 2), (2, 2)],
                                     dimension_numbers=("NCHW", "OIHW", "NCHW"),
                                     precision=hp)
    h = jax.nn.relu(h + params["b_c2"][None, :, None, None])
    conv_out = jnp.max(h, axis=(2, 3))                        # AdaptiveMaxPool2d((1,1))
    k1, k2, k3, k4 = jax.random.split(noise_key, 4)
    wf1 = params["w_n1"] + params["sig_w1"] * jax.random.normal(k1, params["w_n1"].shape)
    bf1 = params["b_n1"] + params["sig_b1"] * jax.random.normal(k2, params["b_n1"].shape)
    wf2 = params["w_n2"] + params["sig_w2"] * jax.random.normal(k3, params["w_n2"].shape)
    bf2 = params["b_n2"] + params["sig_b2"] * jax.random.normal(k4, params["b_n2"].shape)
    fc_in = jnp.concatenate([conv_out, gx], axis=1)
    hfc = jax.nn.relu(jnp.dot(fc_in, wf1.T, precision=hp) + bf1)
    return jnp.dot(hfc, wf2.T, precision=hp) + bf2


if __name__ == "__main__":
    key = jax.random.PRNGKey(0)
    pkey, nkey, xkey = jax.random.split(key, 3)
    n_actions = 4
    params = init_params(pkey, n_actions)
    # Each input row = 2000 obs values (reshaped to (1,4,500)) + 2 extra features.
    x = jax.random.normal(xkey, (2, 2002), jnp.float32)

    fwd = jax.jit(noisy_dqn_forward)
    out = jax.block_until_ready(fwd(x, params, nkey))
    ref = _reference_forward(x, params, nkey)

    assert out.shape == (2, n_actions), out.shape
    assert bool(jnp.all(jnp.isfinite(out)))
    assert bool(jnp.allclose(out, ref, rtol=5e-2, atol=5e-3)), (out, ref)
    print("KERNEL_OK")
</pallas_src>

<mosaic_0001>
module attributes {stable_mosaic.version = 11 : i64} {
  func.func @_noisy_dqn_fused_kernel(%arg0: i32, %arg1: memref<1x8x252xf32, #tpu.memory_space<vmem>>, %arg2: memref<1x8x252xf32, #tpu.memory_space<vmem>>, %arg3: memref<1x2x1xf32, #tpu.memory_space<vmem>>, %arg4: memref<32x16xf32, #tpu.memory_space<vmem>>, %arg5: memref<32x1xf32, #tpu.memory_space<vmem>>, %arg6: memref<16x32x32xbf16, #tpu.memory_space<vmem>>, %arg7: memref<32x1xf32, #tpu.memory_space<vmem>>, %arg8: memref<32x34xf32, #tpu.memory_space<vmem>>, %arg9: memref<32x1xf32, #tpu.memory_space<vmem>>, %arg10: memref<4x32xf32, #tpu.memory_space<vmem>>, %arg11: memref<4x1xf32, #tpu.memory_space<vmem>>, %arg12: memref<1x4x1xf32, #tpu.memory_space<vmem>>, %arg13: memref<5x32x252xbf16, #tpu.memory_space<vmem>>, %arg14: memref<5x32x252xbf16, #tpu.memory_space<vmem>>) attributes {dimension_semantics = [#tpu.dimension_semantics<parallel>], iteration_bounds = array<i64: 2>, scalar_prefetch = 0 : i64, scratch_operands = 2 : i64, tpu.core_type = #tpu.core_type<tc>, window_params = [{transform_indices = @transform_0, window_bounds = array<i64: 1, 8, 252>}, {transform_indices = @transform_1, window_bounds = array<i64: 1, 8, 252>}, {transform_indices = @transform_2, window_bounds = array<i64: 1, 2, 1>}, {pipeline_mode = #tpu.pipeline_mode<synchronous>, transform_indices = @transform_3, window_bounds = array<i64: 32, 16>}, {pipeline_mode = #tpu.pipeline_mode<synchronous>, transform_indices = @transform_4, window_bounds = array<i64: 32, 1>}, {pipeline_mode = #tpu.pipeline_mode<synchronous>, transform_indices = @transform_5, window_bounds = array<i64: 16, 32, 32>}, {pipeline_mode = #tpu.pipeline_mode<synchronous>, transform_indices = @transform_6, window_bounds = array<i64: 32, 1>}, {pipeline_mode = #tpu.pipeline_mode<synchronous>, transform_indices = @transform_7, window_bounds = array<i64: 32, 34>}, {pipeline_mode = #tpu.pipeline_mode<synchronous>, transform_indices = @transform_8, window_bounds = array<i64: 32, 1>}, {pipeline_mode = #tpu.pipeline_mode<synchronous>, transform_indices = @transform_9, window_bounds = array<i64: 4, 32>}, {pipeline_mode = #tpu.pipeline_mode<synchronous>, transform_indices = @transform_10, window_bounds = array<i64: 4, 1>}, {transform_indices = @transform_11, window_bounds = array<i64: 1, 4, 1>}]} {
    %c0 = arith.constant 0 : index
    %c0_0 = arith.constant 0 : index
    %c0_1 = arith.constant 0 : index
    %0 = vector.load %arg1[%c0, %c0_0, %c0_1] : memref<1x8x252xf32, #tpu.memory_space<vmem>>, vector<1x8x252xf32>
    %1 = vector.shape_cast %0 : vector<1x8x252xf32> to vector<8x252xf32>
    %c0_2 = arith.constant 0 : index
    %c0_3 = arith.constant 0 : index
    %c0_4 = arith.constant 0 : index
    %2 = vector.load %arg2[%c0_2, %c0_3, %c0_4] : memref<1x8x252xf32, #tpu.memory_space<vmem>>, vector<1x8x252xf32>
    %3 = vector.shape_cast %2 : vector<1x8x252xf32> to vector<8x252xf32>
    %c0_5 = arith.constant 0 : index
    %c0_6 = arith.constant 0 : index
    %4 = vector.load %arg4[%c0_5, %c0_6] : memref<32x16xf32, #tpu.memory_space<vmem>>, vector<32x16xf32>
    %c0_7 = arith.constant 0 : index
    %c0_8 = arith.constant 0 : index
    %5 = vector.load %arg5[%c0_7, %c0_8] : memref<32x1xf32, #tpu.memory_space<vmem>>, vector<32x1xf32>
    %cst = arith.constant 0.000000e+00 : f32
    %6 = vector.broadcast %cst : f32 to vector<32x1xf32>
    %7 = vector.extract_strided_slice %1 {offsets = [0, 0], sizes = [4, 251], strides = [1, 1]} : vector<8x252xf32> to vector<4x251xf32>
    %8 = vector.extract_strided_slice %3 {offsets = [0, 0], sizes = [4, 251], strides = [1, 1]} : vector<8x252xf32> to vector<4x251xf32>
    %9 = vector.extract_strided_slice %1 {offsets = [0, 1], sizes = [4, 251], strides = [1, 1]} : vector<8x252xf32> to vector<4x251xf32>
    %10 = vector.extract_strided_slice %3 {offsets = [0, 1], sizes = [4, 251], strides = [1, 1]} : vector<8x252xf32> to vector<4x251xf32>
    %11 = tpu.concatenate %7, %8, %9, %10 in 0 : vector<4x251xf32>, vector<4x251xf32>, vector<4x251xf32>, vector<4x251xf32> -> vector<16x251xf32>
    %12 = vector.extract_strided_slice %3 {offsets = [0, 0], sizes = [4, 250], strides = [1, 1]} : vector<8x252xf32> to vector<4x250xf32>
    %13 = vector.extract_strided_slice %1 {offsets = [0, 1], sizes = [4, 250], strides = [1, 1]} : vector<8x252xf32> to vector<4x250xf32>
    %14 = vector.extract_strided_slice %3 {offsets = [0, 1], sizes = [4, 250], strides = [1, 1]} : vector<8x252xf32> to vector<4x250xf32>
    %15 = vector.extract_strided_slice %1 {offsets = [0, 2], sizes = [4, 250], strides = [1, 1]} : vector<8x252xf32> to vector<4x250xf32>
    %16 = tpu.concatenate %12, %13, %14, %15 in 0 : vector<4x250xf32>, vector<4x250xf32>, vector<4x250xf32>, vector<4x250xf32> -> vector<16x250xf32>
    %cst_9 = arith.constant dense<0.000000e+00> : vector<32x251xf32>
    %17 = tpu.matmul %4, %11, %cst_9 {dimension_numbers = #tpu.dot_dimension_numbers<[1], [0], [0], [1], [0, 0, 1, 1], [], []>} : vector<32x16xf32>, vector<16x251xf32>, vector<32x251xf32> -> vector<32x251xf32>
    %18 = vector.broadcast %5 : vector<32x1xf32> to vector<32x251xf32>
    %19 = arith.addf %17, %18 : vector<32x251xf32>
    %cst_10 = arith.constant 0.000000e+00 : f32
    %20 = vector.broadcast %cst_10 : f32 to vector<32x251xf32>
    %21 = arith.maximumf %19, %20 : vector<32x251xf32>
    %cst_11 = arith.constant dense<0.000000e+00> : vector<32x250xf32>
    %22 = tpu.matmul %4, %16, %cst_11 {dimension_numbers = #tpu.dot_dimension_numbers<[1], [0], [0], [1], [0, 0, 1, 1], [], []>} : vector<32x16xf32>, vector<16x250xf32>, vector<32x250xf32> -> vector<32x250xf32>
    %23 = vector.broadcast %5 : vector<32x1xf32> to vector<32x250xf32>
    %24 = arith.addf %22, %23 : vector<32x250xf32>
    %cst_12 = arith.constant 0.000000e+00 : f32
    %25 = vector.broadcast %cst_12 : f32 to vector<32x250xf32>
    %26 = arith.maximumf %24, %25 : vector<32x250xf32>
    %27 = tpu.concatenate %6, %21 in 1 : vector<32x1xf32>, vector<32x251xf32> -> vector<32x252xf32>
    %28 = arith.truncf %27 : vector<32x252xf32> to vector<32x252xbf16>
    %c0_13 = arith.constant 0 : index
    %c0_14 = arith.constant 0 : index
    %c0_15 = arith.constant 0 : index
    %29 = vector.load %arg13[%c0_13, %c0_14, %c0_15] : memref<5x32x252xbf16, #tpu.memory_space<vmem>>, vector<1x32x252xbf16>
    %30 = vector.shape_cast %29 : vector<1x32x252xbf16> to vector<32x252xbf16>
    %31 = vector.shape_cast %28 : vector<32x252xbf16> to vector<1x32x252xbf16>
    tpu.vector_store %arg13[%c0_13, %c0_14, %c0_15], %31 {strides = array<i32>} : memref<5x32x252xbf16, #tpu.memory_space<vmem>>, vector<1x32x252xbf16>,
    %32 = tpu.concatenate %6, %26, %6 in 1 : vector<32x1xf32>, vector<32x250xf32>, vector<32x1xf32> -> vector<32x252xf32>
    %33 = arith.truncf %32 : vector<32x252xf32> to vector<32x252xbf16>
    %c0_16 = arith.constant 0 : index
    %c0_17 = arith.constant 0 : index
    %c0_18 = arith.constant 0 : index
    %34 = vector.load %arg14[%c0_16, %c0_17, %c0_18] : memref<5x32x252xbf16, #tpu.memory_space<vmem>>, vector<1x32x252xbf16>
    %35 = vector.shape_cast %34 : vector<1x32x252xbf16> to vector<32x252xbf16>
    %36 = vector.shape_cast %33 : vector<32x252xbf16> to vector<1x32x252xbf16>
    tpu.vector_store %arg14[%c0_16, %c0_17, %c0_18], %36 {strides = array<i32>} : memref<5x32x252xbf16, #tpu.memory_space<vmem>>, vector<1x32x252xbf16>,
    %37 = vector.extract_strided_slice %1 {offsets = [1, 0], sizes = [4, 251], strides = [1, 1]} : vector<8x252xf32> to vector<4x251xf32>
    %38 = vector.extract_strided_slice %3 {offsets = [1, 0], sizes = [4, 251], strides = [1, 1]} : vector<8x252xf32> to vector<4x251xf32>
    %39 = vector.extract_strided_slice %1 {offsets = [1, 1], sizes = [4, 251], strides = [1, 1]} : vector<8x252xf32> to vector<4x251xf32>
    %40 = vector.extract_strided_slice %3 {offsets = [1, 1], sizes = [4, 251], strides = [1, 1]} : vector<8x252xf32> to vector<4x251xf32>
    %41 = tpu.concatenate %37, %38, %39, %40 in 0 : vector<4x251xf32>, vector<4x251xf32>, vector<4x251xf32>, vector<4x251xf32> -> vector<16x251xf32>
    %42 = vector.extract_strided_slice %3 {offsets = [1, 0], sizes = [4, 250], strides = [1, 1]} : vector<8x252xf32> to vector<4x250xf32>
    %43 = vector.extract_strided_slice %1 {offsets = [1, 1], sizes = [4, 250], strides = [1, 1]} : vector<8x252xf32> to vector<4x250xf32>
    %44 = vector.extract_strided_slice %3 {offsets = [1, 1], sizes = [4, 250], strides = [1, 1]} : vector<8x252xf32> to vector<4x250xf32>
    %45 = vector.extract_strided_slice %1 {offsets = [1, 2], sizes = [4, 250], strides = [1, 1]} : vector<8x252xf32> to vector<4x250xf32>
    %46 = tpu.concatenate %42, %43, %44, %45 in 0 : vector<4x250xf32>, vector<4x250xf32>, vector<4x250xf32>, vector<4x250xf32> -> vector<16x250xf32>
    %cst_19 = arith.constant dense<0.000000e+00> : vector<32x251xf32>
    %47 = tpu.matmul %4, %41, %cst_19 {dimension_numbers = #tpu.dot_dimension_numbers<[1], [0], [0], [1], [0, 0, 1, 1], [], []>} : vector<32x16xf32>, vector<16x251xf32>, vector<32x251xf32> -> vector<32x251xf32>
    %48 = vector.broadcast %5 : vector<32x1xf32> to vector<32x251xf32>
    %49 = arith.addf %47, %48 : vector<32x251xf32>
    %cst_20 = arith.constant 0.000000e+00 : f32
    %50 = vector.broadcast %cst_20 : f32 to vector<32x251xf32>
    %51 = arith.maximumf %49, %50 : vector<32x251xf32>
    %cst_21 = arith.constant dense<0.000000e+00> : vector<32x250xf32>
    %52 = tpu.matmul %4, %46, %cst_21 {dimension_numbers = #tpu.dot_dimension_numbers<[1], [0], [0], [1], [0, 0, 1, 1], [], []>} : vector<32x16xf32>, vector<16x250xf32>, vector<32x250xf32> -> vector<32x250xf32>
    %53 = vector.broadcast %5 : vector<32x1xf32> to vector<32x250xf32>
    %54 = arith.addf %52, %53 : vector<32x250xf32>
    %cst_22 = arith.constant 0.000000e+00 : f32
    %55 = vector.broadcast %cst_22 : f32 to vector<32x250xf32>
    %56 = arith.maximumf %54, %55 : vector<32x250xf32>
    %57 = tpu.concatenate %6, %51 in 1 : vector<32x1xf32>, vector<32x251xf32> -> vector<32x252xf32>
    %58 = arith.truncf %57 : vector<32x252xf32> to vector<32x252xbf16>
    %c1 = arith.constant 1 : index
    %c0_23 = arith.constant 0 : index
    %c0_24 = arith.constant 0 : index
    %59 = vector.load %arg13[%c1, %c0_23, %c0_24] : memref<5x32x252xbf16, #tpu.memory_space<vmem>>, vector<1x32x252xbf16>
    %60 = vector.shape_cast %59 : vector<1x32x252xbf16> to vector<32x252xbf16>
    %61 = vector.shape_cast %58 : vector<32x252xbf16> to vector<1x32x252xbf16>
    tpu.vector_store %arg13[%c1, %c0_23, %c0_24], %61 {strides = array<i32>} : memref<5x32x252xbf16, #tpu.memory_space<vmem>>, vector<1x32x252xbf16>,
    %62 = tpu.concatenate %6, %56, %6 in 1 : vector<32x1xf32>, vector<32x250xf32>, vector<32x1xf32> -> vector<32x252xf32>
    %63 = arith.truncf %62 : vector<32x252xf32> to vector<32x252xbf16>
    %c1_25 = arith.constant 1 : index
    %c0_26 = arith.constant 0 : index
    %c0_27 = arith.constant 0 : index
    %64 = vector.load %arg14[%c1_25, %c0_26, %c0_27] : memref<5x32x252xbf16, #tpu.memory_space<vmem>>, vector<1x32x252xbf16>
    %65 = vector.shape_cast %64 : vector<1x32x252xbf16> to vector<32x252xbf16>
    %66 = vector.shape_cast %63 : vector<32x252xbf16> to vector<1x32x252xbf16>
    tpu.vector_store %arg14[%c1_25, %c0_26, %c0_27], %66 {strides = array<i32>} : memref<5x32x252xbf16, #tpu.memory_space<vmem>>, vector<1x32x252xbf16>,
    %67 = vector.extract_strided_slice %1 {offsets = [2, 0], sizes = [4, 251], strides = [1, 1]} : vector<8x252xf32> to vector<4x251xf32>
    %68 = vector.extract_strided_slice %3 {offsets = [2, 0], sizes = [4, 251], strides = [1, 1]} : vector<8x252xf32> to vector<4x251xf32>
    %69 = vector.extract_strided_slice %1 {offsets = [2, 1], sizes = [4, 251], strides = [1, 1]} : vector<8x252xf32> to vector<4x251xf32>
    %70 = vector.extract_strided_slice %3 {offsets = [2, 1], sizes = [4, 251], strides = [1, 1]} : vector<8x252xf32> to vector<4x251xf32>
    %71 = tpu.concatenate %67, %68, %69, %70 in 0 : vector<4x251xf32>, vector<4x251xf32>, vector<4x251xf32>, vector<4x251xf32> -> vector<16x251xf32>
    %72 = vector.extract_strided_slice %3 {offsets = [2, 0], sizes = [4, 250], strides = [1, 1]} : vector<8x252xf32> to vector<4x250xf32>
    %73 = vector.extract_strided_slice %1 {offsets = [2, 1], sizes = [4, 250], strides = [1, 1]} : vector<8x252xf32> to vector<4x250xf32>
    %74 = vector.extract_strided_slice %3 {offsets = [2, 1], sizes = [4, 250], strides = [1, 1]} : vector<8x252xf32> to vector<4x250xf32>
    %75 = vector.extract_strided_slice %1 {offsets = [2, 2], sizes = [4, 250], strides = [1, 1]} : vector<8x252xf32> to vector<4x250xf32>
    %76 = tpu.concatenate %72, %73, %74, %75 in 0 : vector<4x250xf32>, vector<4x250xf32>, vector<4x250xf32>, vector<4x250xf32> -> vector<16x250xf32>
    %cst_28 = arith.constant dense<0.000000e+00> : vector<32x251xf32>
    %77 = tpu.matmul %4, %71, %cst_28 {dimension_numbers = #tpu.dot_dimension_numbers<[1], [0], [0], [1], [0, 0, 1, 1], [], []>} : vector<32x16xf32>, vector<16x251xf32>, vector<32x251xf32> -> vector<32x251xf32>
    %78 = vector.broadcast %5 : vector<32x1xf32> to vector<32x251xf32>
    %79 = arith.addf %77, %78 : vector<32x251xf32>
    %cst_29 = arith.constant 0.000000e+00 : f32
    %80 = vector.broadcast %cst_29 : f32 to vector<32x251xf32>
    %81 = arith.maximumf %79, %80 : vector<32x251xf32>
    %cst_30 = arith.constant dense<0.000000e+00> : vector<32x250xf32>
    %82 = tpu.matmul %4, %76, %cst_30 {dimension_numbers = #tpu.dot_dimension_numbers<[1], [0], [0], [1], [0, 0, 1, 1], [], []>} : vector<32x16xf32>, vector<16x250xf32>, vector<32x250xf32> -> vector<32x250xf32>
    %83 = vector.broadcast %5 : vector<32x1xf32> to vector<32x250xf32>
    %84 = arith.addf %82, %83 : vector<32x250xf32>
    %cst_31 = arith.constant 0.000000e+00 : f32
    %85 = vector.broadcast %cst_31 : f32 to vector<32x250xf32>
    %86 = arith.maximumf %84, %85 : vector<32x250xf32>
    %87 = tpu.concatenate %6, %81 in 1 : vector<32x1xf32>, vector<32x251xf32> -> vector<32x252xf32>
    %88 = arith.truncf %87 : vector<32x252xf32> to vector<32x252xbf16>
    %c2 = arith.constant 2 : index
    %c0_32 = arith.constant 0 : index
    %c0_33 = arith.constant 0 : index
    %89 = vector.load %arg13[%c2, %c0_32, %c0_33] : memref<5x32x252xbf16, #tpu.memory_space<vmem>>, vector<1x32x252xbf16>
    %90 = vector.shape_cast %89 : vector<1x32x252xbf16> to vector<32x252xbf16>
    %91 = vector.shape_cast %88 : vector<32x252xbf16> to vector<1x32x252xbf16>
    tpu.vector_store %arg13[%c2, %c0_32, %c0_33], %91 {strides = array<i32>} : memref<5x32x252xbf16, #tpu.memory_space<vmem>>, vector<1x32x252xbf16>,
    %92 = tpu.concatenate %6, %86, %6 in 1 : vector<32x1xf32>, vector<32x250xf32>, vector<32x1xf32> -> vector<32x252xf32>
    %93 = arith.truncf %92 : vector<32x252xf32> to vector<32x252xbf16>
    %c2_34 = arith.constant 2 : index
    %c0_35 = arith.constant 0 : index
    %c0_36 = arith.constant 0 : index
    %94 = vector.load %arg14[%c2_34, %c0_35, %c0_36] : memref<5x32x252xbf16, #tpu.memory_space<vmem>>, vector<1x32x252xbf16>
    %95 = vector.shape_cast %94 : vector<1x32x252xbf16> to vector<32x252xbf16>
    %96 = vector.shape_cast %93 : vector<32x252xbf16> to vector<1x32x252xbf16>
    tpu.vector_store %arg14[%c2_34, %c0_35, %c0_36], %96 {strides = array<i32>} : memref<5x32x252xbf16, #tpu.memory_space<vmem>>, vector<1x32x252xbf16>,
    %97 = vector.extract_strided_slice %1 {offsets = [3, 0], sizes = [4, 251], strides = [1, 1]} : vector<8x252xf32> to vector<4x251xf32>
    %98 = vector.extract_strided_slice %3 {offsets = [3, 0], sizes = [4, 251], strides = [1, 1]} : vector<8x252xf32> to vector<4x251xf32>
    %99 = vector.extract_strided_slice %1 {offsets = [3, 1], sizes = [4, 251], strides = [1, 1]} : vector<8x252xf32> to vector<4x251xf32>
    %100 = vector.extract_strided_slice %3 {offsets = [3, 1], sizes = [4, 251], strides = [1, 1]} : vector<8x252xf32> to vector<4x251xf32>
    %101 = tpu.concatenate %97, %98, %99, %100 in 0 : vector<4x251xf32>, vector<4x251xf32>, vector<4x251xf32>, vector<4x251xf32> -> vector<16x251xf32>
    %102 = vector.extract_strided_slice %3 {offsets = [3, 0], sizes = [4, 250], strides = [1, 1]} : vector<8x252xf32> to vector<4x250xf32>
    %103 = vector.extract_strided_slice %1 {offsets = [3, 1], sizes = [4, 250], strides = [1, 1]} : vector<8x252xf32> to vector<4x250xf32>
    %104 = vector.extract_strided_slice %3 {offsets = [3, 1], sizes = [4, 250], strides = [1, 1]} : vector<8x252xf32> to vector<4x250xf32>
    %105 = vector.extract_strided_slice %1 {offsets = [3, 2], sizes = [4, 250], strides = [1, 1]} : vector<8x252xf32> to vector<4x250xf32>
    %106 = tpu.concatenate %102, %103, %104, %105 in 0 : vector<4x250xf32>, vector<4x250xf32>, vector<4x250xf32>, vector<4x250xf32> -> vector<16x250xf32>
    %cst_37 = arith.constant dense<0.000000e+00> : vector<32x251xf32>
    %107 = tpu.matmul %4, %101, %cst_37 {dimension_numbers = #tpu.dot_dimension_numbers<[1], [0], [0], [1], [0, 0, 1, 1], [], []>} : vector<32x16xf32>, vector<16x251xf32>, vector<32x251xf32> -> vector<32x251xf32>
    %108 = vector.broadcast %5 : vector<32x1xf32> to vector<32x251xf32>
    %109 = arith.addf %107, %108 : vector<32x251xf32>
    %cst_38 = arith.constant 0.000000e+00 : f32
    %110 = vector.broadcast %cst_38 : f32 to vector<32x251xf32>
    %111 = arith.maximumf %109, %110 : vector<32x251xf32>
    %cst_39 = arith.constant dense<0.000000e+00> : vector<32x250xf32>
    %112 = tpu.matmul %4, %106, %cst_39 {dimension_numbers = #tpu.dot_dimension_numbers<[1], [0], [0], [1], [0, 0, 1, 1], [], []>} : vector<32x16xf32>, vector<16x250xf32>, vector<32x250xf32> -> vector<32x250xf32>
    %113 = vector.broadcast %5 : vector<32x1xf32> to vector<32x250xf32>
    %114 = arith.addf %112, %113 : vector<32x250xf32>
    %cst_40 = arith.constant 0.000000e+00 : f32
    %115 = vector.broadcast %cst_40 : f32 to vector<32x250xf32>
    %116 = arith.maximumf %114, %115 : vector<32x250xf32>
    %117 = tpu.concatenate %6, %111 in 1 : vector<32x1xf32>, vector<32x251xf32> -> vector<32x252xf32>
    %118 = arith.truncf %117 : vector<32x252xf32> to vector<32x252xbf16>
    %c3 = arith.constant 3 : index
    %c0_41 = arith.constant 0 : index
    %c0_42 = arith.constant 0 : index
    %119 = vector.load %arg13[%c3, %c0_41, %c0_42] : memref<5x32x252xbf16, #tpu.memory_space<vmem>>, vector<1x32x252xbf16>
    %120 = vector.shape_cast %119 : vector<1x32x252xbf16> to vector<32x252xbf16>
    %121 = vector.shape_cast %118 : vector<32x252xbf16> to vector<1x32x252xbf16>
    tpu.vector_store %arg13[%c3, %c0_41, %c0_42], %121 {strides = array<i32>} : memref<5x32x252xbf16, #tpu.memory_space<vmem>>, vector<1x32x252xbf16>,
    %122 = tpu.concatenate %6, %116, %6 in 1 : vector<32x1xf32>, vector<32x250xf32>, vector<32x1xf32> -> vector<32x252xf32>
    %123 = arith.truncf %122 : vector<32x252xf32> to vector<32x252xbf16>
    %c3_43 = arith.constant 3 : index
    %c0_44 = arith.constant 0 : index
    %c0_45 = arith.constant 0 : index
    %124 = vector.load %arg14[%c3_43, %c0_44, %c0_45] : memref<5x32x252xbf16, #tpu.memory_space<vmem>>, vector<1x32x252xbf16>
    %125 = vector.shape_cast %124 : vector<1x32x252xbf16> to vector<32x252xbf16>
    %126 = vector.shape_cast %123 : vector<32x252xbf16> to vector<1x32x252xbf16>
    tpu.vector_store %arg14[%c3_43, %c0_44, %c0_45], %126 {strides = array<i32>} : memref<5x32x252xbf16, #tpu.memory_space<vmem>>, vector<1x32x252xbf16>,
    %127 = vector.extract_strided_slice %1 {offsets = [4, 0], sizes = [4, 251], strides = [1, 1]} : vector<8x252xf32> to vector<4x251xf32>
    %128 = vector.extract_strided_slice %3 {offsets = [4, 0], sizes = [4, 251], strides = [1, 1]} : vector<8x252xf32> to vector<4x251xf32>
    %129 = vector.extract_strided_slice %1 {offsets = [4, 1], sizes = [4, 251], strides = [1, 1]} : vector<8x252xf32> to vector<4x251xf32>
    %130 = vector.extract_strided_slice %3 {offsets = [4, 1], sizes = [4, 251], strides = [1, 1]} : vector<8x252xf32> to vector<4x251xf32>
    %131 = tpu.concatenate %127, %128, %129, %130 in 0 : vector<4x251xf32>, vector<4x251xf32>, vector<4x251xf32>, vector<4x251xf32> -> vector<16x251xf32>
    %132 = vector.extract_strided_slice %3 {offsets = [4, 0], sizes = [4, 250], strides = [1, 1]} : vector<8x252xf32> to vector<4x250xf32>
    %133 = vector.extract_strided_slice %1 {offsets = [4, 1], sizes = [4, 250], strides = [1, 1]} : vector<8x252xf32> to vector<4x250xf32>
    %134 = vector.extract_strided_slice %3 {offsets = [4, 1], sizes = [4, 250], strides = [1, 1]} : vector<8x252xf32> to vector<4x250xf32>
    %135 = vector.extract_strided_slice %1 {offsets = [4, 2], sizes = [4, 250], strides = [1, 1]} : vector<8x252xf32> to vector<4x250xf32>
    %136 = tpu.concatenate %132, %133, %134, %135 in 0 : vector<4x250xf32>, vector<4x250xf32>, vector<4x250xf32>, vector<4x250xf32> -> vector<16x250xf32>
    %cst_46 = arith.constant dense<0.000000e+00> : vector<32x251xf32>
    %137 = tpu.matmul %4, %131, %cst_46 {dimension_numbers = #tpu.dot_dimension_numbers<[1], [0], [0], [1], [0, 0, 1, 1], [], []>} : vector<32x16xf32>, vector<16x251xf32>, vector<32x251xf32> -> vector<32x251xf32>
    %138 = vector.broadcast %5 : vector<32x1xf32> to vector<32x251xf32>
    %139 = arith.addf %137, %138 : vector<32x251xf32>
    %cst_47 = arith.constant 0.000000e+00 : f32
    %140 = vector.broadcast %cst_47 : f32 to vector<32x251xf32>
    %141 = arith.maximumf %139, %140 : vector<32x251xf32>
    %cst_48 = arith.constant dense<0.000000e+00> : vector<32x250xf32>
    %142 = tpu.matmul %4, %136, %cst_48 {dimension_numbers = #tpu.dot_dimension_numbers<[1], [0], [0], [1], [0, 0, 1, 1], [], []>} : vector<32x16xf32>, vector<16x250xf32>, vector<32x250xf32> -> vector<32x250xf32>
    %143 = vector.broadcast %5 : vector<32x1xf32> to vector<32x250xf32>
    %144 = arith.addf %142, %143 : vector<32x250xf32>
    %cst_49 = arith.constant 0.000000e+00 : f32
    %145 = vector.broadcast %cst_49 : f32 to vector<32x250xf32>
    %146 = arith.maximumf %144, %145 : vector<32x250xf32>
    %147 = tpu.concatenate %6, %141 in 1 : vector<32x1xf32>, vector<32x251xf32> -> vector<32x252xf32>
    %148 = arith.truncf %147 : vector<32x252xf32> to vector<32x252xbf16>
    %c4 = arith.constant 4 : index
    %c0_50 = arith.constant 0 : index
    %c0_51 = arith.constant 0 : index
    %149 = vector.load %arg13[%c4, %c0_50, %c0_51] : memref<5x32x252xbf16, #tpu.memory_space<vmem>>, vector<1x32x252xbf16>
    %150 = vector.shape_cast %149 : vector<1x32x252xbf16> to vector<32x252xbf16>
    %151 = vector.shape_cast %148 : vector<32x252xbf16> to vector<1x32x252xbf16>
    tpu.vector_store %arg13[%c4, %c0_50, %c0_51], %151 {strides = array<i32>} : memref<5x32x252xbf16, #tpu.memory_space<vmem>>, vector<1x32x252xbf16>,
    %152 = tpu.concatenate %6, %146, %6 in 1 : vector<32x1xf32>, vector<32x250xf32>, vector<32x1xf32> -> vector<32x252xf32>
    %153 = arith.truncf %152 : vector<32x252xf32> to vector<32x252xbf16>
    %c4_52 = arith.constant 4 : index
    %c0_53 = arith.constant 0 : index
    %c0_54 = arith.constant 0 : index
    %154 = vector.load %arg14[%c4_52, %c0_53, %c0_54] : memref<5x32x252xbf16, #tpu.memory_space<vmem>>, vector<1x32x252xbf16>
    %155 = vector.shape_cast %154 : vector<1x32x252xbf16> to vector<32x252xbf16>
    %156 = vector.shape_cast %153 : vector<32x252xbf16> to vector<1x32x252xbf16>
    tpu.vector_store %arg14[%c4_52, %c0_53, %c0_54], %156 {strides = array<i32>} : memref<5x32x252xbf16, #tpu.memory_space<vmem>>, vector<1x32x252xbf16>,
    %c0_55 = arith.constant 0 : index
    %c0_56 = arith.constant 0 : index
    %157 = vector.load %arg7[%c0_55, %c0_56] : memref<32x1xf32, #tpu.memory_space<vmem>>, vector<32x1xf32>
    %cst_57 = arith.constant 0.000000e+00 : f32
    %158 = vector.broadcast %cst_57 : f32 to vector<32x251xf32>
    %c0_58 = arith.constant 0 : index
    %c0_59 = arith.constant 0 : index
    %c0_60 = arith.constant 0 : index
    %159 = vector.load %arg13[%c0_58, %c0_59, %c0_60] : memref<5x32x252xbf16, #tpu.memory_space<vmem>>, vector<1x32x252xbf16>
    %160 = vector.shape_cast %159 : vector<1x32x252xbf16> to vector<32x252xbf16>
    %c0_61 = arith.constant 0 : index
    %c0_62 = arith.constant 0 : index
    %c0_63 = arith.constant 0 : index
    %161 = vector.load %arg14[%c0_61, %c0_62, %c0_63] : memref<5x32x252xbf16, #tpu.memory_space<vmem>>, vector<1x32x252xbf16>
    %162 = vector.shape_cast %161 : vector<1x32x252xbf16> to vector<32x252xbf16>
    %163 = vector.extract_strided_slice %160 {offsets = [0, 0], sizes = [32, 251], strides = [1, 1]} : vector<32x252xbf16> to vector<32x251xbf16>
    %164 = vector.extract_strided_slice %162 {offsets = [0, 0], sizes = [32, 251], strides = [1, 1]} : vector<32x252xbf16> to vector<32x251xbf16>
    %165 = vector.extract_strided_slice %160 {offsets = [0, 1], sizes = [32, 251], strides = [1, 1]} : vector<32x252xbf16> to vector<32x251xbf16>
    %166 = vector.extract_strided_slice %162 {offsets = [0, 1], sizes = [32, 251], strides = [1, 1]} : vector<32x252xbf16> to vector<32x251xbf16>
    %c8 = arith.constant 8 : index
    %c0_64 = arith.constant 0 : index
    %c0_65 = arith.constant 0 : index
    %167 = vector.load %arg6[%c8, %c0_64, %c0_65] : memref<16x32x32xbf16, #tpu.memory_space<vmem>>, vector<1x32x32xbf16>
    %168 = vector.shape_cast %167 : vector<1x32x32xbf16> to vector<32x32xbf16>
    %cst_66 = arith.constant dense<0.000000e+00> : vector<32x251xf32>
    %169 = tpu.matmul %168, %163, %cst_66 {dimension_numbers = #tpu.dot_dimension_numbers<[1], [0], [0], [1], [0, 0, 1, 1], [], []>} : vector<32x32xbf16>, vector<32x251xbf16>, vector<32x251xf32> -> vector<32x251xf32>
    %170 = arith.addf %158, %169 : vector<32x251xf32>
    %c9 = arith.constant 9 : index
    %c0_67 = arith.constant 0 : index
    %c0_68 = arith.constant 0 : index
    %171 = vector.load %arg6[%c9, %c0_67, %c0_68] : memref<16x32x32xbf16, #tpu.memory_space<vmem>>, vector<1x32x32xbf16>
    %172 = vector.shape_cast %171 : vector<1x32x32xbf16> to vector<32x32xbf16>
    %cst_69 = arith.constant dense<0.000000e+00> : vector<32x251xf32>
    %173 = tpu.matmul %172, %164, %cst_69 {dimension_numbers = #tpu.dot_dimension_numbers<[1], [0], [0], [1], [0, 0, 1, 1], [], []>} : vector<32x32xbf16>, vector<32x251xbf16>, vector<32x251xf32> -> vector<32x251xf32>
    %174 = arith.addf %170, %173 : vector<32x251xf32>
    %c10 = arith.constant 10 : index
    %c0_70 = arith.constant 0 : index
    %c0_71 = arith.constant 0 : index
    %175 = vector.load %arg6[%c10, %c0_70, %c0_71] : memref<16x32x32xbf16, #tpu.memory_space<vmem>>, vector<1x32x32xbf16>
    %176 = vector.shape_cast %175 : vector<1x32x32xbf16> to vector<32x32xbf16>
    %cst_72 = arith.constant dense<0.000000e+00> : vector<32x251xf32>
    %177 = tpu.matmul %176, %165, %cst_72 {dimension_numbers = #tpu.dot_dimension_numbers<[1], [0], [0], [1], [0, 0, 1, 1], [], []>} : vector<32x32xbf16>, vector<32x251xbf16>, vector<32x251xf32> -> vector<32x251xf32>
    %178 = arith.addf %174, %177 : vector<32x251xf32>
    %c11 = arith.constant 11 : index
    %c0_73 = arith.constant 0 : index
    %c0_74 = arith.constant 0 : index
    %179 = vector.load %arg6[%c11, %c0_73, %c0_74] : memref<16x32x32xbf16, #tpu.memory_space<vmem>>, vector<1x32x32xbf16>
    %180 = vector.shape_cast %179 : vector<1x32x32xbf16> to vector<32x32xbf16>
    %cst_75 = arith.constant dense<0.000000e+00> : vector<32x251xf32>
    %181 = tpu.matmul %180, %166, %cst_75 {dimension_numbers = #tpu.dot_dimension_numbers<[1], [0], [0], [1], [0, 0, 1, 1], [], []>} : vector<32x32xbf16>, vector<32x251xbf16>, vector<32x251xf32> -> vector<32x251xf32>
    %182 = arith.addf %178, %181 : vector<32x251xf32>
    %c1_76 = arith.constant 1 : index
    %c0_77 = arith.constant 0 : index
    %c0_78 = arith.constant 0 : index
    %183 = vector.load %arg13[%c1_76, %c0_77, %c0_78] : memref<5x32x252xbf16, #tpu.memory_space<vmem>>, vector<1x32x252xbf16>
    %184 = vector.shape_cast %183 : vector<1x32x252xbf16> to vector<32x252xbf16>
    %c1_79 = arith.constant 1 : index
    %c0_80 = arith.constant 0 : index
    %c0_81 = arith.constant 0 : index
    %185 = vector.load %arg14[%c1_79, %c0_80, %c0_81] : memref<5x32x252xbf16, #tpu.memory_space<vmem>>, vector<1x32x252xbf16>
    %186 = vector.shape_cast %185 : vector<1x32x252xbf16> to vector<32x252xbf16>
    %187 = vector.extract_strided_slice %184 {offsets = [0, 0], sizes = [32, 251], strides = [1, 1]} : vector<32x252xbf16> to vector<32x251xbf16>
    %188 = vector.extract_strided_slice %186 {offsets = [0, 0], sizes = [32, 251], strides = [1, 1]} : vector<32x252xbf16> to vector<32x251xbf16>
    %189 = vector.extract_strided_slice %184 {offsets = [0, 1], sizes = [32, 251], strides = [1, 1]} : vector<32x252xbf16> to vector<32x251xbf16>
    %190 = vector.extract_strided_slice %186 {offsets = [0, 1], sizes = [32, 251], strides = [1, 1]} : vector<32x252xbf16> to vector<32x251xbf16>
    %c12 = arith.constant 12 : index
    %c0_82 = arith.constant 0 : index
    %c0_83 = arith.constant 0 : index
    %191 = vector.load %arg6[%c12, %c0_82, %c0_83] : memref<16x32x32xbf16, #tpu.memory_space<vmem>>, vector<1x32x32xbf16>
    %192 = vector.shape_cast %191 : vector<1x32x32xbf16> to vector<32x32xbf16>
    %cst_84 = arith.constant dense<0.000000e+00> : vector<32x251xf32>
    %193 = tpu.matmul %192, %187, %cst_84 {dimension_numbers = #tpu.dot_dimension_numbers<[1], [0], [0], [1], [0, 0, 1, 1], [], []>} : vector<32x32xbf16>, vector<32x251xbf16>, vector<32x251xf32> -> vector<32x251xf32>
    %194 = arith.addf %182, %193 : vector<32x251xf32>
    %c13 = arith.constant 13 : index
    %c0_85 = arith.constant 0 : index
    %c0_86 = arith.constant 0 : index
    %195 = vector.load %arg6[%c13, %c0_85, %c0_86] : memref<16x32x32xbf16, #tpu.memory_space<vmem>>, vector<1x32x32xbf16>
    %196 = vector.shape_cast %195 : vector<1x32x32xbf16> to vector<32x32xbf16>
    %cst_87 = arith.constant dense<0.000000e+00> : vector<32x251xf32>
    %197 = tpu.matmul %196, %188, %cst_87 {dimension_numbers = #tpu.dot_dimension_numbers<[1], [0], [0], [1], [0, 0, 1, 1], [], []>} : vector<32x32xbf16>, vector<32x251xbf16>, vector<32x251xf32> -> vector<32x251xf32>
    %198 = arith.addf %194, %197 : vector<32x251xf32>
    %c14 = arith.constant 14 : index
    %c0_88 = arith.constant 0 : index
    %c0_89 = arith.constant 0 : index
    %199 = vector.load %arg6[%c14, %c0_88, %c0_89] : memref<16x32x32xbf16, #tpu.memory_space<vmem>>, vector<1x32x32xbf16>
    %200 = vector.shape_cast %199 : vector<1x32x32xbf16> to vector<32x32xbf16>
    %cst_90 = arith.constant dense<0.000000e+00> : vector<32x251xf32>
    %201 = tpu.matmul %200, %189, %cst_90 {dimension_numbers = #tpu.dot_dimension_numbers<[1], [0], [0], [1], [0, 0, 1, 1], [], []>} : vector<32x32xbf16>, vector<32x251xbf16>, vector<32x251xf32> -> vector<32x251xf32>
    %202 = arith.addf %198, %201 : vector<32x251xf32>
    %c15 = arith.constant 15 : index
    %c0_91 = arith.constant 0 : index
    %c0_92 = arith.constant 0 : index
    %203 = vector.load %arg6[%c15, %c0_91, %c0_92] : memref<16x32x32xbf16, #tpu.memory_space<vmem>>, vector<1x32x32xbf16>
    %204 = vector.shape_cast %203 : vector<1x32x32xbf16> to vector<32x32xbf16>
    %cst_93 = arith.constant dense<0.000000e+00> : vector<32x251xf32>
    %205 = tpu.matmul %204, %190, %cst_93 {dimension_numbers = #tpu.dot_dimension_numbers<[1], [0], [0], [1], [0, 0, 1, 1], [], []>} : vector<32x32xbf16>, vector<32x251xbf16>, vector<32x251xf32> -> vector<32x251xf32>
    %206 = arith.addf %202, %205 : vector<32x251xf32>
    %207 = vector.broadcast %157 : vector<32x1xf32> to vector<32x251xf32>
    %208 = arith.addf %206, %207 : vector<32x251xf32>
    %cst_94 = arith.constant 0.000000e+00 : f32
    %209 = vector.broadcast %cst_94 : f32 to vector<32x251xf32>
    %210 = arith.maximumf %208, %209 : vector<32x251xf32>
    %cst_95 = arith.constant 0.000000e+00 : f32
    %211 = vector.broadcast %cst_95 : f32 to vector<32x251xf32>
    %c0_96 = arith.constant 0 : index
    %c0_97 = arith.constant 0 : index
    %c0_98 = arith.constant 0 : index
    %212 = vector.load %arg13[%c0_96, %c0_97, %c0_98] : memref<5x32x252xbf16, #tpu.memory_space<vmem>>, vector<1x32x252xbf16>
    %213 = vector.shape_cast %212 : vector<1x32x252xbf16> to vector<32x252xbf16>
    %c0_99 = arith.constant 0 : index
    %c0_100 = arith.constant 0 : index
    %c0_101 = arith.constant 0 : index
    %214 = vector.load %arg14[%c0_99, %c0_100, %c0_101] : memref<5x32x252xbf16, #tpu.memory_space<vmem>>, vector<1x32x252xbf16>
    %215 = vector.shape_cast %214 : vector<1x32x252xbf16> to vector<32x252xbf16>
    %216 = vector.extract_strided_slice %213 {offsets = [0, 0], sizes = [32, 251], strides = [1, 1]} : vector<32x252xbf16> to vector<32x251xbf16>
    %217 = vector.extract_strided_slice %215 {offsets = [0, 0], sizes = [32, 251], strides = [1, 1]} : vector<32x252xbf16> to vector<32x251xbf16>
    %218 = vector.extract_strided_slice %213 {offsets = [0, 1], sizes = [32, 251], strides = [1, 1]} : vector<32x252xbf16> to vector<32x251xbf16>
    %219 = vector.extract_strided_slice %215 {offsets = [0, 1], sizes = [32, 251], strides = [1, 1]} : vector<32x252xbf16> to vector<32x251xbf16>
    %c0_102 = arith.constant 0 : index
    %c0_103 = arith.constant 0 : index
    %c0_104 = arith.constant 0 : index
    %220 = vector.load %arg6[%c0_102, %c0_103, %c0_104] : memref<16x32x32xbf16, #tpu.memory_space<vmem>>, vector<1x32x32xbf16>
    %221 = vector.shape_cast %220 : vector<1x32x32xbf16> to vector<32x32xbf16>
    %cst_105 = arith.constant dense<0.000000e+00> : vector<32x251xf32>
    %222 = tpu.matmul %221, %216, %cst_105 {dimension_numbers = #tpu.dot_dimension_numbers<[1], [0], [0], [1], [0, 0, 1, 1], [], []>} : vector<32x32xbf16>, vector<32x251xbf16>, vector<32x251xf32> -> vector<32x251xf32>
    %223 = arith.addf %211, %222 : vector<32x251xf32>
    %c1_106 = arith.constant 1 : index
    %c0_107 = arith.constant 0 : index
    %c0_108 = arith.constant 0 : index
    %224 = vector.load %arg6[%c1_106, %c0_107, %c0_108] : memref<16x32x32xbf16, #tpu.memory_space<vmem>>, vector<1x32x32xbf16>
    %225 = vector.shape_cast %224 : vector<1x32x32xbf16> to vector<32x32xbf16>
    %cst_109 = arith.constant dense<0.000000e+00> : vector<32x251xf32>
    %226 = tpu.matmul %225, %217, %cst_109 {dimension_numbers = #tpu.dot_dimension_numbers<[1], [0], [0], [1], [0, 0, 1, 1], [], []>} : vector<32x32xbf16>, vector<32x251xbf16>, vector<32x251xf32> -> vector<32x251xf32>
    %227 = arith.addf %223, %226 : vector<32x251xf32>
    %c2_110 = arith.constant 2 : index
    %c0_111 = arith.constant 0 : index
    %c0_112 = arith.constant 0 : index
    %228 = vector.load %arg6[%c2_110, %c0_111, %c0_112] : memref<16x32x32xbf16, #tpu.memory_space<vmem>>, vector<1x32x32xbf16>
    %229 = vector.shape_cast %228 : vector<1x32x32xbf16> to vector<32x32xbf16>
    %cst_113 = arith.constant dense<0.000000e+00> : vector<32x251xf32>
    %230 = tpu.matmul %229, %218, %cst_113 {dimension_numbers = #tpu.dot_dimension_numbers<[1], [0], [0], [1], [0, 0, 1, 1], [], []>} : vector<32x32xbf16>, vector<32x251xbf16>, vector<32x251xf32> -> vector<32x251xf32>
    %231 = arith.addf %227, %230 : vector<32x251xf32>
    %c3_114 = arith.constant 3 : index
    %c0_115 = arith.constant 0 : index
    %c0_116 = arith.constant 0 : index
    %232 = vector.load %arg6[%c3_114, %c0_115, %c0_116] : memref<16x32x32xbf16, #tpu.memory_space<vmem>>, vector<1x32x32xbf16>
    %233 = vector.shape_cast %232 : vector<1x32x32xbf16> to vector<32x32xbf16>
    %cst_117 = arith.constant dense<0.000000e+00> : vector<32x251xf32>
    %234 = tpu.matmul %233, %219, %cst_117 {dimension_numbers = #tpu.dot_dimension_numbers<[1], [0], [0], [1], [0, 0, 1, 1], [], []>} : vector<32x32xbf16>, vector<32x251xbf16>, vector<32x251xf32> -> vector<32x251xf32>
    %235 = arith.addf %231, %234 : vector<32x251xf32>
    %c1_118 = arith.constant 1 : index
    %c0_119 = arith.constant 0 : index
    %c0_120 = arith.constant 0 : index
    %236 = vector.load %arg13[%c1_118, %c0_119, %c0_120] : memref<5x32x252xbf16, #tpu.memory_space<vmem>>, vector<1x32x252xbf16>
    %237 = vector.shape_cast %236 : vector<1x32x252xbf16> to vector<32x252xbf16>
    %c1_121 = arith.constant 1 : index
    %c0_122 = arith.constant 0 : index
    %c0_123 = arith.constant 0 : index
    %238 = vector.load %arg14[%c1_121, %c0_122, %c0_123] : memref<5x32x252xbf16, #tpu.memory_space<vmem>>, vector<1x32x252xbf16>
    %239 = vector.shape_cast %238 : vector<1x32x252xbf16> to vector<32x252xbf16>
    %240 = vector.extract_strided_slice %237 {offsets = [0, 0], sizes = [32, 251], strides = [1, 1]} : vector<32x252xbf16> to vector<32x251xbf16>
    %241 = vector.extract_strided_slice %239 {offsets = [0, 0], sizes = [32, 251], strides = [1, 1]} : vector<32x252xbf16> to vector<32x251xbf16>
    %242 = vector.extract_strided_slice %237 {offsets = [0, 1], sizes = [32, 251], strides = [1, 1]} : vector<32x252xbf16> to vector<32x251xbf16>
    %243 = vector.extract_strided_slice %239 {offsets = [0, 1], sizes = [32, 251], strides = [1, 1]} : vector<32x252xbf16> to vector<32x251xbf16>
    %c4_124 = arith.constant 4 : index
    %c0_125 = arith.constant 0 : index
    %c0_126 = arith.constant 0 : index
    %244 = vector.load %arg6[%c4_124, %c0_125, %c0_126] : memref<16x32x32xbf16, #tpu.memory_space<vmem>>, vector<1x32x32xbf16>
    %245 = vector.shape_cast %244 : vector<1x32x32xbf16> to vector<32x32xbf16>
    %cst_127 = arith.constant dense<0.000000e+00> : vector<32x251xf32>
    %246 = tpu.matmul %245, %240, %cst_127 {dimension_numbers = #tpu.dot_dimension_numbers<[1], [0], [0], [1], [0, 0, 1, 1], [], []>} : vector<32x32xbf16>, vector<32x251xbf16>, vector<32x251xf32> -> vector<32x251xf32>
    %247 = arith.addf %235, %246 : vector<32x251xf32>
    %c5 = arith.constant 5 : index
    %c0_128 = arith.constant 0 : index
    %c0_129 = arith.constant 0 : index
    %248 = vector.load %arg6[%c5, %c0_128, %c0_129] : memref<16x32x32xbf16, #tpu.memory_space<vmem>>, vector<1x32x32xbf16>
    %249 = vector.shape_cast %248 : vector<1x32x32xbf16> to vector<32x32xbf16>
    %cst_130 = arith.constant dense<0.000000e+00> : vector<32x251xf32>
    %250 = tpu.matmul %249, %241, %cst_130 {dimension_numbers = #tpu.dot_dimension_numbers<[1], [0], [0], [1], [0, 0, 1, 1], [], []>} : vector<32x32xbf16>, vector<32x251xbf16>, vector<32x251xf32> -> vector<32x251xf32>
    %251 = arith.addf %247, %250 : vector<32x251xf32>
    %c6 = arith.constant 6 : index
    %c0_131 = arith.constant 0 : index
    %c0_132 = arith.constant 0 : index
    %252 = vector.load %arg6[%c6, %c0_131, %c0_132] : memref<16x32x32xbf16, #tpu.memory_space<vmem>>, vector<1x32x32xbf16>
    %253 = vector.shape_cast %252 : vector<1x32x32xbf16> to vector<32x32xbf16>
    %cst_133 = arith.constant dense<0.000000e+00> : vector<32x251xf32>
    %254 = tpu.matmul %253, %242, %cst_133 {dimension_numbers = #tpu.dot_dimension_numbers<[1], [0], [0], [1], [0, 0, 1, 1], [], []>} : vector<32x32xbf16>, vector<32x251xbf16>, vector<32x251xf32> -> vector<32x251xf32>
    %255 = arith.addf %251, %254 : vector<32x251xf32>
    %c7 = arith.constant 7 : index
    %c0_134 = arith.constant 0 : index
    %c0_135 = arith.constant 0 : index
    %256 = vector.load %arg6[%c7, %c0_134, %c0_135] : memref<16x32x32xbf16, #tpu.memory_space<vmem>>, vector<1x32x32xbf16>
    %257 = vector.shape_cast %256 : vector<1x32x32xbf16> to vector<32x32xbf16>
    %cst_136 = arith.constant dense<0.000000e+00> : vector<32x251xf32>
    %258 = tpu.matmul %257, %243, %cst_136 {dimension_numbers = #tpu.dot_dimension_numbers<[1], [0], [0], [1], [0, 0, 1, 1], [], []>} : vector<32x32xbf16>, vector<32x251xbf16>, vector<32x251xf32> -> vector<32x251xf32>
    %259 = arith.addf %255, %258 : vector<32x251xf32>
    %c2_137 = arith.constant 2 : index
    %c0_138 = arith.constant 0 : index
    %c0_139 = arith.constant 0 : index
    %260 = vector.load %arg13[%c2_137, %c0_138, %c0_139] : memref<5x32x252xbf16, #tpu.memory_space<vmem>>, vector<1x32x252xbf16>
    %261 = vector.shape_cast %260 : vector<1x32x252xbf16> to vector<32x252xbf16>
    %c2_140 = arith.constant 2 : index
    %c0_141 = arith.constant 0 : index
    %c0_142 = arith.constant 0 : index
    %262 = vector.load %arg14[%c2_140, %c0_141, %c0_142] : memref<5x32x252xbf16, #tpu.memory_space<vmem>>, vector<1x32x252xbf16>
    %263 = vector.shape_cast %262 : vector<1x32x252xbf16> to vector<32x252xbf16>
    %264 = vector.extract_strided_slice %261 {offsets = [0, 0], sizes = [32, 251], strides = [1, 1]} : vector<32x252xbf16> to vector<32x251xbf16>
    %265 = vector.extract_strided_slice %263 {offsets = [0, 0], sizes = [32, 251], strides = [1, 1]} : vector<32x252xbf16> to vector<32x251xbf16>
    %266 = vector.extract_strided_slice %261 {offsets = [0, 1], sizes = [32, 251], strides = [1, 1]} : vector<32x252xbf16> to vector<32x251xbf16>
    %267 = vector.extract_strided_slice %263 {offsets = [0, 1], sizes = [32, 251], strides = [1, 1]} : vector<32x252xbf16> to vector<32x251xbf16>
    %c8_143 = arith.constant 8 : index
    %c0_144 = arith.constant 0 : index
    %c0_145 = arith.constant 0 : index
    %268 = vector.load %arg6[%c8_143, %c0_144, %c0_145] : memref<16x32x32xbf16, #tpu.memory_space<vmem>>, vector<1x32x32xbf16>
    %269 = vector.shape_cast %268 : vector<1x32x32xbf16> to vector<32x32xbf16>
    %cst_146 = arith.constant dense<0.000000e+00> : vector<32x251xf32>
    %270 = tpu.matmul %269, %264, %cst_146 {dimension_numbers = #tpu.dot_dimension_numbers<[1], [0], [0], [1], [0, 0, 1, 1], [], []>} : vector<32x32xbf16>, vector<32x251xbf16>, vector<32x251xf32> -> vector<32x251xf32>
    %271 = arith.addf %259, %270 : vector<32x251xf32>
    %c9_147 = arith.constant 9 : index
    %c0_148 = arith.constant 0 : index
    %c0_149 = arith.constant 0 : index
    %272 = vector.load %arg6[%c9_147, %c0_148, %c0_149] : memref<16x32x32xbf16, #tpu.memory_space<vmem>>, vector<1x32x32xbf16>
    %273 = vector.shape_cast %272 : vector<1x32x32xbf16> to vector<32x32xbf16>
    %cst_150 = arith.constant dense<0.000000e+00> : vector<32x251xf32>
    %274 = tpu.matmul %273, %265, %cst_150 {dimension_numbers = #tpu.dot_dimension_numbers<[1], [0], [0], [1], [0, 0, 1, 1], [], []>} : vector<32x32xbf16>, vector<32x251xbf16>, vector<32x251xf32> -> vector<32x251xf32>
    %275 = arith.addf %271, %274 : vector<32x251xf32>
    %c10_151 = arith.constant 10 : index
    %c0_152 = arith.constant 0 : index
    %c0_153 = arith.constant 0 : index
    %276 = vector.load %arg6[%c10_151, %c0_152, %c0_153] : memref<16x32x32xbf16, #tpu.memory_space<vmem>>, vector<1x32x32xbf16>
    %277 = vector.shape_cast %276 : vector<1x32x32xbf16> to vector<32x32xbf16>
    %cst_154 = arith.constant dense<0.000000e+00> : vector<32x251xf32>
    %278 = tpu.matmul %277, %266, %cst_154 {dimension_numbers = #tpu.dot_dimension_numbers<[1], [0], [0], [1], [0, 0, 1, 1], [], []>} : vector<32x32xbf16>, vector<32x251xbf16>, vector<32x251xf32> -> vector<32x251xf32>
    %279 = arith.addf %275, %278 : vector<32x251xf32>
    %c11_155 = arith.constant 11 : index
    %c0_156 = arith.constant 0 : index
    %c0_157 = arith.constant 0 : index
    %280 = vector.load %arg6[%c11_155, %c0_156, %c0_157] : memref<16x32x32xbf16, #tpu.memory_space<vmem>>, vector<1x32x32xbf16>
    %281 = vector.shape_cast %280 : vector<1x32x32xbf16> to vector<32x32xbf16>
    %cst_158 = arith.constant dense<0.000000e+00> : vector<32x251xf32>
    %282 = tpu.matmul %281, %267, %cst_158 {dimension_numbers = #tpu.dot_dimension_numbers<[1], [0], [0], [1], [0, 0, 1, 1], [], []>} : vector<32x32xbf16>, vector<32x251xbf16>, vector<32x251xf32> -> vector<32x251xf32>
    %283 = arith.addf %279, %282 : vector<32x251xf32>
    %c3_159 = arith.constant 3 : index
    %c0_160 = arith.constant 0 : index
    %c0_161 = arith.constant 0 : index
    %284 = vector.load %arg13[%c3_159, %c0_160, %c0_161] : memref<5x32x252xbf16, #tpu.memory_space<vmem>>, vector<1x32x252xbf16>
    %285 = vector.shape_cast %284 : vector<1x32x252xbf16> to vector<32x252xbf16>
    %c3_162 = arith.constant 3 : index
    %c0_163 = arith.constant 0 : index
    %c0_164 = arith.constant 0 : index
    %286 = vector.load %arg14[%c3_162, %c0_163, %c0_164] : memref<5x32x252xbf16, #tpu.memory_space<vmem>>, vector<1x32x252xbf16>
    %287 = vector.shape_cast %286 : vector<1x32x252xbf16> to vector<32x252xbf16>
    %288 = vector.extract_strided_slice %285 {offsets = [0, 0], sizes = [32, 251], strides = [1, 1]} : vector<32x252xbf16> to vector<32x251xbf16>
    %289 = vector.extract_strided_slice %287 {offsets = [0, 0], sizes = [32, 251], strides = [1, 1]} : vector<32x252xbf16> to vector<32x251xbf16>
    %290 = vector.extract_strided_slice %285 {offsets = [0, 1], sizes = [32, 251], strides = [1, 1]} : vector<32x252xbf16> to vector<32x251xbf16>
    %291 = vector.extract_strided_slice %287 {offsets = [0, 1], sizes = [32, 251], strides = [1, 1]} : vector<32x252xbf16> to vector<32x251xbf16>
    %c12_165 = arith.constant 12 : index
    %c0_166 = arith.constant 0 : index
    %c0_167 = arith.constant 0 : index
    %292 = vector.load %arg6[%c12_165, %c0_166, %c0_167] : memref<16x32x32xbf16, #tpu.memory_space<vmem>>, vector<1x32x32xbf16>
    %293 = vector.shape_cast %292 : vector<1x32x32xbf16> to vector<32x32xbf16>
    %cst_168 = arith.constant dense<0.000000e+00> : vector<32x251xf32>
    %294 = tpu.matmul %293, %288, %cst_168 {dimension_numbers = #tpu.dot_dimension_numbers<[1], [0], [0], [1], [0, 0, 1, 1], [], []>} : vector<32x32xbf16>, vector<32x251xbf16>, vector<32x251xf32> -> vector<32x251xf32>
    %295 = arith.addf %283, %294 : vector<32x251xf32>
    %c13_169 = arith.constant 13 : index
    %c0_170 = arith.constant 0 : index
    %c0_171 = arith.constant 0 : index
    %296 = vector.load %arg6[%c13_169, %c0_170, %c0_171] : memref<16x32x32xbf16, #tpu.memory_space<vmem>>, vector<1x32x32xbf16>
    %297 = vector.shape_cast %296 : vector<1x32x32xbf16> to vector<32x32xbf16>
    %cst_172 = arith.constant dense<0.000000e+00> : vector<32x251xf32>
    %298 = tpu.matmul %297, %289, %cst_172 {dimension_numbers = #tpu.dot_dimension_numbers<[1], [0], [0], [1], [0, 0, 1, 1], [], []>} : vector<32x32xbf16>, vector<32x251xbf16>, vector<32x251xf32> -> vector<32x251xf32>
    %299 = arith.addf %295, %298 : vector<32x251xf32>
    %c14_173 = arith.constant 14 : index
    %c0_174 = arith.constant 0 : index
    %c0_175 = arith.constant 0 : index
    %300 = vector.load %arg6[%c14_173, %c0_174, %c0_175] : memref<16x32x32xbf16, #tpu.memory_space<vmem>>, vector<1x32x32xbf16>
    %301 = vector.shape_cast %300 : vector<1x32x32xbf16> to vector<32x32xbf16>
    %cst_176 = arith.constant dense<0.000000e+00> : vector<32x251xf32>
    %302 = tpu.matmul %301, %290, %cst_176 {dimension_numbers = #tpu.dot_dimension_numbers<[1], [0], [0], [1], [0, 0, 1, 1], [], []>} : vector<32x32xbf16>, vector<32x251xbf16>, vector<32x251xf32> -> vector<32x251xf32>
    %303 = arith.addf %299, %302 : vector<32x251xf32>
    %c15_177 = arith.constant 15 : index
    %c0_178 = arith.constant 0 : index
    %c0_179 = arith.constant 0 : index
    %304 = vector.load %arg6[%c15_177, %c0_178, %c0_179] : memref<16x32x32xbf16, #tpu.memory_space<vmem>>, vector<1x32x32xbf16>
    %305 = vector.shape_cast %304 : vector<1x32x32xbf16> to vector<32x32xbf16>
    %cst_180 = arith.constant dense<0.000000e+00> : vector<32x251xf32>
    %306 = tpu.matmul %305, %291, %cst_180 {dimension_numbers = #tpu.dot_dimension_numbers<[1], [0], [0], [1], [0, 0, 1, 1], [], []>} : vector<32x32xbf16>, vector<32x251xbf16>, vector<32x251xf32> -> vector<32x251xf32>
    %307 = arith.addf %303, %306 : vector<32x251xf32>
    %308 = vector.broadcast %157 : vector<32x1xf32> to vector<32x251xf32>
    %309 = arith.addf %307, %308 : vector<32x251xf32>
    %cst_181 = arith.constant 0.000000e+00 : f32
    %310 = vector.broadcast %cst_181 : f32 to vector<32x251xf32>
    %311 = arith.maximumf %309, %310 : vector<32x251xf32>
    %312 = arith.maximumf %210, %311 : vector<32x251xf32>
    %cst_182 = arith.constant 0.000000e+00 : f32
    %313 = vector.broadcast %cst_182 : f32 to vector<32x251xf32>
    %c2_183 = arith.constant 2 : index
    %c0_184 = arith.constant 0 : index
    %c0_185 = arith.constant 0 : index
    %314 = vector.load %arg13[%c2_183, %c0_184, %c0_185] : memref<5x32x252xbf16, #tpu.memory_space<vmem>>, vector<1x32x252xbf16>
    %315 = vector.shape_cast %314 : vector<1x32x252xbf16> to vector<32x252xbf16>
    %c2_186 = arith.constant 2 : index
    %c0_187 = arith.constant 0 : index
    %c0_188 = arith.constant 0 : index
    %316 = vector.load %arg14[%c2_186, %c0_187, %c0_188] : memref<5x32x252xbf16, #tpu.memory_space<vmem>>, vector<1x32x252xbf16>
    %317 = vector.shape_cast %316 : vector<1x32x252xbf16> to vector<32x252xbf16>
    %318 = vector.extract_strided_slice %315 {offsets = [0, 0], sizes = [32, 251], strides = [1, 1]} : vector<32x252xbf16> to vector<32x251xbf16>
    %319 = vector.extract_strided_slice %317 {offsets = [0, 0], sizes = [32, 251], strides = [1, 1]} : vector<32x252xbf16> to vector<32x251xbf16>
    %320 = vector.extract_strided_slice %315 {offsets = [0, 1], sizes = [32, 251], strides = [1, 1]} : vector<32x252xbf16> to vector<32x251xbf16>
    %321 = vector.extract_strided_slice %317 {offsets = [0, 1], sizes = [32, 251], strides = [1, 1]} : vector<32x252xbf16> to vector<32x251xbf16>
    %c0_189 = arith.constant 0 : index
    %c0_190 = arith.constant 0 : index
    %c0_191 = arith.constant 0 : index
    %322 = vector.load %arg6[%c0_189, %c0_190, %c0_191] : memref<16x32x32xbf16, #tpu.memory_space<vmem>>, vector<1x32x32xbf16>
    %323 = vector.shape_cast %322 : vector<1x32x32xbf16> to vector<32x32xbf16>
    %cst_192 = arith.constant dense<0.000000e+00> : vector<32x251xf32>
    %324 = tpu.matmul %323, %318, %cst_192 {dimension_numbers = #tpu.dot_dimension_numbers<[1], [0], [0], [1], [0, 0, 1, 1], [], []>} : vector<32x32xbf16>, vector<32x251xbf16>, vector<32x251xf32> -> vector<32x251xf32>
    %325 = arith.addf %313, %324 : vector<32x251xf32>
    %c1_193 = arith.constant 1 : index
    %c0_194 = arith.constant 0 : index
    %c0_195 = arith.constant 0 : index
    %326 = vector.load %arg6[%c1_193, %c0_194, %c0_195] : memref<16x32x32xbf16, #tpu.memory_space<vmem>>, vector<1x32x32xbf16>
    %327 = vector.shape_cast %326 : vector<1x32x32xbf16> to vector<32x32xbf16>
    %cst_196 = arith.constant dense<0.000000e+00> : vector<32x251xf32>
    %328 = tpu.matmul %327, %319, %cst_196 {dimension_numbers = #tpu.dot_dimension_numbers<[1], [0], [0], [1], [0, 0, 1, 1], [], []>} : vector<32x32xbf16>, vector<32x251xbf16>, vector<32x251xf32> -> vector<32x251xf32>
    %329 = arith.addf %325, %328 : vector<32x251xf32>
    %c2_197 = arith.constant 2 : index
    %c0_198 = arith.constant 0 : index
    %c0_199 = arith.constant 0 : index
    %330 = vector.load %arg6[%c2_197, %c0_198, %c0_199] : memref<16x32x32xbf16, #tpu.memory_space<vmem>>, vector<1x32x32xbf16>
    %331 = vector.shape_cast %330 : vector<1x32x32xbf16> to vector<32x32xbf16>
    %cst_200 = arith.constant dense<0.000000e+00> : vector<32x251xf32>
    %332 = tpu.matmul %331, %320, %cst_200 {dimension_numbers = #tpu.dot_dimension_numbers<[1], [0], [0], [1], [0, 0, 1, 1], [], []>} : vector<32x32xbf16>, vector<32x251xbf16>, vector<32x251xf32> -> vector<32x251xf32>
    %333 = arith.addf %329, %332 : vector<32x251xf32>
    %c3_201 = arith.constant 3 : index
    %c0_202 = arith.constant 0 : index
    %c0_203 = arith.constant 0 : index
    %334 = vector.load %arg6[%c3_201, %c0_202, %c0_203] : memref<16x32x32xbf16, #tpu.memory_space<vmem>>, vector<1x32x32xbf16>
    %335 = vector.shape_cast %334 : vector<1x32x32xbf16> to vector<32x32xbf16>
    %cst_204 = arith.constant dense<0.000000e+00> : vector<32x251xf32>
    %336 = tpu.matmul %335, %321, %cst_204 {dimension_numbers = #tpu.dot_dimension_numbers<[1], [0], [0], [1], [0, 0, 1, 1], [], []>} : vector<32x32xbf16>, vector<32x251xbf16>, vector<32x251xf32> -> vector<32x251xf32>
    %337 = arith.addf %333, %336 : vector<32x251xf32>
    %c3_205 = arith.constant 3 : index
    %c0_206 = arith.constant 0 : index
    %c0_207 = arith.constant 0 : index
    %338 = vector.load %arg13[%c3_205, %c0_206, %c0_207] : memref<5x32x252xbf16, #tpu.memory_space<vmem>>, vector<1x32x252xbf16>
    %339 = vector.shape_cast %338 : vector<1x32x252xbf16> to vector<32x252xbf16>
    %c3_208 = arith.constant 3 : index
    %c0_209 = arith.constant 0 : index
    %c0_210 = arith.constant 0 : index
    %340 = vector.load %arg14[%c3_208, %c0_209, %c0_210] : memref<5x32x252xbf16, #tpu.memory_space<vmem>>, vector<1x32x252xbf16>
    %341 = vector.shape_cast %340 : vector<1x32x252xbf16> to vector<32x252xbf16>
    %342 = vector.extract_strided_slice %339 {offsets = [0, 0], sizes = [32, 251], strides = [1, 1]} : vector<32x252xbf16> to vector<32x251xbf16>
    %343 = vector.extract_strided_slice %341 {offsets = [0, 0], sizes = [32, 251], strides = [1, 1]} : vector<32x252xbf16> to vector<32x251xbf16>
    %344 = vector.extract_strided_slice %339 {offsets = [0, 1], sizes = [32, 251], strides = [1, 1]} : vector<32x252xbf16> to vector<32x251xbf16>
    %345 = vector.extract_strided_slice %341 {offsets = [0, 1], sizes = [32, 251], strides = [1, 1]} : vector<32x252xbf16> to vector<32x251xbf16>
    %c4_211 = arith.constant 4 : index
    %c0_212 = arith.constant 0 : index
    %c0_213 = arith.constant 0 : index
    %346 = vector.load %arg6[%c4_211, %c0_212, %c0_213] : memref<16x32x32xbf16, #tpu.memory_space<vmem>>, vector<1x32x32xbf16>
    %347 = vector.shape_cast %346 : vector<1x32x32xbf16> to vector<32x32xbf16>
    %cst_214 = arith.constant dense<0.000000e+00> : vector<32x251xf32>
    %348 = tpu.matmul %347, %342, %cst_214 {dimension_numbers = #tpu.dot_dimension_numbers<[1], [0], [0], [1], [0, 0, 1, 1], [], []>} : vector<32x32xbf16>, vector<32x251xbf16>, vector<32x251xf32> -> vector<32x251xf32>
    %349 = arith.addf %337, %348 : vector<32x251xf32>
    %c5_215 = arith.constant 5 : index
    %c0_216 = arith.constant 0 : index
    %c0_217 = arith.constant 0 : index
    %350 = vector.load %arg6[%c5_215, %c0_216, %c0_217] : memref<16x32x32xbf16, #tpu.memory_space<vmem>>, vector<1x32x32xbf16>
    %351 = vector.shape_cast %350 : vector<1x32x32xbf16> to vector<32x32xbf16>
    %cst_218 = arith.constant dense<0.000000e+00> : vector<32x251xf32>
    %352 = tpu.matmul %351, %343, %cst_218 {dimension_numbers = #tpu.dot_dimension_numbers<[1], [0], [0], [1], [0, 0, 1, 1], [], []>} : vector<32x32xbf16>, vector<32x251xbf16>, vector<32x251xf32> -> vector<32x251xf32>
    %353 = arith.addf %349, %352 : vector<32x251xf32>
    %c6_219 = arith.constant 6 : index
    %c0_220 = arith.constant 0 : index
    %c0_221 = arith.constant 0 : index
    %354 = vector.load %arg6[%c6_219, %c0_220, %c0_221] : memref<16x32x32xbf16, #tpu.memory_space<vmem>>, vector<1x32x32xbf16>
    %355 = vector.shape_cast %354 : vector<1x32x32xbf16> to vector<32x32xbf16>
    %cst_222 = arith.constant dense<0.000000e+00> : vector<32x251xf32>
    %356 = tpu.matmul %355, %344, %cst_222 {dimension_numbers = #tpu.dot_dimension_numbers<[1], [0], [0], [1], [0, 0, 1, 1], [], []>} : vector<32x32xbf16>, vector<32x251xbf16>, vector<32x251xf32> -> vector<32x251xf32>
    %357 = arith.addf %353, %356 : vector<32x251xf32>
    %c7_223 = arith.constant 7 : index
    %c0_224 = arith.constant 0 : index
    %c0_225 = arith.constant 0 : index
    %358 = vector.load %arg6[%c7_223, %c0_224, %c0_225] : memref<16x32x32xbf16, #tpu.memory_space<vmem>>, vector<1x32x32xbf16>
    %359 = vector.shape_cast %358 : vector<1x32x32xbf16> to vector<32x32xbf16>
    %cst_226 = arith.constant dense<0.000000e+00> : vector<32x251xf32>
    %360 = tpu.matmul %359, %345, %cst_226 {dimension_numbers = #tpu.dot_dimension_numbers<[1], [0], [0], [1], [0, 0, 1, 1], [], []>} : vector<32x32xbf16>, vector<32x251xbf16>, vector<32x251xf32> -> vector<32x251xf32>
    %361 = arith.addf %357, %360 : vector<32x251xf32>
    %c4_227 = arith.constant 4 : index
    %c0_228 = arith.constant 0 : index
    %c0_229 = arith.constant 0 : index
    %362 = vector.load %arg13[%c4_227, %c0_228, %c0_229] : memref<5x32x252xbf16, #tpu.memory_space<vmem>>, vector<1x32x252xbf16>
    %363 = vector.shape_cast %362 : vector<1x32x252xbf16> to vector<32x252xbf16>
    %c4_230 = arith.constant 4 : index
    %c0_231 = arith.constant 0 : index
    %c0_232 = arith.constant 0 : index
    %364 = vector.load %arg14[%c4_230, %c0_231, %c0_232] : memref<5x32x252xbf16, #tpu.memory_space<vmem>>, vector<1x32x252xbf16>
    %365 = vector.shape_cast %364 : vector<1x32x252xbf16> to vector<32x252xbf16>
    %366 = vector.extract_strided_slice %363 {offsets = [0, 0], sizes = [32, 251], strides = [1, 1]} : vector<32x252xbf16> to vector<32x251xbf16>
    %367 = vector.extract_strided_slice %365 {offsets = [0, 0], sizes = [32, 251], strides = [1, 1]} : vector<32x252xbf16> to vector<32x251xbf16>
    %368 = vector.extract_strided_slice %363 {offsets = [0, 1], sizes = [32, 251], strides = [1, 1]} : vector<32x252xbf16> to vector<32x251xbf16>
    %369 = vector.extract_strided_slice %365 {offsets = [0, 1], sizes = [32, 251], strides = [1, 1]} : vector<32x252xbf16> to vector<32x251xbf16>
    %c8_233 = arith.constant 8 : index
    %c0_234 = arith.constant 0 : index
    %c0_235 = arith.constant 0 : index
    %370 = vector.load %arg6[%c8_233, %c0_234, %c0_235] : memref<16x32x32xbf16, #tpu.memory_space<vmem>>, vector<1x32x32xbf16>
    %371 = vector.shape_cast %370 : vector<1x32x32xbf16> to vector<32x32xbf16>
    %cst_236 = arith.constant dense<0.000000e+00> : vector<32x251xf32>
    %372 = tpu.matmul %371, %366, %cst_236 {dimension_numbers = #tpu.dot_dimension_numbers<[1], [0], [0], [1], [0, 0, 1, 1], [], []>} : vector<32x32xbf16>, vector<32x251xbf16>, vector<32x251xf32> -> vector<32x251xf32>
    %373 = arith.addf %361, %372 : vector<32x251xf32>
    %c9_237 = arith.constant 9 : index
    %c0_238 = arith.constant 0 : index
    %c0_239 = arith.constant 0 : index
    %374 = vector.load %arg6[%c9_237, %c0_238, %c0_239] : memref<16x32x32xbf16, #tpu.memory_space<vmem>>, vector<1x32x32xbf16>
    %375 = vector.shape_cast %374 : vector<1x32x32xbf16> to vector<32x32xbf16>
    %cst_240 = arith.constant dense<0.000000e+00> : vector<32x251xf32>
    %376 = tpu.matmul %375, %367, %cst_240 {dimension_numbers = #tpu.dot_dimension_numbers<[1], [0], [0], [1], [0, 0, 1, 1], [], []>} : vector<32x32xbf16>, vector<32x251xbf16>, vector<32x251xf32> -> vector<32x251xf32>
    %377 = arith.addf %373, %376 : vector<32x251xf32>
    %c10_241 = arith.constant 10 : index
    %c0_242 = arith.constant 0 : index
    %c0_243 = arith.constant 0 : index
    %378 = vector.load %arg6[%c10_241, %c0_242, %c0_243] : memref<16x32x32xbf16, #tpu.memory_space<vmem>>, vector<1x32x32xbf16>
    %379 = vector.shape_cast %378 : vector<1x32x32xbf16> to vector<32x32xbf16>
    %cst_244 = arith.constant dense<0.000000e+00> : vector<32x251xf32>
    %380 = tpu.matmul %379, %368, %cst_244 {dimension_numbers = #tpu.dot_dimension_numbers<[1], [0], [0], [1], [0, 0, 1, 1], [], []>} : vector<32x32xbf16>, vector<32x251xbf16>, vector<32x251xf32> -> vector<32x251xf32>
    %381 = arith.addf %377, %380 : vector<32x251xf32>
    %c11_245 = arith.constant 11 : index
    %c0_246 = arith.constant 0 : index
    %c0_247 = arith.constant 0 : index
    %382 = vector.load %arg6[%c11_245, %c0_246, %c0_247] : memref<16x32x32xbf16, #tpu.memory_space<vmem>>, vector<1x32x32xbf16>
    %383 = vector.shape_cast %382 : vector<1x32x32xbf16> to vector<32x32xbf16>
    %cst_248 = arith.constant dense<0.000000e+00> : vector<32x251xf32>
    %384 = tpu.matmul %383, %369, %cst_248 {dimension_numbers = #tpu.dot_dimension_numbers<[1], [0], [0], [1], [0, 0, 1, 1], [], []>} : vector<32x32xbf16>, vector<32x251xbf16>, vector<32x251xf32> -> vector<32x251xf32>
    %385 = arith.addf %381, %384 : vector<32x251xf32>
    %386 = vector.broadcast %157 : vector<32x1xf32> to vector<32x251xf32>
    %387 = arith.addf %385, %386 : vector<32x251xf32>
    %cst_249 = arith.constant 0.000000e+00 : f32
    %388 = vector.broadcast %cst_249 : f32 to vector<32x251xf32>
    %389 = arith.maximumf %387, %388 : vector<32x251xf32>
    %390 = arith.maximumf %312, %389 : vector<32x251xf32>
    %cst_250 = arith.constant dense<0xFF800000> : vector<32xf32>
    %391 = vector.multi_reduction <maximumf>, %390, %cst_250 [1] : vector<32x251xf32> to vector<32xf32>
    %392 = vector.shape_cast %391 : vector<32xf32> to vector<32x1xf32>
    %c0_251 = arith.constant 0 : index
    %c0_252 = arith.constant 0 : index
    %c0_253 = arith.constant 0 : index
    %393 = vector.load %arg3[%c0_251, %c0_252, %c0_253] : memref<1x2x1xf32, #tpu.memory_space<vmem>>, vector<1x2x1xf32>
    %394 = vector.shape_cast %393 : vector<1x2x1xf32> to vector<2x1xf32>
    %395 = tpu.concatenate %392, %394 in 0 : vector<32x1xf32>, vector<2x1xf32> -> vector<34x1xf32>
    %c0_254 = arith.constant 0 : index
    %c0_255 = arith.constant 0 : index
    %396 = vector.load %arg8[%c0_254, %c0_255] : memref<32x34xf32, #tpu.memory_space<vmem>>, vector<32x34xf32>
    %cst_256 = arith.constant dense<0.000000e+00> : vector<32x1xf32>
    %397 = tpu.matmul %396, %395, %cst_256 {dimension_numbers = #tpu.dot_dimension_numbers<[1], [0], [0], [1], [0, 0, 1, 1], [], []>} : vector<32x34xf32>, vector<34x1xf32>, vector<32x1xf32> -> vector<32x1xf32>
    %c0_257 = arith.constant 0 : index
    %c0_258 = arith.constant 0 : index
    %398 = vector.load %arg9[%c0_257, %c0_258] : memref<32x1xf32, #tpu.memory_space<vmem>>, vector<32x1xf32>
    %399 = arith.addf %397, %398 : vector<32x1xf32>
    %cst_259 = arith.constant 0.000000e+00 : f32
    %400 = vector.broadcast %cst_259 : f32 to vector<32x1xf32>
    %401 = arith.maximumf %399, %400 : vector<32x1xf32>
    %c0_260 = arith.constant 0 : index
    %c0_261 = arith.constant 0 : index
    %402 = vector.load %arg10[%c0_260, %c0_261] : memref<4x32xf32, #tpu.memory_space<vmem>>, vector<4x32xf32>
    %cst_262 = arith.constant dense<0.000000e+00> : vector<4x1xf32>
    %403 = tpu.matmul %402, %401, %cst_262 {dimension_numbers = #tpu.dot_dimension_numbers<[1], [0], [0], [1], [0, 0, 1, 1], [], []>} : vector<4x32xf32>, vector<32x1xf32>, vector<4x1xf32> -> vector<4x1xf32>
    %c0_263 = arith.constant 0 : index
    %c0_264 = arith.constant 0 : index
    %404 = vector.load %arg11[%c0_263, %c0_264] : memref<4x1xf32, #tpu.memory_space<vmem>>, vector<4x1xf32>
    %405 = arith.addf %403, %404 : vector<4x1xf32>
    %c0_265 = arith.constant 0 : index
    %c0_266 = arith.constant 0 : index
    %c0_267 = arith.constant 0 : index
    %406 = vector.load %arg12[%c0_265, %c0_266, %c0_267] : memref<1x4x1xf32, #tpu.memory_space<vmem>>, vector<1x4x1xf32>
    %407 = vector.shape_cast %406 : vector<1x4x1xf32> to vector<4x1xf32>
    %408 = vector.shape_cast %405 : vector<4x1xf32> to vector<1x4x1xf32>
    tpu.vector_store %arg12[%c0_265, %c0_266, %c0_267], %408 {strides = array<i32>} : memref<1x4x1xf32, #tpu.memory_space<vmem>>, vector<1x4x1xf32>,
    return
  }
  func.func @transform_0(%arg0: i32) -> (i32, i32, i32) {
    %c0_i32 = arith.constant 0 : i32
    %c0_i32_0 = arith.constant 0 : i32
    %c0_i32_1 = arith.constant 0 : i32
    return %arg0, %c0_i32, %c0_i32_0 : i32, i32, i32
  }
  func.func @transform_1(%arg0: i32) -> (i32, i32, i32) {
    %c0_i32 = arith.constant 0 : i32
    %c0_i32_0 = arith.constant 0 : i32
    %c0_i32_1 = arith.constant 0 : i32
    return %arg0, %c0_i32, %c0_i32_0 : i32, i32, i32
  }
  func.func @transform_2(%arg0: i32) -> (i32, i32, i32) {
    %c0_i32 = arith.constant 0 : i32
    %c0_i32_0 = arith.constant 0 : i32
    %c0_i32_1 = arith.constant 0 : i32
    return %arg0, %c0_i32, %c0_i32_0 : i32, i32, i32
  }
  func.func @transform_3(%arg0: i32) -> (i32, i32) {
    %c0_i32 = arith.constant 0 : i32
    %c0_i32_0 = arith.constant 0 : i32
    %c0_i32_1 = arith.constant 0 : i32
    return %c0_i32, %c0_i32_0 : i32, i32
  }
  func.func @transform_4(%arg0: i32) -> (i32, i32) {
    %c0_i32 = arith.constant 0 : i32
    %c0_i32_0 = arith.constant 0 : i32
    %c0_i32_1 = arith.constant 0 : i32
    return %c0_i32, %c0_i32_0 : i32, i32
  }
  func.func @transform_5(%arg0: i32) -> (i32, i32, i32) {
    %c0_i32 = arith.constant 0 : i32
    %c0_i32_0 = arith.constant 0 : i32
    %c0_i32_1 = arith.constant 0 : i32
    %c0_i32_2 = arith.constant 0 : i32
    return %c0_i32, %c0_i32_0, %c0_i32_1 : i32, i32, i32
  }
  func.func @transform_6(%arg0: i32) -> (i32, i32) {
    %c0_i32 = arith.constant 0 : i32
    %c0_i32_0 = arith.constant 0 : i32
    %c0_i32_1 = arith.constant 0 : i32
    return %c0_i32, %c0_i32_0 : i32, i32
  }
  func.func @transform_7(%arg0: i32) -> (i32, i32) {
    %c0_i32 = arith.constant 0 : i32
    %c0_i32_0 = arith.constant 0 : i32
    %c0_i32_1 = arith.constant 0 : i32
    return %c0_i32, %c0_i32_0 : i32, i32
  }
  func.func @transform_8(%arg0: i32) -> (i32, i32) {
    %c0_i32 = arith.constant 0 : i32
    %c0_i32_0 = arith.constant 0 : i32
    %c0_i32_1 = arith.constant 0 : i32
    return %c0_i32, %c0_i32_0 : i32, i32
  }
  func.func @transform_9(%arg0: i32) -> (i32, i32) {
    %c0_i32 = arith.constant 0 : i32
    %c0_i32_0 = arith.constant 0 : i32
    %c0_i32_1 = arith.constant 0 : i32
    return %c0_i32, %c0_i32_0 : i32, i32
  }
  func.func @transform_10(%arg0: i32) -> (i32, i32) {
    %c0_i32 = arith.constant 0 : i32
    %c0_i32_0 = arith.constant 0 : i32
    %c0_i32_1 = arith.constant 0 : i32
    return %c0_i32, %c0_i32_0 : i32, i32
  }
  func.func @transform_11(%arg0: i32) -> (i32, i32, i32) {
    %c0_i32 = arith.constant 0 : i32
    %c0_i32_0 = arith.constant 0 : i32
    %c0_i32_1 = arith.constant 0 : i32
    return %arg0, %c0_i32, %c0_i32_0 : i32, i32, i32
  }
}

</mosaic_0001>

<bundles_post_ra>
// kernel: noisy_dqn_forward.11
= control target key start
LH: loop header
LB: loop body
LE: loop exit
PB: predicated region body
PF: predicated region fallthrough
CT: control target
= control target key end

     0   :  { %s6474_s17 = smov 0   ;;  %s8125_s0 = inlined_call_operand.vmem [shape: f32[2,8,252], index: 0, kind: input, shape index: {}]   ;;  %s8126_s1 = inlined_call_operand.vmem [shape: f32[2,8,252], index: 1, kind: input, shape index: {}]   ;;  %s8127_s2 = inlined_call_operand.vmem [shape: f32[2,2,1], index: 2, kind: input, shape index: {}]   ;;  %s8128_s3 = inlined_call_operand.vmem [shape: f32[32,16], index: 3, kind: input, shape index: {}]   ;;  %s8129_s4 = inlined_call_operand.vmem [shape: f32[32,1], index: 4, kind: input, shape index: {}]   ;;  %s8130_s5 = inlined_call_operand.vmem [shape: bf16[16,32,32], index: 5, kind: input, shape index: {}]   ;;  %s8131_s6 = inlined_call_operand.vmem [shape: f32[32,1], index: 6, kind: input, shape index: {}]   ;;  %s8132_s7 = inlined_call_operand.vmem [shape: f32[32,34], index: 7, kind: input, shape index: {}]   ;;  %s8133_s8 = inlined_call_operand.vmem [shape: f32[32,1], index: 8, kind: input, shape index: {}]   ;;  %s8134_s9 = inlined_call_operand.vmem [shape: f32[4,32], index: 9, kind: input, shape index: {}]   ;;  %s8135_s10 = inlined_call_operand.vmem [shape: f32[4,1], index: 10, kind: input, shape index: {}]   ;;  %s8136_s11 = inlined_call_operand.vmem [shape: f32[2,4,1], index: 11, kind: output, shape index: {}]  }
   0x1 LB: > { %s5271_s18 = sadd.s32 4294967295, %s6405_s17   ;;  %p5275_p0 = scmp.ge.s32.totalorder %s6405_s17, 1  ;;  %s6405_s17 = sphi %s6474_s17, %s21_s17  }
   0x2   : > { %p356_p1 = scmp.lt.s32.totalorder %s6405_s17, 3 }
   0x4   : > { %p357_p2 = pnand %p5275_p0, %p356_p1 }
   0x5   : > { %p404_p3 = scmp.lt.s32.totalorder (!%p357_p2), %s5271_s18, 1  ;;  %v6407_v0 = vmov (!%p357_p2), 0   ;;  %s6408_s26 = smov (!%p357_p2), 127   ;;  %vm458_vm0 = vcmask (!%p357_p2), 1043456   ;;  %v6410_v32 = vmov (!%p357_p2), 0.0   ;;  %v432_v56 = vld [vmem:[%s8129_s4 + $0x8] sm:$0xff] (!%p357_p2) }
   0x6   : > { %360 = sbr.rel (%p357_p2) target bundleno = 1863 (0x747), region = 64  ;;  %5973 = vset.pattern.permute.xlu1 (!%p357_p2), %v6407_v0  ;;  %5972 = vset.pattern.permute.xlu0 (!%p357_p2), %v6407_v0  ;;  %s6409_s27 = smov (!%p357_p2), 126   ;;  %v433_v57 = vld [vmem:[%s8129_s4 + $0x10] sm:$0xff] (!%p357_p2)  ;;  %v431_v58 = vld [vmem:[%s8129_s4] sm:$0xff] (!%p357_p2)  ;;  %v434_v59 = vld [vmem:[%s8129_s4 + $0x18] sm:$0xff] (!%p357_p2)  ;;  %vm447_vm1 = vcmask (!%p357_p2), 1039360  }
   0x7   : > { %588 = vmatprep.mubr.f32.mxu1 (!%p357_p2), %v6410_v32  ;;  %942 = vmatprep.mubr.f32.mxu0 (!%p357_p2), %v6410_v32  ;;  %vm483_vm2 = vcmask (!%p357_p2), 1031168   ;;  %vm511_vm3 = vcmask (!%p357_p2), 130048   ;;  %s6411_s28 = smov (!%p357_p2), 1   ;;  %vm742_vm4 = vcmask (!%p357_p2), 7168   ;;  %vm764_vm5 = vcmask (!%p357_p2), 1014784  }
   0x8   : > { %vm808_vm6 = vcmask (!%p357_p2), 1006592   ;;  %vm6219_vm7 = vmneg (!%p357_p2), %vm742_vm4  ;;  %vm2225_vm9 = vcmask (!%p357_p2), 261120   ;;  %vm5011_vm10 = vcmask (!%p357_p2), 277504   ;;  %vm5024_vm11 = vcmask (!%p357_p2), 1041408  }
   0x9   : > { %vm7131_vm8 = vmpackc.low (!%p357_p2), %vm6219_vm7, %vm6219_vm7  ;;  %vm6413_vm12 = vmmov (!%p357_p2), 0   ;;  %vm5192_vm13 = vcmask (!%p357_p2), 3072  }
   0xd   : > { %s8140_s18 = smov (!%p404_p3, %s5271_s18), 1 }
   0xe   : > { %s5494_s19 = sshll.u32 %s8140_s18, 4  ;;  %s5280_s23 = sshll.u32 %s8140_s18, 1 }
   0xf   : > { %s408_s22 = scalar_lea.vmem %s8125_s0, %s5494_s19  ;;  %s413_s25 = scalar_lea.vmem %s8126_s1, %s5494_s19 }
  0x10   : > { %v6493_v1 = vld [vmem:[%s408_s22] sm:$0xff]  ;;  %v6495_v2 = vld [vmem:[%s408_s22 + $0x8] sm:$0xff] }
  0x11   : > { %v6497_v3 = vld [vmem:[%s413_s25] sm:$0xff]  ;;  %v6499_v4 = vld [vmem:[%s413_s25 + $0x8] sm:$0xff]  ;;  %v6503_v5 = vpack.i.bf16 %v6495_v2, %v6493_v1  ;;  %v463_v6 = vrot.slane %v6493_v1, 4  ;;  %v464_v7 = vrot.slane %v6495_v2, 4  ;;  %v821_v13 = vrot.slane %v6493_v1, 1 }
  0x12   : > { %v6508_v8 = vrot.slane %v6497_v3, 4  ;;  %v6511_v9 = vrot.slane %v6499_v4, 4  ;;  %v5887_v12 = vpack.i.bf16 %v6499_v4, %v6497_v3  ;;  %v822_v14 = vrot.slane %v6495_v2, 1 }
  0x13   : > { %5873 = vrot.lane.b32.xlu0 %v6503_v5, %s6408_s26  ;;  %v5882_v10 = vpack.i.bf16 %v464_v7, %v463_v6  ;;  %v825_v15 = vrot.slane %v6497_v3, 5  ;;  %v826_v16 = vrot.slane %v6499_v4, 5  ;;  %v851_v18 = vrot.slane %v6493_v1, 5 }
  0x14   : > { %v5877_v11 = vpack.i.bf16 %v6511_v9, %v6508_v8  ;;  %v5897_v17 = vpack.i.bf16 %v822_v14, %v821_v13  ;;  %v852_v19 = vrot.slane %v6495_v2, 5  ;;  %v847_v20 = vrot.slane %v6497_v3, 1 }
  0x15   : > { %5883 = vrot.lane.b32.xlu1 %v5882_v10, %s6408_s26  ;;  %v848_v21 = vrot.slane %v6499_v4, 1  ;;  %v1174_v22 = vrot.slane %v6493_v1, 2  ;;  %v5902_v23 = vpack.i.bf16 %v826_v16, %v825_v15  ;;  %v1175_v24 = vrot.slane %v6495_v2, 2 }
  0x16   : > { %v1178_v25 = vrot.slane %v6497_v3, 6  ;;  %v1179_v26 = vrot.slane %v6499_v4, 6  ;;  %v1200_v27 = vrot.slane %v6497_v3, 2  ;;  %v5907_v28 = vpack.i.bf16 %v852_v19, %v851_v18 }
  0x17   : > { %5878 = vrot.lane.b32.xlu0 %v5877_v11, %s6408_s26  ;;  %v1201_v29 = vrot.slane %v6499_v4, 2  ;;  %v1204_v30 = vrot.slane %v6493_v1, 6  ;;  %v1205_v31 = vrot.slane %v6495_v2, 6  ;;  %v6546_v33 = vsel %vm458_vm0, %v822_v14, %v826_v16 }
  0x18   : > { %v6549_v34 = vsel %vm458_vm0, %v821_v13, %v825_v15  ;;  %v5912_v35 = vpack.i.bf16 %v848_v21, %v847_v20  ;;  %v6558_v36 = vsel %vm458_vm0, %v1175_v24, %v1179_v26  ;;  %v6561_v37 = vsel %vm458_vm0, %v1174_v22, %v1178_v25 }
  0x19   : > { %5888 = vrot.lane.b32.xlu1 %v5887_v12, %s6408_s26  ;;  %v5922_v38 = vpack.i.bf16 %v1175_v24, %v1174_v22  ;;  %v5927_v39 = vpack.i.bf16 %v1179_v26, %v1178_v25  ;;  %v5932_v40 = vpack.i.bf16 %v1205_v31, %v1204_v30  ;;  %v5937_v41 = vpack.i.bf16 %v1201_v29, %v1200_v27 }
  0x1a   : > { %v1527_v42 = vrot.slane %v6493_v1, 3  ;;  %v1528_v43 = vrot.slane %v6495_v2, 3  ;;  %v1531_v44 = vrot.slane %v6497_v3, 7  ;;  %v1532_v45 = vrot.slane %v6499_v4, 7 }
  0x1b   : > { %5893 = vrot.lane.b32.xlu0 %v5882_v10, %s6409_s27  ;;  %v1557_v47 = vrot.slane %v6493_v1, 7  ;;  %v1558_v48 = vrot.slane %v6495_v2, 7  ;;  %v1553_v51 = vrot.slane %v6497_v3, 3  ;;  %v1554_v52 = vrot.slane %v6499_v4, 3 }
  0x1c   : > { %v5947_v46 = vpack.i.bf16 %v1528_v43, %v1527_v42  ;;  %v6581_v49 = vsel %vm458_vm0, %v1528_v43, %v1532_v45  ;;  %v5952_v50 = vpack.i.bf16 %v1532_v45, %v1531_v44  ;;  %v6587_v53 = vsel %vm458_vm0, %v1527_v42, %v1531_v44  ;;  %v6658_v45 = vld [vmem:[%s8128_s3] sm:$0xff] }
  0x1d   : > { %5898 = vrot.lane.b32.xlu1 %v5897_v17, %s6408_s26  ;;  %v5957_v54 = vpack.i.bf16 %v1558_v48, %v1557_v47  ;;  %v5962_v55 = vpack.i.bf16 %v1554_v52, %v1553_v51  ;;  %v460_v14 = vsel %vm458_vm0, %v6495_v2, %v6511_v9  ;;  %v459_v18 = vsel %vm458_vm0, %v6493_v1, %v6508_v8 }
  0x1f   : > { %5903 = vrot.lane.b32.xlu0 %v5902_v23, %s6408_s26 }
  0x21   : > { %5908 = vrot.lane.b32.xlu1 %v5907_v28, %s6408_s26 }
  0x23   : > { %5913 = vrot.lane.b32.xlu0 %v5912_v35, %s6408_s26 }
  0x25   : > { %5918 = vrot.lane.b32.xlu1 %v5907_v28, %s6409_s27 }
  0x27   : > { %5923 = vrot.lane.b32.xlu0 %v5922_v38, %s6408_s26 }
  0x29   : > { %5928 = vrot.lane.b32.xlu1 %v5927_v39, %s6408_s26 }
  0x2b   : > { %5933 = vrot.lane.b32.xlu0 %v5932_v40, %s6408_s26 }
  0x2d   : > { %5938 = vrot.lane.b32.xlu1 %v5937_v41, %s6408_s26 }
  0x2f   : > { %5943 = vrot.lane.b32.xlu0 %v5932_v40, %s6409_s27 }
  0x31   : > { %5948 = vrot.lane.b32.xlu1 %v5947_v46, %s6408_s26 }
  0x33   : > { %5953 = vrot.lane.b32.xlu0 %v5952_v50, %s6408_s26 }
  0x35   : > { %5958 = vrot.lane.b32.xlu1 %v5957_v54, %s6408_s26 }
  0x37   : > { %5963 = vrot.lane.b32.xlu0 %v5962_v55, %s6408_s26 }
  0x39   : > { %5968 = vrot.lane.b32.xlu1 %v5957_v54, %s6409_s27 }
  0x3b   : > { %493 = vperm.xlu0 %5972, %v431_v58  }
  0x3d   : > { %498 = vperm.xlu1 %5973, %v432_v56  }
  0x3f   : > { %508 = vperm.xlu0 %5972, %v434_v59   ;;  %v6673_v59 = vld [vmem:[%s8128_s3 + $0x8] sm:$0xff] }
  0x41   : > { %503 = vperm.xlu1 %5973, %v433_v57  }
  0x45   : > { %5975 = vrot.lane.b32.xlu1 %v6503_v5, %s6409_s27  ;;  %s417_s27 = scalar_lea.vmem %s8127_s2, %s5280_s23 }
  0x85   : > { %v5874_v60 = vpop.permute.xlu0 %5873 }
  0x86   : > { %v6612_v61 = vunpack.i.h.bf16 %v5874_v60  ;;  %v5875_v62 = vunpack.i.l.bf16 %v5874_v60 }
  0x87   : > { %v5884_v63 = vpop.permute.xlu1 %5883 }
  0x88   : > { %v6614_v10 = vunpack.i.h.bf16 %v5884_v63  ;;  %v5885_v11 = vunpack.i.l.bf16 %v5884_v63  ;;  %v6627_v17 = vsel %vm447_vm1, %v5875_v62, %v6612_v61 }
  0x89   : > { %v5879_v5 = vpop.permute.xlu0 %5878 }
  0x8a   : > { %v6616_v12 = vunpack.i.h.bf16 %v5879_v5  ;;  %v5880_v13 = vunpack.i.l.bf16 %v5879_v5  ;;  %v6623_v15 = vsel %vm447_vm1, %v5885_v11, %v6614_v10  ;;  %v488_v30 = vsel %vm458_vm0, %v6499_v4, %v6614_v10 }
  0x8b   : > { %v5889_v16 = vpop.permute.xlu1 %5888  ;;  %v487_v41 = vsel %vm458_vm0, %v6497_v3, %v6623_v15 }
  0x8c   : > { %v6632_v19 = vunpack.i.h.bf16 %v5889_v16  ;;  %v5890_v22 = vunpack.i.l.bf16 %v5889_v16  ;;  %v462_v23 = vsel %vm458_vm0, %v6612_v61, %v6616_v12  ;;  %v6639_v24 = vsel %vm447_vm1, %v5880_v13, %v6616_v12  ;;  %v6690_v16 = vld [vmem:[%s8128_s3 + $0x10] sm:$0xff] }
  0x8d   : > { %v5894_v25 = vpop.permute.xlu0 %5893  ;;  %v5537_v26 = vpack.c.bf16 %v462_v23, %v460_v14  ;;  %v461_v28 = vsel %vm458_vm0, %v6627_v17, %v6639_v24 }
  0x8e   : > { %v6649_v31 = vsel %vm447_vm1, %v5890_v22, %v6632_v19  ;;  %v5896_v35 = vunpack.i.h.bf16 %v5894_v25  ;;  %v5895_v38 = vunpack.i.l.bf16 %v5894_v25  ;;  %v5539_v39 = vpack.c.bf16 %v461_v28, %v459_v18 }
  0x8f   : > { %5538 = vmatprep.subr.bf16.mxu1 %v5537_v26  ;;  %v5899_v40 = vpop.permute.xlu1 %5898 }
  0x90   : > { %v484_v42 = vsel %vm483_vm2, %v5895_v38, %v5896_v35  ;;  %v5901_v43 = vunpack.i.h.bf16 %v5899_v40  ;;  %v5900_v44 = vunpack.i.l.bf16 %v5899_v40  ;;  %5540 = vmatpush1.bf16.msra.mxu1 %v5539_v39  ;;  %v490_v46 = vsel %vm458_vm0, %v6632_v19, %v5896_v35  ;;  %v6704_v38 = vld [vmem:[%s8128_s3 + $0x18] sm:$0xff] }
  0x91   : > { %v5904_v47 = vpop.permute.xlu0 %5903  ;;  %v5541_v48 = vpack.c.bf16 %v490_v46, %v488_v30  ;;  %v489_v50 = vsel %vm458_vm0, %v6649_v31, %v484_v42 }
  0x92   : > { %v5906_v54 = vunpack.i.h.bf16 %v5904_v47  ;;  %v5905_v55 = vunpack.i.l.bf16 %v5904_v47  ;;  %v833_v56 = vsel %vm447_vm1, %v5900_v44, %v5901_v43  ;;  %v5543_v57 = vpack.c.bf16 %v489_v50, %v487_v41 }
  0x93   : > { %v6665_v58 = vpop.permute.xlu1 %5908  ;;  %5282 = vmatmul.mubr.msk.f32.vlgmr.msra.gmra.mrb[0].mxu1 %vm511_vm3, %v6658_v45  ;;  %5542 = vmatprep.subr.bf16.mxu1 %v5541_v48 }
  0x94   : > { %594 = vmatprep.mubr.f32.mxu1 %v6410_v32  ;;  %v846_v60 = vsel %vm458_vm0, %v5901_v43, %v5906_v54  ;;  %v840_v62 = vsel %vm447_vm1, %v5905_v55, %v5906_v54  ;;  %5544 = vmatpush1.bf16.msra.mxu1 %v5543_v57  ;;  %v5910_v55 = vunpack.i.l.bf16 %v6665_v58 }
  0x95   : > { %v6677_v63 = vpop.permute.xlu0 %5913  ;;  %v5545_v11 = vpack.c.bf16 %v846_v60, %v6546_v33  ;;  %v845_v5 = vsel %vm458_vm0, %v833_v56, %v840_v62  ;;  %v5911_v33 = vunpack.i.h.bf16 %v6665_v58  ;;  %v1883_v62 = vsel %vm458_vm0, %v464_v7, %v6499_v4 }
  0x96   : > { %v5547_v13 = vpack.c.bf16 %v845_v5, %v6549_v34  ;;  %v5916_v34 = vunpack.i.h.bf16 %v6677_v63  ;;  %v5915_v57 = vunpack.i.l.bf16 %v6677_v63  ;;  %v1885_v58 = vsel %vm458_vm0, %v6614_v10, %v6632_v19 }
  0x97   : > { %v6682_v14 = vpop.permute.xlu1 %5918  ;;  %5283 = vmatmul.mubr.msk.f32.gmra.mrb[2].mxu1 %vm511_vm3, %v6673_v59  ;;  %5546 = vmatprep.subr.bf16.mxu0 %v5545_v11  ;;  %v875_v42 = vsel %vm458_vm0, %v848_v21, %v5911_v33 }
  0x98   : > { %5548 = vmatpush1.bf16.msra.mxu0 %v5547_v13  ;;  %600 = vmatprep.mubr.f32.mxu1 %v6410_v32  ;;  %v5921_v22 = vunpack.i.h.bf16 %v6682_v14  ;;  %v864_v10 = vsel %vm447_vm1, %v5915_v57, %v5916_v34 }
  0x99   : > { %v5924_v18 = vpop.permute.xlu0 %5923  ;;  %5591 = vmatprep.subr.bf16.mxu1 %v5545_v11 }
  0x9a   : > { %v5926_v23 = vunpack.i.h.bf16 %v5924_v18  ;;  %v5925_v25 = vunpack.i.l.bf16 %v5924_v18  ;;  %v877_v43 = vsel %vm458_vm0, %v5916_v34, %v5921_v22 }
  0x9b   : > { %v5929_v26 = vpop.permute.xlu1 %5928  ;;  %5284 = vmatmul.mubr.msk.f32.gmra.mrb[4].mxu1 %vm511_vm3, %v6690_v16  ;;  %5290 = vmatmul.mubr.msk.f32.vlgmr.msra.gmra.mrb[0].mxu0 %vm511_vm3, %v6658_v45  ;;  %v5549_v54 = vpack.c.bf16 %v877_v43, %v875_v42 }
  0x9c   : > { %v1186_v28 = vsel %vm447_vm1, %v5925_v25, %v5926_v23  ;;  %v5931_v30 = vunpack.i.h.bf16 %v5929_v26  ;;  %v5930_v35 = vunpack.i.l.bf16 %v5929_v26  ;;  %606 = vmatprep.mubr.f32.mxu1 %v6410_v32  ;;  %1295 = vmatprep.mubr.f32.mxu0 %v6410_v32 }
  0x9d   : > { %v6707_v39 = vpop.permute.xlu0 %5933 }
  0x9e   : > { %v1193_v40 = vsel %vm447_vm1, %v5930_v35, %v5931_v30  ;;  %v1199_v41 = vsel %vm458_vm0, %v5926_v23, %v5931_v30  ;;  %v1884_v35 = vsel %vm458_vm0, %v6623_v15, %v6649_v31 }
  0x9f   : > { %5285 = vmatmul.mubr.msk.f32.gmra.mrb[6].mxu1 %vm511_vm3, %v6704_v38  ;;  %v5553_v44 = vpack.c.bf16 %v1199_v41, %v6558_v36  ;;  %v1198_v46 = vsel %vm458_vm0, %v1186_v28, %v1193_v40  ;;  %v6719_v47 = vpop.permute.xlu1 %5938 }
  0xa0   : > { %685 = vmatprep.mubr.f32.mxu1 %v6410_v32  ;;  %v5555_v48 = vpack.c.bf16 %v1198_v46, %v6561_v37  ;;  %v5920_v37 = vunpack.i.l.bf16 %v6682_v14  ;;  %v5569_v14 = vpack.c.bf16 %v1885_v58, %v1883_v62  ;;  %v5941_v26 = vunpack.i.h.bf16 %v6719_v47 }
  0xa1   : > { %5554 = vmatprep.subr.bf16.mxu0 %v5553_v44  ;;  %v6723_v50 = vpop.permute.xlu0 %5943  ;;  %v5940_v41 = vunpack.i.l.bf16 %v6719_v47 }
  0xa2   : > { %5556 = vmatpush1.bf16.msra.mxu0 %v5555_v48  ;;  %v871_v19 = vsel %vm483_vm2, %v5920_v37, %v5921_v22  ;;  %v5946_v25 = vunpack.i.h.bf16 %v6723_v50  ;;  %v5945_v43 = vunpack.i.l.bf16 %v6723_v50 }
  0xa3   : > { %5286 = vmatmul.mubr.msk.f32.vlgmr.msra.gmra.mrb[8].mxu1 %vm511_vm3, %v6658_v45  ;;  %v5949_v21 = vpop.permute.xlu1 %5948  ;;  %v876_v34 = vsel %vm458_vm0, %v864_v10, %v871_v19  ;;  %v1217_v31 = vsel %vm447_vm1, %v5940_v41, %v5941_v26 }
  0xa4   : > { %691 = vmatprep.mubr.f32.mxu1 %v6410_v32  ;;  %v5951_v36 = vunpack.i.h.bf16 %v5949_v21  ;;  %v5950_v56 = vunpack.i.l.bf16 %v5949_v21  ;;  %5592 = vmatpush1.bf16.msra.mxu1 %v5547_v13  ;;  %v857_v13 = vsel %vm447_vm1, %v5910_v55, %v5911_v33  ;;  %v5936_v33 = vunpack.i.h.bf16 %v6707_v39 }
  0xa5   : > { %5298 = vmatmul.mubr.msk.f32.vlgmr.msra.gmra.mrb[2].mxu0 %vm511_vm3, %v6658_v45  ;;  %v5954_v60 = vpop.permute.xlu0 %5953  ;;  %5550 = vmatprep.subr.bf16.mxu1 %v5549_v54  ;;  %v1230_v22 = vsel %vm458_vm0, %v5941_v26, %v5946_v25  ;;  %v1224_v44 = vsel %vm483_vm2, %v5945_v43, %v5946_v25 }
  0xa6   : > { %1301 = vmatprep.mubr.f32.mxu0 %v6410_v32  ;;  %v5956_v11 = vunpack.i.h.bf16 %v5954_v60  ;;  %v5955_v63 = vunpack.i.l.bf16 %v5954_v60  ;;  %v1539_v5 = vsel %vm447_vm1, %v5950_v56, %v5951_v36  ;;  %v1229_v54 = vsel %vm458_vm0, %v1217_v31, %v1224_v44 }
  0xa7   : > { %5287 = vmatmul.mubr.msk.f32.gmra.mrb[10].mxu1 %vm511_vm3, %v6673_v59  ;;  %v5959_v30 = vpop.permute.xlu1 %5958 }
  0xa8   : > { %697 = vmatprep.mubr.f32.mxu1 %v6410_v32  ;;  %v1546_v2 = vsel %vm447_vm1, %v5955_v63, %v5956_v11  ;;  %v1552_v7 = vsel %vm458_vm0, %v5951_v36, %v5956_v11  ;;  %v5961_v46 = vunpack.i.h.bf16 %v5959_v30 }
  0xa9   : > { %5299 = vmatmul.mubr.msk.f32.gmra.mrb[4].mxu0 %vm511_vm3, %v6673_v59  ;;  %v5561_v18 = vpack.c.bf16 %v1552_v7, %v6581_v49  ;;  %v1551_v23 = vsel %vm458_vm0, %v1539_v5, %v1546_v2  ;;  %v874_v49 = vsel %vm458_vm0, %v847_v20, %v857_v13  ;;  %v1882_v20 = vsel %vm458_vm0, %v463_v6, %v6497_v3  ;;  %v5964_v6 = vpop.permute.xlu0 %5963 }
  0xaa   : > { %1307 = vmatprep.mubr.f32.mxu0 %v6410_v32  ;;  %v5563_v28 = vpack.c.bf16 %v1551_v23, %v6587_v53  ;;  %v1228_v53 = vsel %vm458_vm0, %v1201_v29, %v5936_v33  ;;  %v5551_v40 = vpack.c.bf16 %v876_v34, %v874_v49  ;;  %v5935_v29 = vunpack.i.l.bf16 %v6707_v39 }
  0xab   : > { %5288 = vmatmul.mubr.msk.f32.gmra.mrb[12].mxu1 %vm511_vm3, %v6690_v16  ;;  %5562 = vmatprep.subr.bf16.mxu0 %v5561_v18  ;;  %v5557_v42 = vpack.c.bf16 %v1230_v22, %v1228_v53  ;;  %v5571_v1 = vpack.c.bf16 %v1884_v35, %v1882_v20  ;;  %v5969_v39 = vpop.permute.xlu1 %5968  ;;  %v5966_v48 = vunpack.i.h.bf16 %v5964_v6  ;;  %v1581_v21 = vsel %vm458_vm0, %v1554_v52, %v5961_v46 }
  0xac   : > { %703 = vmatprep.mubr.f32.mxu1 %v6410_v32  ;;  %5564 = vmatpush1.bf16.msra.mxu0 %v5563_v28  ;;  %v1210_v15 = vsel %vm447_vm1, %v5935_v29, %v5936_v33  ;;  %v5971_v47 = vunpack.i.h.bf16 %v5969_v39  ;;  %v5960_v52 = vunpack.i.l.bf16 %v5959_v30  ;;  %v5970_v57 = vunpack.i.l.bf16 %v5969_v39 }
  0xad   : > { %5300 = vmatmul.mubr.msk.f32.gmra.mrb[6].mxu0 %vm511_vm3, %v6690_v16  ;;  %5570 = vmatprep.subr.bf16.mxu0 %v5569_v14  ;;  %v1227_v50 = vsel %vm458_vm0, %v1200_v27, %v1210_v15  ;;  %v5965_v37 = vunpack.i.l.bf16 %v5964_v6  ;;  %v1894_v2 = vsel %vm458_vm0, %v6511_v9, %v6612_v61  ;;  %v1893_v14 = vsel %vm458_vm0, %v6508_v8, %v6627_v17 }
  0xae   : > { %1313 = vmatprep.mubr.f32.mxu0 %v6410_v32  ;;  %v1583_v55 = vsel %vm458_vm0, %v5966_v48, %v5971_v47  ;;  %v5559_v56 = vpack.c.bf16 %v1229_v54, %v1227_v50  ;;  %v1563_v11 = vsel %vm447_vm1, %v5960_v52, %v5961_v46  ;;  %v1577_v63 = vsel %vm483_vm2, %v5970_v57, %v5971_v47 }
  0xaf   : > { %5289 = vmatmul.mubr.msk.f32.gmra.mrb[14].mxu1 %vm511_vm3, %v6704_v38  ;;  %v5565_v27 = vpack.c.bf16 %v1583_v55, %v1581_v21  ;;  %v1570_v5 = vsel %vm447_vm1, %v5965_v37, %v5966_v48  ;;  %v1580_v9 = vsel %vm458_vm0, %v1553_v51, %v1563_v11 }
  0xb0   : > { %948 = vmatprep.mubr.f32.mxu1 %v6410_v32  ;;  %v1582_v61 = vsel %vm458_vm0, %v1570_v5, %v1577_v63 }
  0xb1   : > { %5301 = vmatmul.mubr.msk.f32.gmra.mrb[8].mxu0 %vm511_vm3, %v6704_v38  ;;  %v5567_v8 = vpack.c.bf16 %v1582_v61, %v1580_v9 }
  0xb2   : > { %1648 = vmatprep.mubr.f32.mxu0 %v6410_v32 }
  0xb3   : > { %5291 = vmatmul.mubr.msk.f32.vlgmr.msra.gmra.mrb[16].mxu1 %vm511_vm3, %v6673_v59 }
  0xb4   : > { %954 = vmatprep.mubr.f32.mxu1 %v6410_v32  ;;  %5552 = vmatpush1.bf16.msra.mxu1 %v5551_v40 }
  0xb5   : > { %5306 = vmatmul.mubr.msk.f32.vlgmr.msra.gmra.mrb[10].mxu0 %vm511_vm3, %v6658_v45  ;;  %5558 = vmatprep.subr.bf16.mxu1 %v5557_v42 }
  0xb6   : > { %1654 = vmatprep.mubr.f32.mxu0 %v6410_v32  ;;  %5572 = vmatpush1.bf16.msra.mxu0 %v5571_v1 }
  0xb7   : > { %5292 = vmatmul.mubr.msk.f32.gmra.mrb[18].mxu1 %vm511_vm3, %v6690_v16 }
  0xb8   : > { %960 = vmatprep.mubr.f32.mxu1 %v6410_v32 }
  0xb9   : > { %5307 = vmatmul.mubr.msk.f32.gmra.mrb[12].mxu0 %vm511_vm3, %v6673_v59 }
  0xba   : > { %1660 = vmatprep.mubr.f32.mxu0 %v6410_v32  ;;  %v6903_v3 = vpop.permute.xlu0 %493 }
  0xbb   : > { %5293 = vmatmul.mubr.msk.f32.gmra.mrb[20].mxu1 %vm511_vm3, %v6704_v38 }
  0xbc   : > { %v6814_v36 = vpop.permute.xlu1 %498  ;;  %1039 = vmatprep.mubr.f32.mxu1 %v6410_v32 }
  0xbd   : > { %5308 = vmatmul.mubr.msk.f32.gmra.mrb[14].mxu0 %vm511_vm3, %v6690_v16 }
  0xbe   : > { %1666 = vmatprep.mubr.f32.mxu0 %v6410_v32  ;;  %v6914_v43 = vpop.permute.xlu0 %508 }
  0xbf   : > { %5294 = vmatmul.mubr.msk.f32.vlgmr.msra.gmra.mrb[22].mxu1 %vm511_vm3, %v6658_v45 }
  0xc0   : > { %v6822_v4 = vpop.permute.xlu1 %503  ;;  %1045 = vmatprep.mubr.f32.mxu1 %v6410_v32  ;;  %5560 = vmatpush1.bf16.msra.mxu1 %v5559_v56 }
  0xc1   : > { %5309 = vmatmul.mubr.msk.f32.gmra.mrb[16].mxu0 %vm511_vm3, %v6704_v38  ;;  %5566 = vmatprep.subr.bf16.mxu1 %v5565_v27 }
  0xc2   : > { %1961 = vmatprep.mubr.f32.mxu0 %v6410_v32 }
  0xc3   : > { %5295 = vmatmul.mubr.msk.f32.gmra.mrb[24].mxu1 %vm511_vm3, %v6673_v59 }
  0xc4   : > { %v5976_v60 = vpop.permute.xlu1 %5975  ;;  %1051 = vmatprep.mubr.f32.mxu1 %v6410_v32 }
  0xc5   : > { %v5978_v62 = vunpack.i.h.bf16 %v5976_v60  ;;  %v5977_v58 = vunpack.i.l.bf16 %v5976_v60  ;;  %5314 = vmatmul.mubr.msk.f32.vlgmr.msra.gmra.mrb[18].mxu0 %vm511_vm3, %v6658_v45 }
  0xc6   : > { %1967 = vmatprep.mubr.f32.mxu0 %v6410_v32 }
  0xc7   : > { %v1890_v13 = vsel %vm483_vm2, %v5977_v58, %v5978_v62  ;;  %5296 = vmatmul.mubr.msk.f32.gmra.mrb[26].mxu1 %vm511_vm3, %v6690_v16  ;;  %v1896_v7 = vsel %vm458_vm0, %v6616_v12, %v5978_v62 }
  0xc8   : > { %1057 = vmatprep.mubr.f32.mxu1 %v6410_v32  ;;  %v5573_v10 = vpack.c.bf16 %v1896_v7, %v1894_v2  ;;  %v1895_v19 = vsel %vm458_vm0, %v6639_v24, %v1890_v13 }
  0xc9   : > { %5315 = vmatmul.mubr.msk.f32.gmra.mrb[20].mxu0 %vm511_vm3, %v6673_v59  ;;  %v5575_v12 = vpack.c.bf16 %v1895_v19, %v1893_v14 }
  0xca   : > { %1973 = vmatprep.mubr.f32.mxu0 %v6410_v32 }
  0xcb   : > { %5297 = vmatmul.mubr.msk.f32.gmra.mrb[28].mxu1 %vm511_vm3, %v6704_v38 }
  0xcc   : > { %1392 = vmatprep.mubr.f32.mxu1 %v6410_v32 }
  0xcd   : > { %5316 = vmatmul.mubr.msk.f32.gmra.mrb[22].mxu0 %vm511_vm3, %v6690_v16 }
  0xce   : > { %1979 = vmatprep.mubr.f32.mxu0 %v6410_v32 }
  0xcf   : > { %5302 = vmatmul.mubr.msk.f32.vlgmr.msra.gmra.mrb[30].mxu1 %vm511_vm3, %v6658_v45 }
  0xd0   : > { %5568 = vmatpush1.bf16.msra.mxu1 %v5567_v8  ;;  %1398 = vmatprep.mubr.f32.mxu1 %v6410_v32 }
  0xd1   : > { %5574 = vmatprep.subr.bf16.mxu1 %v5573_v10  ;;  %5317 = vmatmul.mubr.msk.f32.gmra.mrb[24].mxu0 %vm511_vm3, %v6704_v38 }
  0xd2   : > { %2264 = vmatprep.mubr.bf16.mxu0 %v6407_v0 }
  0xd3   : > { %5303 = vmatmul.mubr.msk.f32.gmra.mrb[32].mxu1 %vm511_vm3, %v6673_v59 }
  0xd4   : > { %1404 = vmatprep.mubr.f32.mxu1 %v6410_v32 }
  0xd7   : > { %5304 = vmatmul.mubr.msk.f32.gmra.mrb[34].mxu1 %vm511_vm3, %v6690_v16 }
  0xd8   : > { %1410 = vmatprep.mubr.f32.mxu1 %v6410_v32 }
  0xdb   : > { %5305 = vmatmul.mubr.msk.f32.gmra.mrb[36].mxu1 %vm511_vm3, %v6704_v38 }
  0xdc   : > { %1745 = vmatprep.mubr.f32.mxu1 %v6410_v32 }
  0xdf   : > { %5310 = vmatmul.mubr.msk.f32.vlgmr.msra.gmra.mrb[38].mxu1 %vm511_vm3, %v6658_v45 }
  0xe0   : > { %5576 = vmatpush1.bf16.msra.mxu1 %v5575_v12  ;;  %1751 = vmatprep.mubr.f32.mxu1 %v6410_v32 }
  0xe3   : > { %5311 = vmatmul.mubr.msk.f32.gmra.mrb[40].mxu1 %vm511_vm3, %v6673_v59 }
  0xe4   : > { %1757 = vmatprep.mubr.f32.mxu1 %v6410_v32 }
  0xe7   : > { %5312 = vmatmul.mubr.msk.f32.gmra.mrb[42].mxu1 %vm511_vm3, %v6690_v16 }
  0xe8   : > { %1763 = vmatprep.mubr.f32.mxu1 %v6410_v32 }
  0xeb   : > { %5313 = vmatmul.mubr.msk.f32.gmra.mrb[44].mxu1 %vm511_vm3, %v6704_v38 }
  0xec   : > { %2058 = vmatprep.mubr.f32.mxu1 %v6410_v32 }
  0xef   : > { %5318 = vmatmul.mubr.msk.f32.vlgmr.msra.gmra.mrb[46].mxu1 %vm511_vm3, %v6658_v45 }
  0xf0   : > { %2064 = vmatprep.mubr.f32.mxu1 %v6410_v32 }
  0xf3   : > { %5319 = vmatmul.mubr.msk.f32.gmra.mrb[48].mxu1 %vm511_vm3, %v6673_v59 }
  0xf4   : > { %2070 = vmatprep.mubr.f32.mxu1 %v6410_v32 }
  0xf7   : > { %5320 = vmatmul.mubr.msk.f32.gmra.mrb[50].mxu1 %vm511_vm3, %v6690_v16 }
  0xf8   : > { %2076 = vmatprep.mubr.f32.mxu1 %v6410_v32 }
  0xfb   : > { %5321 = vmatmul.mubr.msk.f32.gmra.mrb[52].mxu1 %vm511_vm3, %v6704_v38 }
  0xfc   : > { %3020 = vmatprep.mubr.bf16.mxu1 %v6407_v0 }
 0x166   : > { %v590_v51 = vpop.f32.mrb[0].mxu1 }
 0x167   : > { %v591_v17 = vadd.f32 %v590_v51, %v6903_v3  ;;  %v592_v24 = vpop.f32.mrb[1].mxu1 }
 0x168   : > { %v593_v45 = vadd.f32 %v592_v24, %v6903_v3 }
 0x169   : > { %v613_v59 = vmax.f32 %v591_v17, 0.0 }
 0x16a   : > { %v614_v18 = vmax.f32 %v593_v45, 0.0  ;;  %v596_v23 = vpop.f32.mrb[2].mxu1 }
 0x16b   : > { %v597_v16 = vadd.f32 %v596_v23, %v6814_v36  ;;  %v598_v33 = vpop.f32.mrb[3].mxu1 }
 0x16c   : > { %v5979_v25 = vpack.i.bf16 %v614_v18, %v613_v59  ;;  %v599_v26 = vadd.f32 %v598_v33, %v6814_v36 }
 0x16d   : > { %v615_v38 = vmax.f32 %v597_v16, 0.0 }
 0x16e   : > { %v616_v28 = vmax.f32 %v599_v26, 0.0  ;;  %v602_v49 = vpop.f32.mrb[4].mxu1  ;;  %v944_v34 = vpop.f32.mrb[0].mxu0  ;;  %5980 = vrot.lane.b32.xlu0 %v5979_v25, %s6411_s28 }
 0x16f   : > { %v603_v53 = vadd.f32 %v602_v49, %v6822_v4  ;;  %v945_v22 = vadd.f32 %v944_v34, %v6903_v3  ;;  %v604_v30 = vpop.f32.mrb[5].mxu1  ;;  %v946_v20 = vpop.f32.mrb[1].mxu0 }
 0x170   : > { %v5984_v35 = vpack.i.bf16 %v616_v28, %v615_v38  ;;  %v605_v40 = vadd.f32 %v604_v30, %v6822_v4  ;;  %v947_v29 = vadd.f32 %v946_v20, %v6903_v3 }
 0x171   : > { %v617_v41 = vmax.f32 %v603_v53, 0.0  ;;  %v967_v42 = vmax.f32 %v945_v22, 0.0 }
 0x172   : > { %v618_v1 = vmax.f32 %v605_v40, 0.0  ;;  %v968_v6 = vmax.f32 %v947_v29, 0.0  ;;  %v608_v15 = vpop.f32.mrb[6].mxu1  ;;  %5985 = vrot.lane.b32.xlu1 %v5984_v35, %s6411_s28 }
 0x173   : > { %v609_v31 = vadd.f32 %v608_v15, %v6914_v43  ;;  %v610_v39 = vpop.f32.mrb[7].mxu1 }
 0x174   : > { %v5989_v44 = vpack.i.bf16 %v618_v1, %v617_v41  ;;  %v6918_v46 = vpack.i.bf16 %v968_v6, %v967_v42  ;;  %v611_v47 = vadd.f32 %v610_v39, %v6914_v43 }
 0x175   : > { %v619_v48 = vmax.f32 %v609_v31, 0.0 }
 0x176   : > { %v620_v50 = vmax.f32 %v611_v47, 0.0  ;;  %v687_v54 = vpop.f32.mrb[8].mxu1  ;;  %5990 = vrot.lane.b32.xlu0 %v5989_v44, %s6411_s28 }
 0x177   : > { %v688_v21 = vadd.f32 %v687_v54, %v6903_v3  ;;  %v689_v55 = vpop.f32.mrb[9].mxu1 }
 0x178   : > { %v5994_v56 = vpack.i.bf16 %v620_v50, %v619_v48  ;;  %v690_v27 = vadd.f32 %v689_v55, %v6903_v3  ;;  %v1297_v52 = vpop.f32.mrb[2].mxu0 }
 0x179   : > { %v710_v57 = vmax.f32 %v688_v21, 0.0  ;;  %v1298_v37 = vadd.f32 %v1297_v52, %v6903_v3  ;;  %v1299_v60 = vpop.f32.mrb[3].mxu0 }
 0x17a   : > { %v711_v62 = vmax.f32 %v690_v27, 0.0  ;;  %v1300_v58 = vadd.f32 %v1299_v60, %v6903_v3  ;;  %v693_v11 = vpop.f32.mrb[10].mxu1  ;;  %5995 = vrot.lane.b32.xlu1 %v5994_v56, %s6411_s28 }
 0x17b   : > { %v1320_v63 = vmax.f32 %v1298_v37, 0.0  ;;  %v694_v5 = vadd.f32 %v693_v11, %v6814_v36  ;;  %v695_v13 = vpop.f32.mrb[11].mxu1 }
 0x17c   : > { %v5999_v2 = vpack.i.bf16 %v711_v62, %v710_v57  ;;  %v1321_v7 = vmax.f32 %v1300_v58, 0.0  ;;  %v696_v14 = vadd.f32 %v695_v13, %v6814_v36  ;;  %v1303_v10 = vpop.f32.mrb[4].mxu0 }
 0x17d   : > { %v712_v19 = vmax.f32 %v694_v5, 0.0  ;;  %v1304_v9 = vadd.f32 %v1303_v10, %v6814_v36  ;;  %v1305_v61 = vpop.f32.mrb[5].mxu0 }
 0x17e   : > { %v6930_v12 = vpack.i.bf16 %v1321_v7, %v1320_v63  ;;  %v713_v8 = vmax.f32 %v696_v14, 0.0  ;;  %v1306_v51 = vadd.f32 %v1305_v61, %v6814_v36  ;;  %v699_v17 = vpop.f32.mrb[12].mxu1  ;;  %6000 = vrot.lane.b32.xlu0 %v5999_v2, %s6411_s28 }
 0x17f   : > { %v1322_v24 = vmax.f32 %v1304_v9, 0.0  ;;  %v700_v45 = vadd.f32 %v699_v17, %v6822_v4  ;;  %v701_v59 = vpop.f32.mrb[13].mxu1 }
 0x180   : > { %v6004_v18 = vpack.i.bf16 %v713_v8, %v712_v19  ;;  %v1323_v23 = vmax.f32 %v1306_v51, 0.0  ;;  %v702_v16 = vadd.f32 %v701_v59, %v6822_v4  ;;  %v1309_v33 = vpop.f32.mrb[6].mxu0 }
 0x181   : > { %v714_v25 = vmax.f32 %v700_v45, 0.0  ;;  %v1310_v26 = vadd.f32 %v1309_v33, %v6822_v4  ;;  %v1311_v38 = vpop.f32.mrb[7].mxu0 }
 0x182   : > { %v6937_v28 = vpack.i.bf16 %v1323_v23, %v1322_v24  ;;  %v715_v49 = vmax.f32 %v702_v16, 0.0  ;;  %v1312_v34 = vadd.f32 %v1311_v38, %v6822_v4  ;;  %v705_v53 = vpop.f32.mrb[14].mxu1  ;;  %6005 = vrot.lane.b32.xlu1 %v6004_v18, %s6411_s28 }
 0x183   : > { %v1324_v22 = vmax.f32 %v1310_v26, 0.0  ;;  %v706_v30 = vadd.f32 %v705_v53, %v6914_v43  ;;  %v707_v20 = vpop.f32.mrb[15].mxu1 }
 0x184   : > { %v6009_v35 = vpack.i.bf16 %v715_v49, %v714_v25  ;;  %v1325_v40 = vmax.f32 %v1312_v34, 0.0  ;;  %v708_v29 = vadd.f32 %v707_v20, %v6914_v43  ;;  %v1315_v41 = vpop.f32.mrb[8].mxu0 }
 0x185   : > { %v716_v42 = vmax.f32 %v706_v30, 0.0  ;;  %v1316_v1 = vadd.f32 %v1315_v41, %v6914_v43  ;;  %v1317_v6 = vpop.f32.mrb[9].mxu0 }
 0x186   : > { %v6944_v15 = vpack.i.bf16 %v1325_v40, %v1324_v22  ;;  %v717_v31 = vmax.f32 %v708_v29, 0.0  ;;  %v1318_v39 = vadd.f32 %v1317_v6, %v6914_v43  ;;  %v950_v44 = vpop.f32.mrb[16].mxu1  ;;  %6010 = vrot.lane.b32.xlu0 %v6009_v35, %s6411_s28 }
 0x187   : > { %v1326_v47 = vmax.f32 %v1316_v1, 0.0  ;;  %v951_v48 = vadd.f32 %v950_v44, %v6814_v36  ;;  %v952_v50 = vpop.f32.mrb[17].mxu1 }
 0x188   : > { %v6014_v54 = vpack.i.bf16 %v717_v31, %v716_v42  ;;  %v1327_v21 = vmax.f32 %v1318_v39, 0.0  ;;  %v953_v55 = vadd.f32 %v952_v50, %v6814_v36  ;;  %v1650_v56 = vpop.f32.mrb[10].mxu0 }
 0x189   : > { %v969_v27 = vmax.f32 %v951_v48, 0.0  ;;  %v1651_v52 = vadd.f32 %v1650_v56, %v6903_v3  ;;  %v1652_v57 = vpop.f32.mrb[11].mxu0 }
 0x18a   : > { %v6951_v37 = vpack.i.bf16 %v1327_v21, %v1326_v47  ;;  %v970_v60 = vmax.f32 %v953_v55, 0.0  ;;  %v1653_v62 = vadd.f32 %v1652_v57, %v6903_v3  ;;  %v956_v58 = vpop.f32.mrb[18].mxu1  ;;  %6015 = vrot.lane.b32.xlu1 %v6014_v54, %s6411_s28  ;;  %6020 = vrot.lane.b32.xlu0 %v6918_v46, %s6411_s28 }
 0x18b   : > { %v1673_v11 = vmax.f32 %v1651_v52, 0.0  ;;  %v957_v63 = vadd.f32 %v956_v58, %v6822_v4  ;;  %v958_v5 = vpop.f32.mrb[19].mxu1 }
 0x18c   : > { %v6024_v13 = vpack.i.bf16 %v970_v60, %v969_v27  ;;  %v1674_v2 = vmax.f32 %v1653_v62, 0.0  ;;  %v959_v7 = vadd.f32 %v958_v5, %v6822_v4  ;;  %v1656_v14 = vpop.f32.mrb[12].mxu0 }
 0x18d   : > { %v971_v10 = vmax.f32 %v957_v63, 0.0  ;;  %v1657_v19 = vadd.f32 %v1656_v14, %v6814_v36  ;;  %v1658_v9 = vpop.f32.mrb[13].mxu0 }
 0x18e   : > { %v6960_v61 = vpack.i.bf16 %v1674_v2, %v1673_v11  ;;  %v972_v8 = vmax.f32 %v959_v7, 0.0  ;;  %v1659_v51 = vadd.f32 %v1658_v9, %v6814_v36  ;;  %v962_v17 = vpop.f32.mrb[20].mxu1  ;;  %6025 = vrot.lane.b32.xlu1 %v6024_v13, %s6411_s28 }
 0x18f   : > { %v1675_v46 = vmax.f32 %v1657_v19, 0.0  ;;  %v963_v24 = vadd.f32 %v962_v17, %v6914_v43  ;;  %v964_v45 = vpop.f32.mrb[21].mxu1 }
 0x190   : > { %v6029_v59 = vpack.i.bf16 %v972_v8, %v971_v10  ;;  %v1676_v18 = vmax.f32 %v1659_v51, 0.0  ;;  %v965_v23 = vadd.f32 %v964_v45, %v6914_v43  ;;  %v1662_v16 = vpop.f32.mrb[14].mxu0 }
 0x191   : > { %v973_v33 = vmax.f32 %v963_v24, 0.0  ;;  %v1663_v25 = vadd.f32 %v1662_v16, %v6822_v4  ;;  %v1664_v26 = vpop.f32.mrb[15].mxu0 }
 0x192   : > { %v6967_v38 = vpack.i.bf16 %v1676_v18, %v1675_v46  ;;  %v974_v49 = vmax.f32 %v965_v23, 0.0  ;;  %v1665_v34 = vadd.f32 %v1664_v26, %v6822_v4  ;;  %v1041_v53 = vpop.f32.mrb[22].mxu1  ;;  %6030 = vrot.lane.b32.xlu0 %v6029_v59, %s6411_s28 }
 0x193   : > { %v1677_v22 = vmax.f32 %v1663_v25, 0.0  ;;  %v1042_v30 = vadd.f32 %v1041_v53, %v6903_v3  ;;  %v1043_v20 = vpop.f32.mrb[23].mxu1 }
 0x194   : > { %v6034_v35 = vpack.i.bf16 %v974_v49, %v973_v33  ;;  %v1678_v40 = vmax.f32 %v1665_v34, 0.0  ;;  %v1044_v29 = vadd.f32 %v1043_v20, %v6903_v3  ;;  %v1668_v41 = vpop.f32.mrb[16].mxu0 }
 0x195   : > { %v1064_v42 = vmax.f32 %v1042_v30, 0.0  ;;  %v1669_v1 = vadd.f32 %v1668_v41, %v6914_v43  ;;  %v1670_v6 = vpop.f32.mrb[17].mxu0 }
 0x196   : > { %v6974_v31 = vpack.i.bf16 %v1678_v40, %v1677_v22  ;;  %v1065_v39 = vmax.f32 %v1044_v29, 0.0  ;;  %v1671_v44 = vadd.f32 %v1670_v6, %v6914_v43  ;;  %v1047_v47 = vpop.f32.mrb[24].mxu1  ;;  %6035 = vrot.lane.b32.xlu1 %v6034_v35, %s6411_s28 }
 0x197   : > { %v1679_v48 = vmax.f32 %v1669_v1, 0.0  ;;  %v1048_v50 = vadd.f32 %v1047_v47, %v6814_v36  ;;  %v1049_v54 = vpop.f32.mrb[25].mxu1 }
 0x198   : > { %v6979_v21 = vpack.i.bf16 %v1065_v39, %v1064_v42  ;;  %v1680_v55 = vmax.f32 %v1671_v44, 0.0  ;;  %v1050_v56 = vadd.f32 %v1049_v54, %v6814_v36  ;;  %v1963_v27 = vpop.f32.mrb[18].mxu0 }
 0x199   : > { %v1066_v52 = vmax.f32 %v1048_v50, 0.0  ;;  %v1964_v57 = vadd.f32 %v1963_v27, %v6903_v3  ;;  %v1965_v60 = vpop.f32.mrb[19].mxu0 }
 0x19a   : > { %v6983_v62 = vpack.i.bf16 %v1680_v55, %v1679_v48  ;;  %v1067_v58 = vmax.f32 %v1050_v56, 0.0  ;;  %v1966_v11 = vadd.f32 %v1965_v60, %v6903_v3  ;;  %v1053_v63 = vpop.f32.mrb[26].mxu1 }
 0x19b   : > { %v1986_v5 = vmax.f32 %v1964_v57, 0.0  ;;  %v1054_v13 = vadd.f32 %v1053_v63, %v6822_v4  ;;  %v1055_v2 = vpop.f32.mrb[27].mxu1 }
 0x19c   : > { %v6987_v7 = vpack.i.bf16 %v1067_v58, %v1066_v52  ;;  %v1987_v14 = vmax.f32 %v1966_v11, 0.0  ;;  %v1056_v10 = vadd.f32 %v1055_v2, %v6822_v4  ;;  %v1969_v19 = vpop.f32.mrb[20].mxu0 }
 0x19d   : > { %v1068_v9 = vmax.f32 %v1054_v13, 0.0  ;;  %v1970_v8 = vadd.f32 %v1969_v19, %v6814_v36  ;;  %v1971_v51 = vpop.f32.mrb[21].mxu0 }
 0x19e   : > { %v6991_v17 = vpack.i.bf16 %v1987_v14, %v1986_v5  ;;  %v1069_v46 = vmax.f32 %v1056_v10, 0.0  ;;  %v1972_v24 = vadd.f32 %v1971_v51, %v6814_v36  ;;  %v1059_v45 = vpop.f32.mrb[28].mxu1 }
 0x19f   : > { %v1988_v59 = vmax.f32 %v1970_v8, 0.0  ;;  %v1060_v18 = vadd.f32 %v1059_v45, %v6914_v43  ;;  %v1061_v23 = vpop.f32.mrb[29].mxu1 }
 0x1a0   : > { %v6995_v16 = vpack.i.bf16 %v1069_v46, %v1068_v9  ;;  %v1989_v33 = vmax.f32 %v1972_v24, 0.0  ;;  %v1062_v25 = vadd.f32 %v1061_v23, %v6914_v43  ;;  %v1975_v26 = vpop.f32.mrb[22].mxu0 }
 0x1a1   : > { %v1070_v49 = vmax.f32 %v1060_v18, 0.0  ;;  %v1976_v34 = vadd.f32 %v1975_v26, %v6822_v4  ;;  %v1977_v53 = vpop.f32.mrb[23].mxu0 }
 0x1a2   : > { %v6999_v22 = vpack.i.bf16 %v1989_v33, %v1988_v59  ;;  %v1071_v30 = vmax.f32 %v1062_v25, 0.0  ;;  %v1978_v20 = vadd.f32 %v1977_v53, %v6822_v4  ;;  %v1394_v35 = vpop.f32.mrb[30].mxu1 }
 0x1a3   : > { %v1990_v40 = vmax.f32 %v1976_v34, 0.0  ;;  %v1395_v29 = vadd.f32 %v1394_v35, %v6903_v3  ;;  %v1396_v41 = vpop.f32.mrb[31].mxu1 }
 0x1a4   : > { %v7003_v42 = vpack.i.bf16 %v1071_v30, %v1070_v49  ;;  %v1991_v1 = vmax.f32 %v1978_v20, 0.0  ;;  %v1397_v6 = vadd.f32 %v1396_v41, %v6903_v3  ;;  %v1981_v39 = vpop.f32.mrb[24].mxu0 }
 0x1a5   : > { %v1417_v44 = vmax.f32 %v1395_v29, 0.0  ;;  %v1982_v47 = vadd.f32 %v1981_v39, %v6914_v43  ;;  %v1983_v48 = vpop.f32.mrb[25].mxu0 }
 0x1a6   : > { %v7007_v50 = vpack.i.bf16 %v1991_v1, %v1990_v40  ;;  %v1418_v54 = vmax.f32 %v1397_v6, 0.0  ;;  %v1984_v55 = vadd.f32 %v1983_v48, %v6914_v43  ;;  %v1400_v56 = vpop.f32.mrb[32].mxu1 }
 0x1a7   : > { %v1992_v27 = vmax.f32 %v1982_v47, 0.0  ;;  %v1401_v52 = vadd.f32 %v1400_v56, %v6814_v36  ;;  %v1402_v57 = vpop.f32.mrb[33].mxu1 }
 0x1a8   : > { %v7011_v60 = vpack.i.bf16 %v1418_v54, %v1417_v44  ;;  %v1993_v58 = vmax.f32 %v1984_v55, 0.0  ;;  %v1403_v11 = vadd.f32 %v1402_v57, %v6814_v36 }
 0x1a9   : > { %v1419_v63 = vmax.f32 %v1401_v52, 0.0 }
 0x1aa   : > { %v7014_v5 = vpack.i.bf16 %v1993_v58, %v1992_v27  ;;  %v1420_v13 = vmax.f32 %v1403_v11, 0.0  ;;  %v1406_v2 = vpop.f32.mrb[34].mxu1 }
 0x1ab   : > { %v1407_v14 = vadd.f32 %v1406_v2, %v6822_v4  ;;  %v1408_v10 = vpop.f32.mrb[35].mxu1 }
 0x1ac   : > { %v7017_v19 = vpack.i.bf16 %v1420_v13, %v1419_v63  ;;  %v1409_v9 = vadd.f32 %v1408_v10, %v6822_v4 }
 0x1ad   : > { %v1421_v8 = vmax.f32 %v1407_v14, 0.0 }
 0x1ae   : > { %v1422_v51 = vmax.f32 %v1409_v9, 0.0  ;;  %v1412_v46 = vpop.f32.mrb[36].mxu1 }
 0x1af   : > { %v1413_v24 = vadd.f32 %v1412_v46, %v6914_v43  ;;  %v1414_v45 = vpop.f32.mrb[37].mxu1 }
 0x1b0   : > { %v7021_v59 = vpack.i.bf16 %v1422_v51, %v1421_v8  ;;  %v1415_v18 = vadd.f32 %v1414_v45, %v6914_v43 }
 0x1b1   : > { %v1423_v23 = vmax.f32 %v1413_v24, 0.0 }
 0x1b2   : > { %v1424_v33 = vmax.f32 %v1415_v18, 0.0  ;;  %v1747_v25 = vpop.f32.mrb[38].mxu1 }
 0x1b3   : > { %v1748_v26 = vadd.f32 %v1747_v25, %v6903_v3  ;;  %v1749_v49 = vpop.f32.mrb[39].mxu1 }
 0x1b4   : > { %v7025_v34 = vpack.i.bf16 %v1424_v33, %v1423_v23  ;;  %v1750_v53 = vadd.f32 %v1749_v49, %v6903_v3 }
 0x1b5   : > { %v1770_v30 = vmax.f32 %v1748_v26, 0.0 }
 0x1b6   : > { %v1771_v20 = vmax.f32 %v1750_v53, 0.0  ;;  %v1753_v35 = vpop.f32.mrb[40].mxu1 }
 0x1b7   : > { %v1754_v40 = vadd.f32 %v1753_v35, %v6814_v36  ;;  %v1755_v29 = vpop.f32.mrb[41].mxu1 }
 0x1b8   : > { %v7029_v41 = vpack.i.bf16 %v1771_v20, %v1770_v30  ;;  %v1756_v1 = vadd.f32 %v1755_v29, %v6814_v36 }
 0x1b9   : > { %v1772_v6 = vmax.f32 %v1754_v40, 0.0 }
 0x1ba   : > { %v1773_v39 = vmax.f32 %v1756_v1, 0.0  ;;  %v1759_v44 = vpop.f32.mrb[42].mxu1 }
 0x1bb   : > { %v1760_v47 = vadd.f32 %v1759_v44, %v6822_v4  ;;  %v1761_v48 = vpop.f32.mrb[43].mxu1 }
 0x1bc   : > { %v7033_v54 = vpack.i.bf16 %v1773_v39, %v1772_v6  ;;  %v1762_v55 = vadd.f32 %v1761_v48, %v6822_v4 }
 0x1bd   : > { %v1774_v56 = vmax.f32 %v1760_v47, 0.0 }
 0x1be   : > { %v1775_v27 = vmax.f32 %v1762_v55, 0.0  ;;  %v1765_v52 = vpop.f32.mrb[44].mxu1 }
 0x1bf   : > { %v1766_v57 = vadd.f32 %v1765_v52, %v6914_v43  ;;  %v1767_v58 = vpop.f32.mrb[45].mxu1 }
 0x1c0   : > { %v7037_v11 = vpack.i.bf16 %v1775_v27, %v1774_v56  ;;  %v1768_v63 = vadd.f32 %v1767_v58, %v6914_v43 }
 0x1c1   : > { %v1776_v13 = vmax.f32 %v1766_v57, 0.0 }
 0x1c2   : > { %v1777_v2 = vmax.f32 %v1768_v63, 0.0  ;;  %v2060_v14 = vpop.f32.mrb[46].mxu1 }
 0x1c3   : > { %v2061_v10 = vadd.f32 %v2060_v14, %v6903_v3  ;;  %v2062_v9 = vpop.f32.mrb[47].mxu1 }
 0x1c4   : > { %v7041_v8 = vpack.i.bf16 %v1777_v2, %v1776_v13  ;;  %v2063_v51 = vadd.f32 %v2062_v9, %v6903_v3 }
 0x1c5   : > { %v2083_v46 = vmax.f32 %v2061_v10, 0.0 }
 0x1c6   : > { %v2084_v24 = vmax.f32 %v2063_v51, 0.0  ;;  %v2066_v45 = vpop.f32.mrb[48].mxu1 }
 0x1c7   : > { %v2067_v18 = vadd.f32 %v2066_v45, %v6814_v36  ;;  %v2068_v23 = vpop.f32.mrb[49].mxu1 }
 0x1c8   : > { %v7045_v33 = vpack.i.bf16 %v2084_v24, %v2083_v46  ;;  %v2069_v25 = vadd.f32 %v2068_v23, %v6814_v36 }
 0x1c9   : > { %v2085_v26 = vmax.f32 %v2067_v18, 0.0 }
 0x1ca   : > { %v2086_v49 = vmax.f32 %v2069_v25, 0.0  ;;  %v2072_v53 = vpop.f32.mrb[50].mxu1 }
 0x1cb   : > { %v2073_v30 = vadd.f32 %v2072_v53, %v6822_v4  ;;  %v2074_v20 = vpop.f32.mrb[51].mxu1 }
 0x1cc   : > { %v7049_v35 = vpack.i.bf16 %v2086_v49, %v2085_v26  ;;  %v2075_v3 = vadd.f32 %v2074_v20, %v6822_v4 }
 0x1cd   : > { %v2087_v40 = vmax.f32 %v2073_v30, 0.0 }
 0x1ce   : > { %v2088_v29 = vmax.f32 %v2075_v3, 0.0  ;;  %v2078_v1 = vpop.f32.mrb[52].mxu1 }
 0x1cf   : > { %v2079_v6 = vadd.f32 %v2078_v1, %v6914_v43  ;;  %v2080_v39 = vpop.f32.mrb[53].mxu1 }
 0x1d0   : > { %v7053_v44 = vpack.i.bf16 %v2088_v29, %v2087_v40  ;;  %v2081_v36 = vadd.f32 %v2080_v39, %v6914_v43 }
 0x1d1   : > { %v2089_v47 = vmax.f32 %v2079_v6, 0.0 }
 0x1d2   : > { %v2090_v48 = vmax.f32 %v2081_v36, 0.0 }
 0x1d4   : > { %v7056_v55 = vpack.i.bf16 %v2090_v48, %v2089_v47 }
 0x1e0   : > { %v5981_v56 = vpop.permute.xlu0 %5980 }
 0x1e1   : > { %v5983_v27 = vunpack.i.h.bf16 %v5981_v56  ;;  %v7058_v52 = vunpack.i.l.bf16 %v5981_v56 }
 0x1e3   : > { %v743_v63 = vsel %vm742_vm4, %v7058_v52, %v5983_v27  ;;  %v755_v43 = vsel %vm742_vm4, 0.0, %v7058_v52 }
 0x1e4   : > { %v5986_v4 = vpop.permute.xlu1 %5985 }
 0x1e5   : > { %v5988_v57 = vunpack.i.h.bf16 %v5986_v4  ;;  %v7060_v58 = vunpack.i.l.bf16 %v5986_v4 }
 0x1e7   : > { %v744_v13 = vsel %vm742_vm4, %v7060_v58, %v5988_v57  ;;  %v756_v2 = vsel %vm742_vm4, 0.0, %v7060_v58 }
 0x1e8   : > { %v759_v14 = vpack.c.bf16 %v756_v2, %v755_v43  ;;  %v760_v10 = vpack.c.bf16 %v744_v13, %v743_v63  ;;  %v5991_v9 = vpop.permute.xlu0 %5990 }
 0x1e9   : > { %v5993_v51 = vunpack.i.h.bf16 %v5991_v9  ;;  %v7072_v46 = vunpack.i.l.bf16 %v5991_v9 }
 0x1ea   : > { %765 = vst.msk [vmem:[#allocation2 + $0x8] sm:$0xff] %vm764_vm5, %v760_v10  ;;  %2373 = vrot.lane.b32.xlu0 %v759_v14, %s6408_s26 }
 0x1eb   : > { %v745_v23 = vsel %vm742_vm4, %v7072_v46, %v5993_v51  ;;  %v757_v25 = vsel %vm742_vm4, 0.0, %v7072_v46 }
 0x1ec   : > { %v5996_v24 = vpop.permute.xlu1 %5995 }
 0x1ed   : > { %v5998_v45 = vunpack.i.h.bf16 %v5996_v24  ;;  %v7074_v18 = vunpack.i.l.bf16 %v5996_v24 }
 0x1ef   : > { %v746_v26 = vsel %vm742_vm4, %v7074_v18, %v5998_v45  ;;  %v758_v49 = vsel %vm742_vm4, 0.0, %v7074_v18 }
 0x1f0   : > { %v761_v53 = vpack.c.bf16 %v758_v49, %v757_v25  ;;  %v762_v30 = vpack.c.bf16 %v746_v26, %v745_v23  ;;  %v6001_v20 = vpop.permute.xlu0 %6000 }
 0x1f1   : > { %v6003_v3 = vunpack.i.h.bf16 %v6001_v20  ;;  %v6002_v40 = vunpack.i.l.bf16 %v6001_v20  ;;  %v7084_v29 = vld [vmem:[#allocation2 + $0x8] sm:$0xff] }
 0x1f2   : > { %767 = vst.msk [vmem:[#allocation2 + $0x18] sm:$0xff] %vm764_vm5, %v762_v30  ;;  %2375 = vrot.lane.b32.xlu1 %v7084_v29, %s6408_s26  ;;  %2377 = vrot.lane.b32.xlu0 %v761_v53, %s6408_s26 }
 0x1f3   : > { %v792_v6 = vsel %vm742_vm4, %v6002_v40, %v6003_v3  ;;  %v804_v47 = vsel %vm742_vm4, 0.0, %v6002_v40 }
 0x1f4   : > { %v6006_v1 = vpop.permute.xlu1 %6005  ;;  %v809_v27 = vsel %vm808_vm6, %v792_v6, 0.0 }
 0x1f5   : > { %v6008_v39 = vunpack.i.h.bf16 %v6006_v1  ;;  %v6007_v36 = vunpack.i.l.bf16 %v6006_v1 }
 0x1f6   : > { %6040 = vrot.lane.b32.xlu0 %v6979_v21, %s6411_s28 }
 0x1f7   : > { %v793_v48 = vsel %vm742_vm4, %v6007_v36, %v6008_v39  ;;  %v805_v56 = vsel %vm742_vm4, 0.0, %v6007_v36 }
 0x1f8   : > { %v810_v4 = vsel %vm808_vm6, %v793_v48, 0.0  ;;  %v813_v57 = vpack.c.bf16 %v805_v56, %v804_v47  ;;  %v6011_v63 = vpop.permute.xlu0 %6010 }
 0x1f9   : > { %v814_v43 = vpack.c.bf16 %v810_v4, %v809_v27  ;;  %v6013_v13 = vunpack.i.h.bf16 %v6011_v63  ;;  %v6012_v2 = vunpack.i.l.bf16 %v6011_v63  ;;  %v7098_v14 = vld [vmem:[#allocation2 + $0x18] sm:$0xff]  ;;  %v6222_v63 = vpack.c.bf16 %v6007_v36, %v6002_v40 }
 0x1fa   : > { %2379 = vrot.lane.b32.xlu1 %v7098_v14, %s6408_s26  ;;  %6050 = vrot.lane.b32.xlu0 %v6995_v16, %s6411_s28 }
 0x1fb   : > { %818 = vst.msk [vmem:[#allocation3 + $0x8] sm:$0xff] %vm764_vm5, %v814_v43  ;;  %v794_v9 = vsel %vm742_vm4, %v6012_v2, %v6013_v13  ;;  %v806_v45 = vsel %vm742_vm4, 0.0, %v6012_v2 }
 0x1fc   : > { %v6016_v21 = vpop.permute.xlu1 %6015  ;;  %v6021_v10 = vpop.permute.xlu0 %6020  ;;  %v811_v49 = vsel %vm808_vm6, %v794_v9, 0.0 }
 0x1fd   : > { %v6018_v51 = vunpack.i.h.bf16 %v6016_v21  ;;  %v6017_v24 = vunpack.i.l.bf16 %v6016_v21  ;;  %v6023_v16 = vunpack.i.h.bf16 %v6021_v10  ;;  %v7112_v26 = vunpack.i.l.bf16 %v6021_v10 }
 0x1fe   : > { %6045 = vrot.lane.b32.xlu1 %v6987_v7, %s6411_s28  ;;  %2474 = vrot.lane.b32.xlu0 %v813_v57, %s6408_s26 }
 0x1ff   : > { %v795_v23 = vsel %vm742_vm4, %v6017_v24, %v6018_v51  ;;  %v807_v25 = vsel %vm742_vm4, 0.0, %v6017_v24  ;;  %v1096_v39 = vsel %vm742_vm4, %v7112_v26, %v6023_v16  ;;  %v1108_v47 = vsel %vm742_vm4, 0.0, %v7112_v26 }
 0x200   : > { %v812_v53 = vsel %vm808_vm6, %v795_v23, 0.0  ;;  %v815_v30 = vpack.c.bf16 %v807_v25, %v806_v45  ;;  %v6026_v20 = vpop.permute.xlu1 %6025  ;;  %v7160_v23 = vld [vmem:[%s8130_s5 + $0x90] sm:$0xff]   ;;  %v6232_v16 = vpack.c.bf16 %v6017_v24, %v6012_v2  ;;  %v6242_v2 = vpack.c.bf16 %v7060_v58, %v7058_v52  ;;  %v7207_v58 = vld [vmem:[%s8130_s5 + $0x18] sm:$0xff]  }
 0x201   : > { %v816_v3 = vpack.c.bf16 %v812_v53, %v811_v49  ;;  %v6028_v1 = vunpack.i.h.bf16 %v6026_v20  ;;  %v7116_v6 = vunpack.i.l.bf16 %v6026_v20  ;;  %v7171_v49 = vld [vmem:[%s8130_s5 + $0x10] sm:$0xff]   ;;  %v6252_v52 = vpack.c.bf16 %v7074_v18, %v7072_v46  ;;  %v7237_v18 = vld [vmem:[%s8130_s5] sm:$0xff]  }
 0x202   : > { %6055 = vrot.lane.b32.xlu1 %v7003_v42, %s6411_s28  ;;  %v2202_v7 = vld [vmem:[#allocation3 + $0x8] sm:$0xff]  ;;  %2478 = vrot.lane.b32.xlu0 %v815_v30, %s6408_s26 }
 0x203   : > { %820 = vst.msk [vmem:[#allocation3 + $0x18] sm:$0xff] %vm764_vm5, %v816_v3  ;;  %v1097_v48 = vsel %vm742_vm4, %v7116_v6, %v6028_v1  ;;  %v1109_v56 = vsel %vm742_vm4, 0.0, %v7116_v6  ;;  %2232 = vmatprep.subr.bf16.mxu0 %v2202_v7  ;;  %2988 = vmatprep.subr.bf16.mxu1 %v2202_v7 }
 0x204   : > { %v1112_v42 = vpack.c.bf16 %v1109_v56, %v1108_v47  ;;  %v1113_v27 = vpack.c.bf16 %v1097_v48, %v1096_v39  ;;  %v6031_v4 = vpop.permute.xlu0 %6030  ;;  %6223 = vmatpush1.bf16.msk.msra.mxu0 %vm7131_vm8, %v6222_v63  ;;  %6228 = vmatpush1.bf16.msk.msra.mxu1 %vm7131_vm8, %v6222_v63  ;;  %v7272_v39 = vld [vmem:[%s8130_s5 + $0xa0] sm:$0xff]  }
 0x205   : > { %v6033_v43 = vunpack.i.h.bf16 %v6031_v4  ;;  %v7143_v13 = vunpack.i.l.bf16 %v6031_v4  ;;  %v7277_v47 = vld [vmem:[%s8130_s5 + $0x20] sm:$0xff]  }
 0x206   : > { %1118 = vst.msk [vmem:[#allocation2 + $0x28] sm:$0xff] %vm764_vm5, %v1113_v27  ;;  %2476 = vrot.lane.b32.xlu1 %v2202_v7, %s6408_s26  ;;  %6060 = vrot.lane.b32.xlu0 %v6930_v12, %s6411_s28 }
 0x207   : > { %v1098_v36 = vsel %vm742_vm4, %v7143_v13, %v6033_v43  ;;  %v1110_v51 = vsel %vm742_vm4, 0.0, %v7143_v13 }
 0x208   : > { %v6036_v21 = vpop.permute.xlu1 %6035 }
 0x209   : > { %v6038_v10 = vunpack.i.h.bf16 %v6036_v21  ;;  %v7145_v9 = vunpack.i.l.bf16 %v6036_v21 }
 0x20a   : > { %v2204_v40 = vld [vmem:[#allocation3 + $0x18] sm:$0xff]  ;;  %6070 = vrot.lane.b32.xlu0 %v6944_v15, %s6411_s28 }
 0x20b   : > { %v1099_v12 = vsel %vm742_vm4, %v7145_v9, %v6038_v10  ;;  %v1111_v45 = vsel %vm742_vm4, 0.0, %v7145_v9  ;;  %2234 = vmatprep.subr.bf16.mxu0 %v2204_v40  ;;  %2990 = vmatprep.subr.bf16.mxu1 %v2204_v40 }
 0x20c   : > { %v1114_v15 = vpack.c.bf16 %v1111_v45, %v1110_v51  ;;  %v1115_v25 = vpack.c.bf16 %v1099_v12, %v1098_v36  ;;  %2480 = vrot.lane.b32.xlu1 %v2204_v40, %s6408_s26  ;;  %6233 = vmatpush1.bf16.msk.msra.mxu0 %vm7131_vm8, %v6232_v16 }
 0x20d   : > { %6238 = vmatpush1.bf16.msk.msra.mxu1 %vm7131_vm8, %v6232_v16  ;;  %2301 = vmatprep.subr.bf16.mxu0 %v7084_v29 }
 0x20e   : > { %1120 = vst.msk [vmem:[#allocation2 + $0x38] sm:$0xff] %vm764_vm5, %v1115_v25  ;;  %3057 = vmatprep.subr.bf16.mxu1 %v7084_v29  ;;  %2746 = vrot.lane.b32.xlu0 %v1112_v42, %s6408_s26  ;;  %v7257_v29 = vld [vmem:[%s8130_s5 + $0x8] sm:$0xff]  }
 0x20f   : > { %5332 = vmatmul.mubr.msk.bf16.vlgmr.msra.gmra.mrb[28].mxu0 %vm2225_vm9, %v7160_v23 }
 0x210   : > { %6065 = vrot.lane.b32.xlu1 %v6937_v28, %s6411_s28  ;;  %6243 = vmatpush1.bf16.msk.msra.mxu0 %vm7131_vm8, %v6242_v2  ;;  %v7195_v28 = vld [vmem:[%s8130_s5 + $0x98] sm:$0xff]  }
 0x211   : > { %5392 = vmatmul.mubr.msk.bf16.vlgmr.msra.gmra.mrb[56].mxu1 %vm2225_vm9, %v7171_v49  ;;  %2303 = vmatprep.subr.bf16.mxu0 %v7098_v14 }
 0x212   : > { %6248 = vmatpush1.bf16.msk.msra.mxu1 %vm7131_vm8, %v6242_v2  ;;  %2750 = vrot.lane.b32.xlu0 %v1114_v15, %s6408_s26 }
 0x213   : > { %3059 = vmatprep.subr.bf16.mxu1 %v7098_v14  ;;  %2274 = vmatprep.mubr.bf16.mxu0 %v6407_v0 }
 0x214   : > { %6075 = vrot.lane.b32.xlu1 %v6951_v37, %s6411_s28  ;;  %6253 = vmatpush1.bf16.msk.msra.mxu0 %vm7131_vm8, %v6252_v52  ;;  %v7213_v37 = vld [vmem:[#allocation2 + $0x28] sm:$0xff] }
 0x215   : > { %3030 = vmatprep.mubr.bf16.mxu1 %v6407_v0  ;;  %v7225_v46 = vld [vmem:[#allocation2 + $0x38] sm:$0xff] }
 0x216   : > { %6258 = vmatpush1.bf16.msk.msra.mxu1 %vm7131_vm8, %v6252_v52  ;;  %6080 = vrot.lane.b32.xlu0 %v7011_v60, %s6411_s28  ;;  %v7230_v60 = vld [vmem:[%s8130_s5 + $0x80] sm:$0xff]  }
 0x217   : > { %5333 = vmatmul.mubr.msk.bf16.gmra.mrb[32].mxu0 %vm2225_vm9, %v7195_v28 }
 0x218   : > { %2748 = vrot.lane.b32.xlu1 %v7213_v37, %s6408_s26  ;;  %2333 = vmatprep.mubr.bf16.mxu0 %v6407_v0 }
 0x219   : > { %5393 = vmatmul.mubr.msk.bf16.gmra.mrb[60].mxu1 %vm2225_vm9, %v7207_v58 }
 0x21a   : > { %6090 = vrot.lane.b32.xlu0 %v7021_v59, %s6411_s28  ;;  %3089 = vmatprep.mubr.bf16.mxu1 %v6407_v0  ;;  %v7250_v59 = vld [vmem:[%s8130_s5 + $0x88] sm:$0xff]  }
 0x21c   : > { %2752 = vrot.lane.b32.xlu1 %v7225_v46, %s6408_s26 }
 0x21f   : > { %5336 = vmatmul.mubr.msk.bf16.vlgmr.msra.gmra.mrb[28].mxu0 %vm2225_vm9, %v7230_v60 }
 0x220   : > { %6085 = vrot.lane.b32.xlu1 %v7017_v19, %s6411_s28  ;;  %2343 = vmatprep.mubr.bf16.mxu0 %v6407_v0 }
 0x221   : > { %5396 = vmatmul.mubr.msk.bf16.vlgmr.msra.gmra.mrb[56].mxu1 %vm2225_vm9, %v7237_v18 }
 0x222   : > { %3099 = vmatprep.mubr.bf16.mxu1 %v6407_v0 }
 0x224   : > { %6095 = vrot.lane.b32.xlu1 %v7025_v34, %s6411_s28 }
 0x227   : > { %5337 = vmatmul.mubr.msk.bf16.gmra.mrb[32].mxu0 %vm2225_vm9, %v7250_v59 }
 0x228   : > { %2426 = vmatprep.mubr.bf16.mxu0 %v6407_v0 }
 0x229   : > { %5397 = vmatmul.mubr.msk.bf16.gmra.mrb[60].mxu1 %vm2225_vm9, %v7257_v29 }
 0x22a   : > { %3163 = vmatprep.mubr.bf16.mxu1 %v6407_v0 }
 0x25c   : > { %v2374_v19 = vpop.permute.xlu0 %2373 }
 0x264   : > { %v2376_v14 = vpop.permute.xlu1 %2375  ;;  %v2378_v24 = vpop.permute.xlu0 %2377 }
 0x265   : > { %2394 = vmatprep.subr.bf16.mxu0 %v2376_v14  ;;  %3131 = vmatprep.subr.bf16.mxu1 %v2376_v14  ;;  %v2382_v34 = vsel %vm447_vm1, %v2374_v19, %v2376_v14  ;;  %v7306_v19 = vld [vmem:[%s8130_s5 + $0xa8] sm:$0xff]  }
 0x266   : > { %2395 = vmatpush1.bf16.msra.mxu0 %v2382_v34  ;;  %3132 = vmatpush1.bf16.msra.mxu1 %v2382_v34  ;;  %v7311_v14 = vld [vmem:[%s8130_s5 + $0x28] sm:$0xff]  }
 0x268   : > { %v6041_v53 = vpop.permute.xlu0 %6040 }
 0x269   : > { %v6043_v20 = vunpack.i.h.bf16 %v6041_v53  ;;  %v7266_v3 = vunpack.i.l.bf16 %v6041_v53 }
 0x26b   : > { %v1145_v48 = vsel %vm742_vm4, %v7266_v3, %v6043_v20  ;;  %v1157_v21 = vsel %vm742_vm4, 0.0, %v7266_v3 }
 0x26c   : > { %v2380_v30 = vpop.permute.xlu1 %2379  ;;  %v6051_v1 = vpop.permute.xlu0 %6050  ;;  %v1161_v36 = vsel %vm808_vm6, %v1145_v48, 0.0 }
 0x26d   : > { %2396 = vmatprep.subr.bf16.mxu0 %v2380_v30  ;;  %3133 = vmatprep.subr.bf16.mxu1 %v2380_v30  ;;  %v2383_v7 = vsel %vm447_vm1, %v2378_v24, %v2380_v30  ;;  %v6053_v63 = vunpack.i.h.bf16 %v6051_v1  ;;  %v7287_v43 = vunpack.i.l.bf16 %v6051_v1 }
 0x26e   : > { %2397 = vmatpush1.bf16.msra.mxu0 %v2383_v7  ;;  %3134 = vmatpush1.bf16.msra.mxu1 %v2383_v7 }
 0x26f   : > { %v1147_v16 = vsel %vm742_vm4, %v7287_v43, %v6053_v63  ;;  %v1159_v24 = vsel %vm742_vm4, 0.0, %v7287_v43 }
 0x270   : > { %v6046_v56 = vpop.permute.xlu1 %6045  ;;  %v2475_v42 = vpop.permute.xlu0 %2474  ;;  %v1163_v30 = vsel %vm808_vm6, %v1147_v16, 0.0 }
 0x271   : > { %v6048_v27 = vunpack.i.h.bf16 %v6046_v56  ;;  %v7281_v4 = vunpack.i.l.bf16 %v6046_v56  ;;  %5344 = vmatmul.mubr.msk.bf16.vlgmr.msra.gmra.mrb[28].mxu0 %vm2225_vm9, %v7272_v39  ;;  %5404 = vmatmul.mubr.msk.bf16.vlgmr.msra.gmra.mrb[56].mxu1 %vm2225_vm9, %v7277_v47 }
 0x272   : > { %2436 = vmatprep.mubr.bf16.mxu0 %v6407_v0  ;;  %3173 = vmatprep.mubr.bf16.mxu1 %v6407_v0 }
 0x273   : > { %v1146_v10 = vsel %vm742_vm4, %v7281_v4, %v6048_v27  ;;  %v1158_v40 = vsel %vm742_vm4, 0.0, %v7281_v4 }
 0x274   : > { %v1162_v51 = vsel %vm808_vm6, %v1146_v10, 0.0  ;;  %v1165_v12 = vpack.c.bf16 %v1158_v40, %v1157_v21  ;;  %v6056_v45 = vpop.permute.xlu1 %6055  ;;  %v2479_v15 = vpop.permute.xlu0 %2478  ;;  %v7336_v40 = vld [vmem:[%s8130_s5 + $0xb0] sm:$0xff]  }
 0x275   : > { %v1166_v25 = vpack.c.bf16 %v1162_v51, %v1161_v36  ;;  %v6058_v2 = vunpack.i.h.bf16 %v6056_v45  ;;  %v7301_v52 = vunpack.i.l.bf16 %v6056_v45 }
 0x276   : > { %2846 = vrot.lane.b32.xlu0 %v1165_v12, %s6408_s26  ;;  %v7344_v12 = vld [vmem:[%s8130_s5 + $0x30] sm:$0xff]  }
 0x277   : > { %1171 = vst.msk [vmem:[#allocation3 + $0x28] sm:$0xff] %vm764_vm5, %v1166_v25  ;;  %v1148_v34 = vsel %vm742_vm4, %v7301_v52, %v6058_v2  ;;  %v1160_v53 = vsel %vm742_vm4, 0.0, %v7301_v52 }
 0x278   : > { %v1164_v20 = vsel %vm808_vm6, %v1148_v34, 0.0  ;;  %v1167_v1 = vpack.c.bf16 %v1160_v53, %v1159_v24  ;;  %v2477_v7 = vpop.permute.xlu1 %2476  ;;  %v6061_v48 = vpop.permute.xlu0 %6060 }
 0x279   : > { %v1168_v56 = vpack.c.bf16 %v1164_v20, %v1163_v30  ;;  %2494 = vmatprep.subr.bf16.mxu0 %v2477_v7  ;;  %3213 = vmatprep.subr.bf16.mxu1 %v2477_v7  ;;  %v2482_v27 = vsel %vm447_vm1, %v2475_v42, %v2477_v7  ;;  %v6063_v36 = vunpack.i.h.bf16 %v6061_v48  ;;  %v7339_v51 = vunpack.i.l.bf16 %v6061_v48 }
 0x27a   : > { %5345 = vmatmul.mubr.msk.bf16.gmra.mrb[32].mxu0 %vm2225_vm9, %v7306_v19  ;;  %5405 = vmatmul.mubr.msk.bf16.gmra.mrb[60].mxu1 %vm2225_vm9, %v7311_v14  ;;  %v6262_v30 = vpack.c.bf16 %v7116_v6, %v7112_v26  ;;  %v7389_v26 = vld [vmem:[%s8130_s5 + $0xb8] sm:$0xff]  }
 0x27b   : > { %1173 = vst.msk [vmem:[#allocation3 + $0x38] sm:$0xff] %vm764_vm5, %v1168_v56  ;;  %2495 = vmatpush1.bf16.msra.mxu0 %v2482_v27  ;;  %3214 = vmatpush1.bf16.msra.mxu1 %v2482_v27  ;;  %v1449_v24 = vsel %vm742_vm4, %v7339_v51, %v6063_v36  ;;  %v1461_v34 = vsel %vm742_vm4, 0.0, %v7339_v51  ;;  %v7399_v6 = vld [vmem:[%s8130_s5 + $0x38] sm:$0xff]  }
 0x27c   : > { %2526 = vmatprep.mubr.bf16.mxu0 %v6407_v0  ;;  %3245 = vmatprep.mubr.bf16.mxu1 %v6407_v0  ;;  %v6071_v63 = vpop.permute.xlu0 %6070 }
 0x27d   : > { %2850 = vrot.lane.b32.xlu0 %v1167_v1, %s6408_s26  ;;  %v6073_v20 = vunpack.i.h.bf16 %v6071_v63  ;;  %v7378_v1 = vunpack.i.l.bf16 %v6071_v63 }
 0x27e   : > { %v2481_v21 = vpop.permute.xlu1 %2480  ;;  %v2560_v10 = vld [vmem:[#allocation3 + $0x28] sm:$0xff] }
 0x27f   : > { %2496 = vmatprep.subr.bf16.mxu0 %v2481_v21  ;;  %3215 = vmatprep.subr.bf16.mxu1 %v2481_v21  ;;  %v2483_v42 = vsel %vm447_vm1, %v2479_v15, %v2481_v21  ;;  %v1463_v63 = vsel %vm742_vm4, 0.0, %v7378_v1 }
 0x280   : > { %2848 = vrot.lane.b32.xlu1 %v2560_v10, %s6408_s26  ;;  %2497 = vmatpush1.bf16.msra.mxu0 %v2483_v42  ;;  %v7346_v45 = vpop.permute.xlu0 %2746 }
 0x281   : > { %3216 = vmatpush1.bf16.msra.mxu1 %v2483_v42  ;;  %2584 = vmatprep.subr.bf16.mxu0 %v7213_v37 }
 0x282   : > { %3295 = vmatprep.subr.bf16.mxu1 %v7213_v37  ;;  %v6066_v15 = vpop.permute.xlu1 %6065  ;;  %v7350_v25 = vld [vmem:[#allocation3 + $0x38] sm:$0xff]  ;;  %6100 = vrot.lane.b32.xlu0 %v6960_v61, %s6411_s28 }
 0x283   : > { %v6068_v16 = vunpack.i.h.bf16 %v6066_v15  ;;  %v7354_v2 = vunpack.i.l.bf16 %v6066_v15  ;;  %5352 = vmatmul.mubr.msk.bf16.vlgmr.msra.gmra.mrb[28].mxu0 %vm2225_vm9, %v7336_v40 }
 0x284   : > { %5412 = vmatmul.mubr.msk.bf16.vlgmr.msra.gmra.mrb[56].mxu1 %vm2225_vm9, %v7344_v12  ;;  %2852 = vrot.lane.b32.xlu1 %v7350_v25, %s6408_s26  ;;  %v7366_v37 = vpop.permute.xlu0 %2750 }
 0x285   : > { %v1450_v61 = vsel %vm742_vm4, %v7354_v2, %v6068_v16  ;;  %v1462_v53 = vsel %vm742_vm4, 0.0, %v7354_v2  ;;  %6263 = vmatpush1.bf16.msk.msra.mxu0 %vm7131_vm8, %v6262_v30  ;;  %6268 = vmatpush1.bf16.msk.msra.mxu1 %vm7131_vm8, %v6262_v30 }
 0x286   : > { %v1465_v7 = vpack.c.bf16 %v1462_v53, %v1461_v34  ;;  %v1466_v48 = vpack.c.bf16 %v1450_v61, %v1449_v24  ;;  %2586 = vmatprep.subr.bf16.mxu0 %v7225_v46  ;;  %3297 = vmatprep.subr.bf16.mxu1 %v7225_v46  ;;  %v6076_v56 = vpop.permute.xlu1 %6075  ;;  %v1451_v46 = vsel %vm742_vm4, %v7378_v1, %v6073_v20  ;;  %v7436_v61 = vld [vmem:[%s8130_s5 + $0xc0] sm:$0xff]  }
 0x287   : > { %v6078_v27 = vunpack.i.h.bf16 %v6076_v56  ;;  %v7382_v21 = vunpack.i.l.bf16 %v6076_v56  ;;  %2536 = vmatprep.mubr.bf16.mxu0 %v6407_v0  ;;  %3255 = vmatprep.mubr.bf16.mxu1 %v6407_v0 }
 0x288   : > { %1471 = vst.msk [vmem:[#allocation2 + $0x48] sm:$0xff] %vm764_vm5, %v1466_v48  ;;  %6105 = vrot.lane.b32.xlu1 %v6967_v38, %s6411_s28  ;;  %6110 = vrot.lane.b32.xlu0 %v6974_v31, %s6411_s28  ;;  %v6272_v31 = vpack.c.bf16 %v7145_v9, %v7143_v13  ;;  %v6081_v24 = vpop.permute.xlu0 %6080 }
 0x289   : > { %v1452_v42 = vsel %vm742_vm4, %v7382_v21, %v6078_v27  ;;  %v1464_v38 = vsel %vm742_vm4, 0.0, %v7382_v21  ;;  %v6083_v9 = vunpack.i.h.bf16 %v6081_v24 }
 0x28a   : > { %6273 = vmatpush1.bf16.msk.msra.mxu0 %vm7131_vm8, %v6272_v31  ;;  %6278 = vmatpush1.bf16.msk.msra.mxu1 %vm7131_vm8, %v6272_v31  ;;  %v1467_v36 = vpack.c.bf16 %v1464_v38, %v1463_v63  ;;  %v1468_v15 = vpack.c.bf16 %v1452_v42, %v1451_v46  ;;  %v7415_v16 = vpop.permute.xlu1 %2748  ;;  %v6282_v63 = vpack.c.bf16 %v7281_v4, %v7266_v3 }
 0x28b   : > { %2666 = vmatprep.subr.bf16.mxu0 %v2560_v10  ;;  %3377 = vmatprep.subr.bf16.mxu1 %v2560_v10  ;;  %v7428_v10 = vunpack.i.l.bf16 %v6081_v24 }
 0x28c   : > { %5353 = vmatmul.mubr.msk.bf16.gmra.mrb[32].mxu0 %vm2225_vm9, %v7389_v26  ;;  %1473 = vst.msk [vmem:[#allocation2 + $0x58] sm:$0xff] %vm764_vm5, %v1468_v15  ;;  %5413 = vmatmul.mubr.msk.bf16.gmra.mrb[60].mxu1 %vm2225_vm9, %v7399_v6  ;;  %v6091_v53 = vpop.permute.xlu0 %6090 }
 0x28d   : > { %6115 = vrot.lane.b32.xlu1 %v6983_v62, %s6411_s28  ;;  %3736 = vrot.lane.b32.xlu0 %v1465_v7, %s6408_s26  ;;  %v7443_v62 = vld [vmem:[%s8130_s5 + $0x40] sm:$0xff]   ;;  %v1498_v30 = vsel %vm742_vm4, %v7428_v10, %v6083_v9  ;;  %v6093_v27 = vunpack.i.h.bf16 %v6091_v53  ;;  %v7454_v46 = vunpack.i.l.bf16 %v6091_v53  ;;  %v1510_v42 = vsel %vm742_vm4, 0.0, %v7428_v10 }
 0x28e   : > { %2616 = vmatprep.mubr.bf16.mxu0 %v6407_v0  ;;  %v7426_v13 = vpop.permute.xlu1 %2752  ;;  %3327 = vmatprep.mubr.bf16.mxu1 %v6407_v0  ;;  %v1514_v3 = vsel %vm808_vm6, %v1498_v30, 0.0  ;;  %v7486_v30 = vld [vmem:[%s8130_s5 + $0xc8] sm:$0xff]  }
 0x28f   : > { %v7431_v34 = vld [vmem:[#allocation2 + $0x48] sm:$0xff]  ;;  %v1500_v9 = vsel %vm742_vm4, %v7454_v46, %v6093_v27 }
 0x291   : > { %3738 = vrot.lane.b32.xlu1 %v7431_v34, %s6408_s26  ;;  %3740 = vrot.lane.b32.xlu0 %v1467_v36, %s6408_s26 }
 0x292   : > { %v6086_v20 = vpop.permute.xlu1 %6085 }
 0x293   : > { %v6088_v7 = vunpack.i.h.bf16 %v6086_v20  ;;  %v7448_v48 = vunpack.i.l.bf16 %v6086_v20  ;;  %v7452_v56 = vld [vmem:[#allocation2 + $0x58] sm:$0xff] }
 0x294   : > { %5360 = vmatmul.mubr.msk.bf16.vlgmr.msra.gmra.mrb[28].mxu0 %vm2225_vm9, %v7436_v61  ;;  %5420 = vmatmul.mubr.msk.bf16.vlgmr.msra.gmra.mrb[56].mxu1 %vm2225_vm9, %v7443_v62 }
 0x295   : > { %6283 = vmatpush1.bf16.msk.msra.mxu0 %vm7131_vm8, %v6282_v63  ;;  %v1499_v38 = vsel %vm742_vm4, %v7448_v48, %v6088_v7  ;;  %v1511_v31 = vsel %vm742_vm4, 0.0, %v7448_v48  ;;  %6288 = vmatpush1.bf16.msk.msra.mxu1 %vm7131_vm8, %v6282_v63  ;;  %v7496_v7 = vld [vmem:[%s8130_s5 + $0x48] sm:$0xff]  }
 0x296   : > { %3742 = vrot.lane.b32.xlu1 %v7452_v56, %s6408_s26  ;;  %v1515_v4 = vsel %vm808_vm6, %v1499_v38, 0.0  ;;  %v1518_v36 = vpack.c.bf16 %v1511_v31, %v1510_v42  ;;  %2668 = vmatprep.subr.bf16.mxu0 %v7350_v25  ;;  %v6096_v15 = vpop.permute.xlu1 %6095  ;;  %v7535_v31 = vld [vmem:[%s8130_s5 + $0x50] sm:$0xff]  }
 0x297   : > { %3379 = vmatprep.subr.bf16.mxu1 %v7350_v25  ;;  %v1519_v24 = vpack.c.bf16 %v1515_v4, %v1514_v3  ;;  %v6098_v53 = vunpack.i.h.bf16 %v6096_v15  ;;  %v7478_v20 = vunpack.i.l.bf16 %v6096_v15  ;;  %6120 = vrot.lane.b32.xlu0 %v7029_v41, %s6411_s28  ;;  %v6292_v25 = vpack.c.bf16 %v7301_v52, %v7287_v43  ;;  %v7568_v4 = vld [vmem:[%s8130_s5 + $0x58] sm:$0xff]  }
 0x298   : > { %2626 = vmatprep.mubr.bf16.mxu0 %v6407_v0  ;;  %3337 = vmatprep.mubr.bf16.mxu1 %v6407_v0  ;;  %v1512_v41 = vsel %vm742_vm4, 0.0, %v7454_v46  ;;  %v1516_v52 = vsel %vm808_vm6, %v1500_v9, 0.0 }
 0x299   : > { %6293 = vmatpush1.bf16.msk.msra.mxu0 %vm7131_vm8, %v6292_v25  ;;  %1524 = vst.msk [vmem:[#allocation3 + $0x48] sm:$0xff] %vm764_vm5, %v1519_v24  ;;  %v1501_v27 = vsel %vm742_vm4, %v7478_v20, %v6098_v53  ;;  %v1513_v43 = vsel %vm742_vm4, 0.0, %v7478_v20  ;;  %6298 = vmatpush1.bf16.msk.msra.mxu1 %vm7131_vm8, %v6292_v25  ;;  %v7619_v25 = vld [vmem:[%s8130_s5 + $0xf0] sm:$0xff]  }
 0x29a   : > { %6125 = vrot.lane.b32.xlu1 %v7033_v54, %s6411_s28  ;;  %v1517_v63 = vsel %vm808_vm6, %v1501_v27, 0.0  ;;  %v1520_v42 = vpack.c.bf16 %v1513_v43, %v1512_v41  ;;  %2766 = vmatprep.subr.bf16.mxu0 %v7415_v16  ;;  %v7528_v54 = vld [vmem:[%s8130_s5 + $0xd0] sm:$0xff]  }
 0x29b   : > { %3459 = vmatprep.subr.bf16.mxu1 %v7415_v16  ;;  %v1521_v38 = vpack.c.bf16 %v1517_v63, %v1516_v52  ;;  %6130 = vrot.lane.b32.xlu0 %v7037_v11, %s6411_s28  ;;  %v7624_v41 = vld [vmem:[%s8130_s5 + $0x70] sm:$0xff]  }
 0x29c   : > { %5361 = vmatmul.mubr.msk.bf16.gmra.mrb[32].mxu0 %vm2225_vm9, %v7486_v30  ;;  %5421 = vmatmul.mubr.msk.bf16.gmra.mrb[60].mxu1 %vm2225_vm9, %v7496_v7 }
 0x29d   : > { %2698 = vmatprep.mubr.bf16.mxu0 %v6407_v0  ;;  %1526 = vst.msk [vmem:[#allocation3 + $0x58] sm:$0xff] %vm764_vm5, %v1521_v38  ;;  %3409 = vmatprep.mubr.bf16.mxu1 %v6407_v0 }
 0x29e   : > { %6135 = vrot.lane.b32.xlu1 %v7041_v8, %s6411_s28  ;;  %v2754_v8 = vsel %vm447_vm1, %v7346_v45, %v7415_v16  ;;  %v2755_v45 = vsel %vm447_vm1, %v7366_v37, %v7426_v13  ;;  %v7562_v16 = vld [vmem:[%s8130_s5 + $0xd8] sm:$0xff]  }
 0x29f   : > { %3815 = vrot.lane.b32.xlu0 %v1518_v36, %s6408_s26 }
 0x2a0   : > { %v7530_v11 = vld [vmem:[#allocation3 + $0x48] sm:$0xff] }
 0x2a2   : > { %3817 = vrot.lane.b32.xlu1 %v7530_v11, %s6408_s26 }
 0x2a3   : > { %3819 = vrot.lane.b32.xlu0 %v1520_v42, %s6408_s26 }
 0x2a4   : > { %5368 = vmatmul.mubr.msk.bf16.vlgmr.msra.gmra.mrb[28].mxu0 %vm2225_vm9, %v7528_v54  ;;  %5428 = vmatmul.mubr.msk.bf16.vlgmr.msra.gmra.mrb[56].mxu1 %vm2225_vm9, %v7535_v31  ;;  %v7547_v3 = vld [vmem:[#allocation3 + $0x58] sm:$0xff] }
 0x2a5   : > { %2767 = vmatpush1.bf16.msra.mxu0 %v2754_v8  ;;  %3460 = vmatpush1.bf16.msra.mxu1 %v2754_v8 }
 0x2a6   : > { %2768 = vmatprep.subr.bf16.mxu0 %v7426_v13  ;;  %3461 = vmatprep.subr.bf16.mxu1 %v7426_v13 }
 0x2a7   : > { %3821 = vrot.lane.b32.xlu1 %v7547_v3, %s6408_s26  ;;  %6140 = vrot.lane.b32.xlu0 %v6991_v17, %s6411_s28  ;;  %v7585_v17 = vld [vmem:[%s8130_s5 + $0xe0] sm:$0xff]  }
 0x2a8   : > { %2708 = vmatprep.mubr.bf16.mxu0 %v6407_v0  ;;  %3419 = vmatprep.mubr.bf16.mxu1 %v6407_v0 }
 0x2a9   : > { %2769 = vmatpush1.bf16.msra.mxu0 %v2755_v45  ;;  %3462 = vmatpush1.bf16.msra.mxu1 %v2755_v45 }
 0x2ab   : > { %6145 = vrot.lane.b32.xlu1 %v6999_v22, %s6411_s28  ;;  %6150 = vrot.lane.b32.xlu0 %v7007_v50, %s6411_s28  ;;  %v7590_v22 = vld [vmem:[%s8130_s5 + $0x60] sm:$0xff]   ;;  %v7601_v50 = vld [vmem:[%s8130_s5 + $0xe8] sm:$0xff]  }
 0x2ac   : > { %5369 = vmatmul.mubr.msk.bf16.gmra.mrb[32].mxu0 %vm2225_vm9, %v7562_v16  ;;  %5429 = vmatmul.mubr.msk.bf16.gmra.mrb[60].mxu1 %vm2225_vm9, %v7568_v4 }
 0x2ad   : > { %2798 = vmatprep.mubr.bf16.mxu0 %v6407_v0  ;;  %3491 = vmatprep.mubr.bf16.mxu1 %v6407_v0 }
 0x2af   : > { %6155 = vrot.lane.b32.xlu1 %v7014_v5, %s6411_s28  ;;  %v7606_v5 = vld [vmem:[%s8130_s5 + $0x68] sm:$0xff]  }
 0x2b4   : > { %5376 = vmatmul.mubr.msk.bf16.vlgmr.msra.gmra.mrb[28].mxu0 %vm2225_vm9, %v7585_v17  ;;  %5436 = vmatmul.mubr.msk.bf16.vlgmr.msra.gmra.mrb[56].mxu1 %vm2225_vm9, %v7590_v22 }
 0x2b5   : > { %2808 = vmatprep.mubr.bf16.mxu0 %v6407_v0  ;;  %3501 = vmatprep.mubr.bf16.mxu1 %v6407_v0 }
 0x2bc   : > { %5377 = vmatmul.mubr.msk.bf16.gmra.mrb[32].mxu0 %vm2225_vm9, %v7601_v50  ;;  %5437 = vmatmul.mubr.msk.bf16.gmra.mrb[60].mxu1 %vm2225_vm9, %v7606_v5 }
 0x2bd   : > { %2898 = vmatprep.mubr.bf16.mxu0 %v6407_v0  ;;  %3573 = vmatprep.mubr.bf16.mxu1 %v6407_v0 }
 0x2e8   : > { %v2847_v37 = vpop.permute.xlu0 %2846 }
 0x2ef   : > { %v2851_v13 = vpop.permute.xlu0 %2850 }
 0x2f2   : > { %v2849_v36 = vpop.permute.xlu1 %2848 }
 0x2f3   : > { %2866 = vmatprep.subr.bf16.mxu0 %v2849_v36  ;;  %3541 = vmatprep.subr.bf16.mxu1 %v2849_v36  ;;  %v2854_v15 = vsel %vm447_vm1, %v2847_v37, %v2849_v36  ;;  %v6302_v37 = vpack.c.bf16 %v7354_v2, %v7339_v51 }
 0x2f4   : > { %2867 = vmatpush1.bf16.msra.mxu0 %v2854_v15  ;;  %3542 = vmatpush1.bf16.msra.mxu1 %v2854_v15  ;;  %v6101_v24 = vpop.permute.xlu0 %6100 }
 0x2f5   : > { %v6103_v27 = vunpack.i.h.bf16 %v6101_v24  ;;  %v7626_v43 = vunpack.i.l.bf16 %v6101_v24 }
 0x2f6   : > { %v2853_v9 = vpop.permute.xlu1 %2852 }
 0x2f7   : > { %2868 = vmatprep.subr.bf16.mxu0 %v2853_v9  ;;  %3543 = vmatprep.subr.bf16.mxu1 %v2853_v9  ;;  %v2855_v53 = vsel %vm447_vm1, %v2851_v13, %v2853_v9  ;;  %v1802_v8 = vsel %vm742_vm4, %v7626_v43, %v6103_v27  ;;  %v1814_v45 = vsel %vm742_vm4, 0.0, %v7626_v43  ;;  %v6307_v13 = vpack.c.bf16 %v7448_v48, %v7428_v10 }
 0x2f8   : > { %2869 = vmatpush1.bf16.msra.mxu0 %v2855_v53  ;;  %3544 = vmatpush1.bf16.msra.mxu1 %v2855_v53 }
 0x2f9   : > { %3610 = vmatprep.subr.bf16.mxu1 %v7431_v34  ;;  %4202 = vmatprep.subr.bf16.mxu0 %v7530_v11 }
 0x2fa   : > { %v6106_v52 = vpop.permute.xlu1 %6105  ;;  %v6111_v63 = vpop.permute.xlu0 %6110 }
 0x2fb   : > { %v6108_v42 = vunpack.i.h.bf16 %v6106_v52  ;;  %v7630_v38 = vunpack.i.l.bf16 %v6106_v52  ;;  %5384 = vmatmul.mubr.msk.bf16.vlgmr.msra.gmra.mrb[28].mxu0 %vm2225_vm9, %v7619_v25  ;;  %5444 = vmatmul.mubr.msk.bf16.vlgmr.msra.gmra.mrb[56].mxu1 %vm2225_vm9, %v7624_v41  ;;  %v6113_v24 = vunpack.i.h.bf16 %v6111_v63  ;;  %v7652_v9 = vunpack.i.l.bf16 %v6111_v63  ;;  %v7665_v52 = vld [vmem:[%s8130_s5 + $0xf8] sm:$0xff]  }
 0x2fc   : > { %6303 = vmatpush1.bf16.msk.msra.mxu1 %vm7131_vm8, %v6302_v37  ;;  %6308 = vmatpush1.bf16.msk.msra.mxu0 %vm7131_vm8, %v6307_v13  ;;  %v7670_v63 = vld [vmem:[%s8130_s5 + $0x78] sm:$0xff]  }
 0x2fd   : > { %v1803_v36 = vsel %vm742_vm4, %v7630_v38, %v6108_v42  ;;  %v1815_v15 = vsel %vm742_vm4, 0.0, %v7630_v38  ;;  %3612 = vmatprep.subr.bf16.mxu1 %v7452_v56  ;;  %4204 = vmatprep.subr.bf16.mxu0 %v7547_v3  ;;  %v6312_v42 = vpack.c.bf16 %v7382_v21, %v7378_v1 }
 0x2fe   : > { %v1818_v51 = vpack.c.bf16 %v1815_v15, %v1814_v45  ;;  %v1819_v2 = vpack.c.bf16 %v1803_v36, %v1802_v8  ;;  %2908 = vmatprep.mubr.bf16.mxu0 %v6407_v0  ;;  %3583 = vmatprep.mubr.bf16.mxu1 %v6407_v0  ;;  %v6317_v8 = vpack.c.bf16 %v7478_v20, %v7454_v46  ;;  %v1816_v36 = vsel %vm742_vm4, 0.0, %v7652_v9 }
 0x2ff   : > { %v6116_v53 = vpop.permute.xlu1 %6115  ;;  %v7660_v27 = vpop.permute.xlu0 %3736  ;;  %v1804_v45 = vsel %vm742_vm4, %v7652_v9, %v6113_v24 }
 0x300   : > { %v6118_v10 = vunpack.i.h.bf16 %v6116_v53  ;;  %v7658_v48 = vunpack.i.l.bf16 %v6116_v53  ;;  %1824 = vst.msk [vmem:[#allocation2 + $0x68] sm:$0xff] %vm764_vm5, %v1819_v2  ;;  %6313 = vmatpush1.bf16.msk.msra.mxu1 %vm7131_vm8, %v6312_v42  ;;  %6318 = vmatpush1.bf16.msk.msra.mxu0 %vm7131_vm8, %v6317_v8 }
 0x301   : > { %3671 = vmatprep.subr.bf16.mxu1 %v7530_v11  ;;  %4255 = vmatprep.subr.bf16.mxu0 %v7431_v34 }
 0x302   : > { %v1805_v15 = vsel %vm742_vm4, %v7658_v48, %v6118_v10  ;;  %v1817_v1 = vsel %vm742_vm4, 0.0, %v7658_v48  ;;  %4024 = vrot.lane.b32.xlu0 %v1818_v51, %s6408_s26 }
 0x303   : > { %v1820_v21 = vpack.c.bf16 %v1817_v1, %v1816_v36  ;;  %v1821_v46 = vpack.c.bf16 %v1805_v15, %v1804_v45  ;;  %v7691_v20 = vpop.permute.xlu1 %3738  ;;  %5385 = vmatmul.mubr.msk.bf16.gmra.mrb[32].mxu0 %vm2225_vm9, %v7665_v52  ;;  %5445 = vmatmul.mubr.msk.bf16.gmra.mrb[60].mxu1 %vm2225_vm9, %v7670_v63  ;;  %v7698_v24 = vpop.permute.xlu0 %3740 }
 0x304   : > { %3642 = vmatprep.mubr.bf16.mxu1 %v6407_v0  ;;  %4234 = vmatprep.mubr.bf16.mxu0 %v6407_v0 }
 0x305   : > { %1826 = vst.msk [vmem:[#allocation2 + $0x78] sm:$0xff] %vm764_vm5, %v1821_v46 }
 0x306   : > { %4028 = vrot.lane.b32.xlu0 %v1820_v21, %s6408_s26 }
 0x307   : > { %v7706_v11 = vld [vmem:[#allocation2 + $0x68] sm:$0xff] }
 0x308   : > { %v7704_v34 = vpop.permute.xlu1 %3742  ;;  %4026 = vrot.lane.b32.xlu1 %v7706_v11, %s6408_s26 }
 0x309   : > { %v6121_v51 = vpop.permute.xlu0 %6120 }
 0x30a   : > { %v6123_v2 = vunpack.i.h.bf16 %v6121_v51  ;;  %v7710_v53 = vunpack.i.l.bf16 %v6121_v51  ;;  %6160 = vrot.lane.b32.xlu0 %v7045_v33, %s6411_s28 }
 0x30b   : > { %5446 = vmatmul.mubr.msk.bf16.vlgmr.msra.gmra.mrb[56].mxu1 %vm2225_vm9, %v7230_v60  ;;  %5462 = vmatmul.mubr.msk.bf16.vlgmr.msra.gmra.mrb[36].mxu0 %vm2225_vm9, %v7171_v49 }
 0x30c   : > { %v6126_v10 = vpop.permute.xlu1 %6125  ;;  %v7718_v45 = vld [vmem:[#allocation2 + $0x78] sm:$0xff]  ;;  %v1851_v36 = vsel %vm742_vm4, %v7710_v53, %v6123_v2  ;;  %6323 = vmatpush1.bf16.msk.msra.mxu1 %vm7131_vm8, %v6307_v13  ;;  %6328 = vmatpush1.bf16.msk.msra.mxu0 %vm7131_vm8, %v6302_v37  ;;  %v1863_v33 = vsel %vm742_vm4, 0.0, %v7710_v53 }
 0x30d   : > { %v6128_v15 = vunpack.i.h.bf16 %v6126_v10  ;;  %v7722_v1 = vunpack.i.l.bf16 %v6126_v10  ;;  %4030 = vrot.lane.b32.xlu1 %v7718_v45, %s6408_s26  ;;  %3673 = vmatprep.subr.bf16.mxu1 %v7547_v3  ;;  %v6131_v49 = vpop.permute.xlu0 %6130  ;;  %v1867_v37 = vsel %vm808_vm6, %v1851_v36, 0.0 }
 0x30e   : > { %4257 = vmatprep.subr.bf16.mxu0 %v7452_v56  ;;  %v6133_v13 = vunpack.i.h.bf16 %v6131_v49  ;;  %v7738_v46 = vunpack.i.l.bf16 %v6131_v49  ;;  %3652 = vmatprep.mubr.bf16.mxu1 %v6407_v0 }
 0x30f   : > { %v1852_v60 = vsel %vm742_vm4, %v7722_v1, %v6128_v15  ;;  %v1864_v21 = vsel %vm742_vm4, 0.0, %v7722_v1  ;;  %4244 = vmatprep.mubr.bf16.mxu0 %v6407_v0  ;;  %6170 = vrot.lane.b32.xlu0 %v7053_v44, %s6411_s28 }
 0x310   : > { %v1868_v51 = vsel %vm808_vm6, %v1852_v60, 0.0  ;;  %v1871_v2 = vpack.c.bf16 %v1864_v21, %v1863_v33  ;;  %v6136_v3 = vpop.permute.xlu1 %6135  ;;  %6333 = vmatpush1.bf16.msk.msra.mxu1 %vm7131_vm8, %v6317_v8  ;;  %6338 = vmatpush1.bf16.msk.msra.mxu0 %vm7131_vm8, %v6312_v42  ;;  %v1853_v56 = vsel %vm742_vm4, %v7738_v46, %v6133_v13  ;;  %v1865_v44 = vsel %vm742_vm4, 0.0, %v7738_v46 }
 0x311   : > { %v1872_v10 = vpack.c.bf16 %v1868_v51, %v1867_v37  ;;  %v6138_v15 = vunpack.i.h.bf16 %v6136_v3  ;;  %v7752_v36 = vunpack.i.l.bf16 %v6136_v3  ;;  %6165 = vrot.lane.b32.xlu1 %v7049_v35, %s6411_s28  ;;  %3750 = vmatprep.subr.bf16.mxu1 %v7691_v20  ;;  %v7757_v33 = vpop.permute.xlu0 %3815  ;;  %v1869_v35 = vsel %vm808_vm6, %v1853_v56, 0.0 }
 0x312   : > { %4308 = vmatprep.subr.bf16.mxu0 %v7691_v20 }
 0x313   : > { %1877 = vst.msk [vmem:[#allocation3 + $0x68] sm:$0xff] %vm764_vm5, %v1872_v10  ;;  %v1854_v42 = vsel %vm742_vm4, %v7752_v36, %v6138_v15  ;;  %v1866_v8 = vsel %vm742_vm4, 0.0, %v7752_v36  ;;  %5447 = vmatmul.mubr.msk.bf16.gmra.mrb[60].mxu1 %vm2225_vm9, %v7250_v59  ;;  %5463 = vmatmul.mubr.msk.bf16.gmra.mrb[40].mxu0 %vm2225_vm9, %v7207_v58 }
 0x314   : > { %v7767_v49 = vpop.permute.xlu1 %3817  ;;  %v1870_v60 = vsel %vm808_vm6, %v1854_v42, 0.0  ;;  %v1873_v21 = vpack.c.bf16 %v1866_v8, %v1865_v44  ;;  %4103 = vrot.lane.b32.xlu0 %v1871_v2, %s6408_s26  ;;  %3703 = vmatprep.mubr.bf16.mxu1 %v6407_v0 }
 0x315   : > { %v1874_v13 = vpack.c.bf16 %v1870_v60, %v1869_v35  ;;  %6175 = vrot.lane.b32.xlu1 %v7056_v55, %s6411_s28  ;;  %v7779_v37 = vpop.permute.xlu0 %3819  ;;  %4287 = vmatprep.mubr.bf16.mxu0 %v6407_v0  ;;  %v3744_v55 = vsel %vm447_vm1, %v7660_v27, %v7691_v20 }
 0x317   : > { %1879 = vst.msk [vmem:[#allocation3 + $0x78] sm:$0xff] %vm764_vm5, %v1874_v13 }
 0x318   : > { %4107 = vrot.lane.b32.xlu0 %v1873_v21, %s6408_s26 }
 0x319   : > { %v7783_v58 = vpop.permute.xlu1 %3821  ;;  %v6141_v51 = vpop.permute.xlu0 %6140 }
 0x31a   : > { %v7786_v59 = vld [vmem:[#allocation3 + $0x68] sm:$0xff]  ;;  %v6143_v2 = vunpack.i.h.bf16 %v6141_v51  ;;  %v7790_v3 = vunpack.i.l.bf16 %v6141_v51 }
 0x31b   : > { %4105 = vrot.lane.b32.xlu1 %v7786_v59, %s6408_s26  ;;  %5448 = vmatmul.mubr.msk.bf16.vlgmr.msra.gmra.mrb[56].mxu1 %vm2225_vm9, %v7160_v23 }
 0x31c   : > { %5464 = vmatmul.mubr.msk.bf16.vlgmr.msra.gmra.mrb[36].mxu0 %vm2225_vm9, %v7237_v18  ;;  %3751 = vmatpush1.bf16.msra.mxu1 %v3744_v55  ;;  %v2115_v23 = vsel %vm742_vm4, %v7790_v3, %v6143_v2  ;;  %v2127_v27 = vsel %vm742_vm4, 0.0, %v7790_v3  ;;  %v3745_v18 = vsel %vm447_vm1, %v7698_v24, %v7704_v34 }
 0x31d   : > { %v6146_v10 = vpop.permute.xlu1 %6145  ;;  %4309 = vmatpush1.bf16.msra.mxu0 %v3744_v55  ;;  %3752 = vmatprep.subr.bf16.mxu1 %v7704_v34  ;;  %v6151_v44 = vpop.permute.xlu0 %6150 }
 0x31e   : > { %v6148_v15 = vunpack.i.h.bf16 %v6146_v10  ;;  %v7799_v56 = vunpack.i.l.bf16 %v6146_v10  ;;  %4310 = vmatprep.subr.bf16.mxu0 %v7704_v34  ;;  %v7807_v20 = vld [vmem:[#allocation3 + $0x78] sm:$0xff]  ;;  %3713 = vmatprep.mubr.bf16.mxu1 %v6407_v0  ;;  %v6153_v35 = vunpack.i.h.bf16 %v6151_v44  ;;  %v7820_v60 = vunpack.i.l.bf16 %v6151_v44 }
 0x31f   : > { %4297 = vmatprep.mubr.bf16.mxu0 %v6407_v0  ;;  %4109 = vrot.lane.b32.xlu1 %v7807_v20, %s6408_s26 }
 0x320   : > { %v2116_v42 = vsel %vm742_vm4, %v7799_v56, %v6148_v15  ;;  %v2128_v8 = vsel %vm742_vm4, 0.0, %v7799_v56  ;;  %3753 = vmatpush1.bf16.msra.mxu1 %v3745_v18  ;;  %v2117_v2 = vsel %vm742_vm4, %v7820_v60, %v6153_v35  ;;  %v2129_v55 = vsel %vm742_vm4, 0.0, %v7820_v60 }
 0x321   : > { %v2131_v21 = vpack.c.bf16 %v2128_v8, %v2127_v27  ;;  %v2132_v13 = vpack.c.bf16 %v2116_v42, %v2115_v23  ;;  %v6156_v51 = vpop.permute.xlu1 %6155  ;;  %4311 = vmatpush1.bf16.msra.mxu0 %v3745_v18  ;;  %3829 = vmatprep.subr.bf16.mxu1 %v7767_v49 }
 0x322   : > { %v6158_v24 = vunpack.i.h.bf16 %v6156_v51  ;;  %v7822_v34 = vunpack.i.l.bf16 %v6156_v51  ;;  %4369 = vmatprep.subr.bf16.mxu0 %v7767_v49 }
 0x323   : > { %2137 = vst.msk [vmem:[#allocation2 + $0x88] sm:$0xff] %vm764_vm5, %v2132_v13  ;;  %4808 = vrot.lane.b32.xlu0 %v2131_v21, %s6408_s26  ;;  %5449 = vmatmul.mubr.msk.bf16.gmra.mrb[60].mxu1 %vm2225_vm9, %v7195_v28  ;;  %v3823_v28 = vsel %vm447_vm1, %v7757_v33, %v7767_v49 }
 0x324   : > { %v2118_v10 = vsel %vm742_vm4, %v7822_v34, %v6158_v24  ;;  %v2130_v15 = vsel %vm742_vm4, 0.0, %v7822_v34  ;;  %5465 = vmatmul.mubr.msk.bf16.gmra.mrb[40].mxu0 %vm2225_vm9, %v7257_v29  ;;  %3782 = vmatprep.mubr.bf16.mxu1 %v6407_v0 }
 0x325   : > { %v2133_v44 = vpack.c.bf16 %v2130_v15, %v2129_v55  ;;  %v2134_v23 = vpack.c.bf16 %v2118_v10, %v2117_v2  ;;  %4340 = vmatprep.mubr.bf16.mxu0 %v6407_v0 }
 0x327   : > { %2139 = vst.msk [vmem:[#allocation2 + $0x98] sm:$0xff] %vm764_vm5, %v2134_v23  ;;  %4812 = vrot.lane.b32.xlu0 %v2133_v44, %s6408_s26  ;;  %v2195_v44 = vld [vmem:[%s8131_s6 + $0x10] sm:$0xff]  ;;  %v6382_v23 = vpack.c.bf16 %v7799_v56, %v7790_v3  ;;  %v6211_v3 = vld [vmem:[%s8130_s5 + $0x80] sm:$0xff]  }
 0x32a   : > { %v7844_v27 = vld [vmem:[#allocation2 + $0x88] sm:$0xff] }
 0x32b   : > { %4810 = vrot.lane.b32.xlu1 %v7844_v27, %s6408_s26  ;;  %5450 = vmatmul.mubr.msk.bf16.vlgmr.msra.gmra.mrb[56].mxu1 %vm2225_vm9, %v7272_v39  ;;  %v3824_v39 = vsel %vm447_vm1, %v7779_v37, %v7783_v58 }
 0x32c   : > { %5466 = vmatmul.mubr.msk.bf16.vlgmr.msra.gmra.mrb[36].mxu0 %vm2225_vm9, %v7277_v47  ;;  %3830 = vmatpush1.bf16.msra.mxu1 %v3823_v28  ;;  %v6342_v47 = vpack.c.bf16 %v7630_v38, %v7626_v43 }
 0x32d   : > { %4370 = vmatpush1.bf16.msra.mxu0 %v3823_v28  ;;  %3831 = vmatprep.subr.bf16.mxu1 %v7783_v58 }
 0x32e   : > { %4371 = vmatprep.subr.bf16.mxu0 %v7783_v58  ;;  %v7857_v29 = vld [vmem:[#allocation2 + $0x98] sm:$0xff]  ;;  %3792 = vmatprep.mubr.bf16.mxu1 %v6407_v0 }
 0x32f   : > { %4814 = vrot.lane.b32.xlu1 %v7857_v29, %s6408_s26  ;;  %4350 = vmatprep.mubr.bf16.mxu0 %v6407_v0 }
 0x330   : > { %3832 = vmatpush1.bf16.msra.mxu1 %v3824_v39 }
 0x331   : > { %4372 = vmatpush1.bf16.msra.mxu0 %v3824_v39  ;;  %3898 = vmatprep.subr.bf16.mxu1 %v7706_v11 }
 0x332   : > { %4430 = vmatprep.subr.bf16.mxu0 %v7706_v11 }
 0x333   : > { %5451 = vmatmul.mubr.msk.bf16.gmra.mrb[60].mxu1 %vm2225_vm9, %v7306_v19  ;;  %v6352_v19 = vpack.c.bf16 %v7658_v48, %v7652_v9 }
 0x334   : > { %5467 = vmatmul.mubr.msk.bf16.gmra.mrb[40].mxu0 %vm2225_vm9, %v7311_v14  ;;  %3861 = vmatprep.mubr.bf16.mxu1 %v6407_v0  ;;  %v6362_v14 = vpack.c.bf16 %v7722_v1, %v7710_v53 }
 0x335   : > { %4401 = vmatprep.mubr.bf16.mxu0 %v6407_v0 }
 0x33b   : > { %5452 = vmatmul.mubr.msk.bf16.vlgmr.msra.gmra.mrb[56].mxu1 %vm2225_vm9, %v7336_v40  ;;  %v6372_v40 = vpack.c.bf16 %v7752_v36, %v7738_v46 }
 0x33c   : > { %5468 = vmatmul.mubr.msk.bf16.vlgmr.msra.gmra.mrb[36].mxu0 %vm2225_vm9, %v7344_v12  ;;  %6343 = vmatpush1.bf16.msk.msra.mxu1 %vm7131_vm8, %v6342_v47 }
 0x33d   : > { %6348 = vmatpush1.bf16.msk.msra.mxu0 %vm7131_vm8, %v6342_v47  ;;  %3900 = vmatprep.subr.bf16.mxu1 %v7718_v45 }
 0x33e   : > { %4432 = vmatprep.subr.bf16.mxu0 %v7718_v45  ;;  %3871 = vmatprep.mubr.bf16.mxu1 %v6407_v0 }
 0x33f   : > { %4411 = vmatprep.mubr.bf16.mxu0 %v6407_v0 }
 0x340   : > { %6353 = vmatpush1.bf16.msk.msra.mxu1 %vm7131_vm8, %v6352_v19 }
 0x341   : > { %6358 = vmatpush1.bf16.msk.msra.mxu0 %vm7131_vm8, %v6352_v19  ;;  %3959 = vmatprep.subr.bf16.mxu1 %v7786_v59  ;;  %v6214_v19 = vld [vmem:[%s8130_s5 + $0x98] sm:$0xff]  }
 0x342   : > { %4491 = vmatprep.subr.bf16.mxu0 %v7786_v59 }
 0x343   : > { %5453 = vmatmul.mubr.msk.bf16.gmra.mrb[60].mxu1 %vm2225_vm9, %v7389_v26 }
 0x344   : > { %5469 = vmatmul.mubr.msk.bf16.gmra.mrb[40].mxu0 %vm2225_vm9, %v7399_v6  ;;  %3930 = vmatprep.mubr.bf16.mxu1 %v6407_v0 }
 0x345   : > { %4462 = vmatprep.mubr.bf16.mxu0 %v6407_v0 }
 0x34b   : > { %5454 = vmatmul.mubr.msk.bf16.vlgmr.msra.gmra.mrb[56].mxu1 %vm2225_vm9, %v7436_v61 }
 0x34c   : > { %5470 = vmatmul.mubr.msk.bf16.vlgmr.msra.gmra.mrb[36].mxu0 %vm2225_vm9, %v7443_v62  ;;  %6363 = vmatpush1.bf16.msk.msra.mxu1 %vm7131_vm8, %v6362_v14 }
 0x34d   : > { %6368 = vmatpush1.bf16.msk.msra.mxu0 %vm7131_vm8, %v6362_v14  ;;  %3961 = vmatprep.subr.bf16.mxu1 %v7807_v20  ;;  %v6215_v14 = vld [vmem:[%s8130_s5 + $0xa0] sm:$0xff]  }
 0x34e   : > { %4493 = vmatprep.subr.bf16.mxu0 %v7807_v20  ;;  %3940 = vmatprep.mubr.bf16.mxu1 %v6407_v0 }
 0x34f   : > { %4472 = vmatprep.mubr.bf16.mxu0 %v6407_v0 }
 0x350   : > { %6373 = vmatpush1.bf16.msk.msra.mxu1 %vm7131_vm8, %v6372_v40 }
 0x351   : > { %6378 = vmatpush1.bf16.msk.msra.mxu0 %vm7131_vm8, %v6372_v40 }
 0x353   : > { %5455 = vmatmul.mubr.msk.bf16.gmra.mrb[60].mxu1 %vm2225_vm9, %v7486_v30 }
 0x354   : > { %5471 = vmatmul.mubr.msk.bf16.gmra.mrb[40].mxu0 %vm2225_vm9, %v7496_v7  ;;  %3991 = vmatprep.mubr.bf16.mxu1 %v6407_v0 }
 0x355   : > { %4523 = vmatprep.mubr.bf16.mxu0 %v6407_v0 }
 0x35b   : > { %5456 = vmatmul.mubr.msk.bf16.vlgmr.msra.gmra.mrb[56].mxu1 %vm2225_vm9, %v7528_v54 }
 0x35c   : > { %5472 = vmatmul.mubr.msk.bf16.vlgmr.msra.gmra.mrb[36].mxu0 %vm2225_vm9, %v7535_v31  ;;  %4001 = vmatprep.mubr.bf16.mxu1 %v6407_v0 }
 0x35d   : > { %4533 = vmatprep.mubr.bf16.mxu0 %v6407_v0 }
 0x363   : > { %5457 = vmatmul.mubr.msk.bf16.gmra.mrb[60].mxu1 %vm2225_vm9, %v7562_v16 }
 0x364   : > { %5473 = vmatmul.mubr.msk.bf16.gmra.mrb[40].mxu0 %vm2225_vm9, %v7568_v4  ;;  %4070 = vmatprep.mubr.bf16.mxu1 %v6407_v0 }
 0x365   : > { %4584 = vmatprep.mubr.bf16.mxu0 %v6407_v0 }
 0x374   : > { %v4025_v12 = vpop.permute.xlu0 %4024 }
 0x378   : > { %v4029_v26 = vpop.permute.xlu0 %4028 }
 0x37a   : > { %v4027_v6 = vpop.permute.xlu1 %4026 }
 0x37b   : > { %4038 = vmatprep.subr.bf16.mxu1 %v4027_v6  ;;  %4552 = vmatprep.subr.bf16.mxu0 %v4027_v6  ;;  %v4032_v61 = vsel %vm447_vm1, %v4025_v12, %v4027_v6 }
 0x37c   : > { %4039 = vmatpush1.bf16.msra.mxu1 %v4032_v61  ;;  %4553 = vmatpush1.bf16.msra.mxu0 %v4032_v61  ;;  %v6161_v62 = vpop.permute.xlu0 %6160 }
 0x37d   : > { %v6163_v7 = vunpack.i.h.bf16 %v6161_v62  ;;  %v7941_v54 = vunpack.i.l.bf16 %v6161_v62 }
 0x37f   : > { %v4031_v30 = vpop.permute.xlu1 %4030  ;;  %v2164_v4 = vsel %vm742_vm4, %v7941_v54, %v6163_v7  ;;  %v2176_v53 = vsel %vm742_vm4, 0.0, %v7941_v54 }
 0x380   : > { %4040 = vmatprep.subr.bf16.mxu1 %v4031_v30  ;;  %4554 = vmatprep.subr.bf16.mxu0 %v4031_v30  ;;  %v4033_v31 = vsel %vm447_vm1, %v4029_v26, %v4031_v30  ;;  %v6216_v26 = vld [vmem:[%s8130_s5 + $0xa8] sm:$0xff]  }
 0x381   : > { %4041 = vmatpush1.bf16.msra.mxu1 %v4033_v31  ;;  %4555 = vmatpush1.bf16.msra.mxu0 %v4033_v31  ;;  %v6171_v16 = vpop.permute.xlu0 %6170 }
 0x382   : > { %v6173_v48 = vunpack.i.h.bf16 %v6171_v16  ;;  %v7952_v11 = vunpack.i.l.bf16 %v6171_v16 }
 0x383   : > { %v6166_v43 = vpop.permute.xlu1 %6165 }
 0x384   : > { %v6168_v38 = vunpack.i.h.bf16 %v6166_v43  ;;  %v7946_v9 = vunpack.i.l.bf16 %v6166_v43  ;;  %5458 = vmatmul.mubr.msk.bf16.vlgmr.msra.gmra.mrb[56].mxu1 %vm2225_vm9, %v7585_v17  ;;  %5474 = vmatmul.mubr.msk.bf16.vlgmr.msra.gmra.mrb[36].mxu0 %vm2225_vm9, %v7590_v22  ;;  %v2180_v17 = vsel %vm808_vm6, %v2164_v4, 0.0  ;;  %v2166_v49 = vsel %vm742_vm4, %v7952_v11, %v6173_v48  ;;  %v6217_v48 = vld [vmem:[%s8130_s5 + $0xb0] sm:$0xff]  }
 0x385   : > { %4080 = vmatprep.mubr.bf16.mxu1 %v6407_v0  ;;  %4594 = vmatprep.mubr.bf16.mxu0 %v6407_v0  ;;  %v2178_v59 = vsel %vm742_vm4, 0.0, %v7952_v11  ;;  %v2182_v42 = vsel %vm808_vm6, %v2166_v49, 0.0 }
 0x386   : > { %v2165_v45 = vsel %vm742_vm4, %v7946_v9, %v6168_v38  ;;  %v2177_v1 = vsel %vm742_vm4, 0.0, %v7946_v9  ;;  %v4104_v21 = vpop.permute.xlu0 %4103  ;;  %v6392_v56 = vpack.c.bf16 %v7946_v9, %v7941_v54 }
 0x387   : > { %v2181_v22 = vsel %vm808_vm6, %v2165_v45, 0.0  ;;  %v2184_v46 = vpack.c.bf16 %v2177_v1, %v2176_v53  ;;  %v6176_v36 = vpop.permute.xlu1 %6175 }
 0x388   : > { %v2185_v33 = vpack.c.bf16 %v2181_v22, %v2180_v17  ;;  %v6178_v37 = vunpack.i.h.bf16 %v6176_v36  ;;  %v7966_v58 = vunpack.i.l.bf16 %v6176_v36 }
 0x389   : > { %4887 = vrot.lane.b32.xlu0 %v2184_v46, %s6408_s26 }
 0x38a   : > { %2190 = vst.msk [vmem:[#allocation3 + $0x88] sm:$0xff] %vm764_vm5, %v2185_v33  ;;  %v2167_v20 = vsel %vm742_vm4, %v7966_v58, %v6178_v37  ;;  %v2179_v18 = vsel %vm742_vm4, 0.0, %v7966_v58  ;;  %v4108_v2 = vpop.permute.xlu0 %4107 }
 0x38b   : > { %v2183_v8 = vsel %vm808_vm6, %v2167_v20, 0.0  ;;  %v2186_v35 = vpack.c.bf16 %v2179_v18, %v2178_v59 }
 0x38c   : > { %v2187_v13 = vpack.c.bf16 %v2183_v8, %v2182_v42  ;;  %5459 = vmatmul.mubr.msk.bf16.gmra.mrb[60].mxu1 %vm2225_vm9, %v7601_v50  ;;  %5475 = vmatmul.mubr.msk.bf16.gmra.mrb[40].mxu0 %vm2225_vm9, %v7606_v5  ;;  %v2193_v5 = vld [vmem:[%s8131_s6] sm:$0xff] }
 0x38d   : > { %v4106_v51 = vpop.permute.xlu1 %4105  ;;  %4149 = vmatprep.mubr.bf16.mxu1 %v6407_v0  ;;  %4645 = vmatprep.mubr.bf16.mxu0 %v6407_v0 }
 0x38e   : > { %4117 = vmatprep.subr.bf16.mxu1 %v4106_v51  ;;  %4613 = vmatprep.subr.bf16.mxu0 %v4106_v51  ;;  %v4111_v24 = vsel %vm447_vm1, %v4104_v21, %v4106_v51  ;;  %2192 = vst.msk [vmem:[#allocation3 + $0x98] sm:$0xff] %vm764_vm5, %v2187_v13 }
 0x38f   : > { %4118 = vmatpush1.bf16.msra.mxu1 %v4111_v24  ;;  %4614 = vmatpush1.bf16.msra.mxu0 %v4111_v24 }
 0x390   : > { %4891 = vrot.lane.b32.xlu0 %v2186_v35, %s6408_s26 }
 0x391   : > { %v4110_v55 = vpop.permute.xlu1 %4109  ;;  %v4679_v50 = vld [vmem:[#allocation3 + $0x88] sm:$0xff] }
 0x392   : > { %4119 = vmatprep.subr.bf16.mxu1 %v4110_v55  ;;  %4615 = vmatprep.subr.bf16.mxu0 %v4110_v55  ;;  %v4112_v10 = vsel %vm447_vm1, %v4108_v2, %v4110_v55 }
 0x393   : > { %4889 = vrot.lane.b32.xlu1 %v4679_v50, %s6408_s26  ;;  %4120 = vmatpush1.bf16.msra.mxu1 %v4112_v10 }
 0x394   : > { %4616 = vmatpush1.bf16.msra.mxu0 %v4112_v10  ;;  %2929 = vperm.xlu0 %5972, %v2193_v5  }
 0x395   : > { %4682 = vmatprep.subr.bf16.mxu0 %v7844_v27  ;;  %v4681_v15 = vld [vmem:[#allocation3 + $0x98] sm:$0xff]  ;;  %v2194_v27 = vld [vmem:[%s8131_s6 + $0x8] sm:$0xff] }
 0x396   : > { %5460 = vmatmul.mubr.msk.bf16.vlgmr.msra.gmra.mrb[56].mxu1 %vm2225_vm9, %v7619_v25  ;;  %v6387_v25 = vpack.c.bf16 %v7822_v34, %v7820_v60  ;;  %v6212_v60 = vld [vmem:[%s8130_s5 + $0x88] sm:$0xff]   ;;  %v4809_v34 = vpop.permute.xlu0 %4808 }
 0x397   : > { %5476 = vmatmul.mubr.msk.bf16.vlgmr.msra.gmra.mrb[36].mxu0 %vm2225_vm9, %v7624_v41  ;;  %4893 = vrot.lane.b32.xlu1 %v4681_v15, %s6408_s26  ;;  %v2196_v41 = vld [vmem:[%s8131_s6 + $0x18] sm:$0xff] }
 0x398   : > { %6383 = vmatpush1.bf16.msk.msra.mxu0 %vm7131_vm8, %v6382_v23  ;;  %4159 = vmatprep.mubr.bf16.mxu1 %v6407_v0 }
 0x399   : > { %4684 = vmatprep.subr.bf16.mxu0 %v7857_v29  ;;  %4655 = vmatprep.mubr.bf16.mxu0 %v6407_v0  ;;  %v6213_v29 = vld [vmem:[%s8130_s5 + $0x90] sm:$0xff]  }
 0x39a   : > { %2939 = vperm.xlu0 %5972, %v2195_v44   ;;  %v4813_v39 = vpop.permute.xlu0 %4812 }
 0x39b   : > { %2934 = vperm.xlu1 %5973, %v2194_v27  }
 0x39c   : > { %6388 = vmatpush1.bf16.msk.msra.mxu0 %vm7131_vm8, %v6387_v25 }
 0x39d   : > { %4743 = vmatprep.subr.bf16.mxu0 %v4679_v50 }
 0x39e   : > { %5461 = vmatmul.mubr.msk.bf16.gmra.mrb[60].mxu1 %vm2225_vm9, %v7665_v52  ;;  %v4811_v52 = vpop.permute.xlu1 %4810 }
 0x39f   : > { %5477 = vmatmul.mubr.msk.bf16.gmra.mrb[40].mxu0 %vm2225_vm9, %v7670_v63  ;;  %2944 = vperm.xlu1 %5973, %v2196_v41   ;;  %v6397_v63 = vpack.c.bf16 %v7966_v58, %v7952_v11  ;;  %v4816_v28 = vsel %vm447_vm1, %v4809_v34, %v4811_v52  ;;  %v6218_v11 = vld [vmem:[%s8130_s5 + $0xb8] sm:$0xff]  }
 0x3a0   : > { %4714 = vmatprep.mubr.bf16.mxu0 %v6407_v0 }
 0x3a2   : > { %v4815_v57 = vpop.permute.xlu1 %4814 }
 0x3a3   : > { %v4817_v47 = vsel %vm447_vm1, %v4813_v39, %v4815_v57 }
 0x3a7   : > { %5478 = vmatmul.mubr.msk.bf16.vlgmr.msra.gmra.mrb[36].mxu0 %vm2225_vm9, %v6211_v3 }
 0x3a8   : > { %6393 = vmatpush1.bf16.msk.msra.mxu0 %vm7131_vm8, %v6392_v56  ;;  %4724 = vmatprep.mubr.bf16.mxu0 %v6407_v0 }
 0x3a9   : > { %4745 = vmatprep.subr.bf16.mxu0 %v4681_v15 }
 0x3ac   : > { %6398 = vmatpush1.bf16.msk.msra.mxu0 %vm7131_vm8, %v6397_v63 }
 0x3ad   : > { %4822 = vmatprep.subr.bf16.mxu0 %v4811_v52 }
 0x3af   : > { %5479 = vmatmul.mubr.msk.bf16.gmra.mrb[40].mxu0 %vm2225_vm9, %v6212_v60 }
 0x3b0   : > { %4775 = vmatprep.mubr.bf16.mxu0 %v6407_v0 }
 0x3b7   : > { %5480 = vmatmul.mubr.msk.bf16.vlgmr.msra.gmra.mrb[36].mxu0 %vm2225_vm9, %v6213_v29 }
 0x3b8   : > { %4823 = vmatpush1.bf16.msra.mxu0 %v4816_v28  ;;  %4785 = vmatprep.mubr.bf16.mxu0 %v6407_v0 }
 0x3b9   : > { %4824 = vmatprep.subr.bf16.mxu0 %v4815_v57 }
 0x3bc   : > { %4825 = vmatpush1.bf16.msra.mxu0 %v4817_v47 }
 0x3bf   : > { %5481 = vmatmul.mubr.msk.bf16.gmra.mrb[40].mxu0 %vm2225_vm9, %v6214_v19 }
 0x3c0   : > { %4854 = vmatprep.mubr.bf16.mxu0 %v6407_v0 }
 0x3c7   : > { %5482 = vmatmul.mubr.msk.bf16.vlgmr.msra.gmra.mrb[36].mxu0 %vm2225_vm9, %v6215_v14 }
 0x3c8   : > { %4864 = vmatprep.mubr.bf16.mxu0 %v6407_v0 }
 0x3ce   : > { %v2900_v40 = vpop.f32.mrb[28].mxu0 }
 0x3cf   : > { %v2902_v12 = vpop.f32.mrb[29].mxu0  ;;  %5483 = vmatmul.mubr.msk.bf16.gmra.mrb[40].mxu0 %vm2225_vm9, %v6216_v26 }
 0x3d0   : > { %v2904_v6 = vpop.f32.mrb[30].mxu0  ;;  %4933 = vmatprep.mubr.bf16.mxu0 %v6407_v0 }
 0x3d1   : > { %v2906_v61 = vpop.f32.mrb[31].mxu0 }
 0x3d6   : > { %v2910_v62 = vpop.f32.mrb[32].mxu0 }
 0x3d7   : > { %v2912_v30 = vpop.f32.mrb[33].mxu0 }
 0x3d8   : > { %v2914_v7 = vpop.f32.mrb[34].mxu0 }
 0x3d9   : > { %v2916_v54 = vpop.f32.mrb[35].mxu0 }
 0x3fb   : > { %v4888_v31 = vpop.permute.xlu0 %4887 }
 0x402   : > { %v4892_v43 = vpop.permute.xlu0 %4891 }
 0x405   : > { %v4890_v16 = vpop.permute.xlu1 %4889 }
 0x406   : > { %v4895_v4 = vsel %vm447_vm1, %v4888_v31, %v4890_v16  ;;  %4901 = vmatprep.subr.bf16.mxu0 %v4890_v16 }
 0x407   : > { %4902 = vmatpush1.bf16.msra.mxu0 %v4895_v4 }
 0x409   : > { %v4894_v38 = vpop.permute.xlu1 %4893 }
 0x40a   : > { %v4896_v9 = vsel %vm447_vm1, %v4892_v43, %v4894_v38  ;;  %4903 = vmatprep.subr.bf16.mxu0 %v4894_v38 }
 0x40b   : > { %4904 = vmatpush1.bf16.msra.mxu0 %v4896_v9 }
 0x40e   : > { %5484 = vmatmul.mubr.msk.bf16.vlgmr.msra.gmra.mrb[36].mxu0 %vm2225_vm9, %v6217_v48 }
 0x40f   : > { %4943 = vmatprep.mubr.bf16.mxu0 %v6407_v0 }
 0x413   : > { %v2930_v53 = vpop.permute.xlu0 %2929 }
 0x414   : > { %v2947_v1 = vadd.f32 %v2930_v53, %v2900_v40  ;;  %v2948_v22 = vadd.f32 %v2930_v53, %v2902_v12 }
 0x416   : > { %5485 = vmatmul.mubr.msk.bf16.gmra.mrb[40].mxu0 %vm2225_vm9, %v6218_v11  ;;  %v2955_v59 = vmax.f32 %v2947_v1, 0.0  ;;  %v2956_v8 = vmax.f32 %v2948_v22, 0.0 }
 0x419   : > { %v2940_v42 = vpop.permute.xlu0 %2939 }
 0x41a   : > { %v2935_v45 = vpop.permute.xlu1 %2934  ;;  %v2951_v15 = vadd.f32 %v2940_v42, %v2910_v62  ;;  %v2952_v27 = vadd.f32 %v2940_v42, %v2912_v30 }
 0x41b   : > { %v2949_v33 = vadd.f32 %v2935_v45, %v2904_v6  ;;  %v2950_v58 = vadd.f32 %v2935_v45, %v2906_v61 }
 0x41c   : > { %v2959_v60 = vmax.f32 %v2951_v15, 0.0  ;;  %v2960_v57 = vmax.f32 %v2952_v27, 0.0 }
 0x41d   : > { %v2957_v51 = vmax.f32 %v2949_v33, 0.0  ;;  %v2958_v50 = vmax.f32 %v2950_v58, 0.0 }
 0x41e   : > { %v2945_v2 = vpop.permute.xlu1 %2944 }
 0x41f   : > { %v2953_v3 = vadd.f32 %v2945_v2, %v2914_v7  ;;  %v2954_v63 = vadd.f32 %v2945_v2, %v2916_v54 }
 0x421   : > { %v2961_v14 = vmax.f32 %v2953_v3, 0.0  ;;  %v2962_v26 = vmax.f32 %v2954_v63, 0.0  ;;  %v5002_v63 = vld [vmem:[%s417_s27] sm:$0x3]  ;;  %s5281_s27 = sshll.u32 %s8140_s18, 2 }
 0x422   : > { %s421_s28 = scalar_lea.vmem %s8136_s11, %s5281_s27 }
 0x469   : > { %v4151_v17 = vpop.f32.mrb[56].mxu1 }
 0x46a   : > { %v4178_v46 = vadd.f32 %v4151_v17, %v2930_v53  ;;  %v4153_v36 = vpop.f32.mrb[57].mxu1 }
 0x46b   : > { %v4179_v49 = vadd.f32 %v4153_v36, %v2930_v53  ;;  %v4155_v37 = vpop.f32.mrb[58].mxu1 }
 0x46c   : > { %v4186_v20 = vmax.f32 %v4178_v46, 0.0  ;;  %v4180_v0 = vadd.f32 %v4155_v37, %v2935_v45  ;;  %v4157_v18 = vpop.f32.mrb[59].mxu1 }
 0x46d   : > { %v4187_v35 = vmax.f32 %v4179_v49, 0.0  ;;  %v4181_v21 = vadd.f32 %v4157_v18, %v2935_v45 }
 0x46e   : > { %v4194_v13 = vmax.f32 %v2955_v59, %v4186_v20  ;;  %v4188_v24 = vmax.f32 %v4180_v0, 0.0 }
 0x46f   : > { %v4195_v55 = vmax.f32 %v2956_v8, %v4187_v35  ;;  %v4189_v5 = vmax.f32 %v4181_v21, 0.0 }
 0x470   : > { %v4196_v10 = vmax.f32 %v2957_v51, %v4188_v24 }
 0x471   : > { %v4197_v44 = vmax.f32 %v2958_v50, %v4189_v5  ;;  %v4161_v23 = vpop.f32.mrb[60].mxu1 }
 0x472   : > { %v4182_v25 = vadd.f32 %v4161_v23, %v2940_v42  ;;  %v4163_v41 = vpop.f32.mrb[61].mxu1 }
 0x473   : > { %v4183_v56 = vadd.f32 %v4163_v41, %v2940_v42  ;;  %v4165_v52 = vpop.f32.mrb[62].mxu1 }
 0x474   : > { %v4190_v34 = vmax.f32 %v4182_v25, 0.0  ;;  %v4184_v28 = vadd.f32 %v4165_v52, %v2945_v2  ;;  %v4167_v29 = vpop.f32.mrb[63].mxu1 }
 0x475   : > { %v4191_v39 = vmax.f32 %v4183_v56, 0.0  ;;  %v4185_v47 = vadd.f32 %v4167_v29, %v2945_v2  ;;  %v6412_v29 = vmov 0.0|0.0  }
 0x476   : > { %v4198_v19 = vmax.f32 %v2959_v60, %v4190_v34  ;;  %v4192_v40 = vmax.f32 %v4184_v28, 0.0  ;;  %v5004_v60 = vld [vmem:[%s8132_s7 + $0x8] sm:$0xff]  ;;  %v5005_v34 = vld [vmem:[%s8132_s7 + $0x10] sm:$0xff]  ;;  %v5006_v28 = vld [vmem:[%s8132_s7 + $0x18] sm:$0xff] }
 0x477   : > { %v4199_v12 = vmax.f32 %v2960_v57, %v4191_v39  ;;  %v4193_v6 = vmax.f32 %v4185_v47, 0.0  ;;  %v5008_v57 = vld [vmem:[%s8133_s8 + $0x8] sm:$0xff]  ;;  %v5007_v39 = vld [vmem:[%s8133_s8] sm:$0xff] }
 0x478   : > { %v4200_v61 = vmax.f32 %v2961_v14, %v4192_v40 }
 0x479   : > { %v4201_v62 = vmax.f32 %v2962_v26, %v4193_v6 }
 0x4e1   : > { %v4935_v30 = vpop.f32.mrb[36].mxu0 }
 0x4e2   : > { %v4962_v7 = vadd.f32 %v4935_v30, %v2930_v53  ;;  %v4937_v31 = vpop.f32.mrb[37].mxu0 }
 0x4e3   : > { %v4963_v16 = vadd.f32 %v4937_v31, %v2930_v53  ;;  %v4939_v54 = vpop.f32.mrb[38].mxu0 }
 0x4e4   : > { %v4970_v4 = vmax.f32 %v4962_v7, 0.0  ;;  %v4964_v43 = vadd.f32 %v4939_v54, %v2935_v45  ;;  %v4941_v38 = vpop.f32.mrb[39].mxu0 }
 0x4e5   : > { %v4971_v9 = vmax.f32 %v4963_v16, 0.0  ;;  %v4965_v48 = vadd.f32 %v4941_v38, %v2935_v45  ;;  %v5118_v38 = vld [vmem:[%s8135_s10] sm:$0xf] }
 0x4e6   : > { %v4978_v11 = vmax.f32 %v4194_v13, %v4970_v4  ;;  %v4972_v1 = vmax.f32 %v4964_v43, 0.0  ;;  %v5117_v43 = vld [vmem:[%s8134_s9] sm:$0xf] }
 0x4e7   : > { %v4979_v17 = vmax.f32 %v4195_v55, %v4971_v9  ;;  %v4973_v22 = vmax.f32 %v4965_v48, 0.0 }
 0x4e8   : > { %v4980_v46 = vmax.f32 %v4196_v10, %v4972_v1 }
 0x4e9   : > { %v4981_v36 = vmax.f32 %v4197_v44, %v4973_v22  ;;  %v4945_v33 = vpop.f32.mrb[40].mxu0  ;;  %v4986_v49 = vsel %vm808_vm6, %v4979_v17, -inf }
 0x4ea   : > { %v4966_v37 = vadd.f32 %v4945_v33, %v2940_v42  ;;  %v4947_v58 = vpop.f32.mrb[41].mxu0  ;;  %v4987_v59 = vmax.f32 %v4978_v11, %v4986_v49 }
 0x4eb   : > { %v4967_v20 = vadd.f32 %v4947_v58, %v2940_v42  ;;  %v4949_v53 = vpop.f32.mrb[42].mxu0  ;;  %v4990_v0 = vsel %vm808_vm6, %v4981_v36, -inf }
 0x4ec   : > { %v4974_v18 = vmax.f32 %v4966_v37, 0.0  ;;  %v4968_v8 = vadd.f32 %v4949_v53, %v2945_v2  ;;  %4988 = vmax.xlane.f32.xlu0 %v4987_v59  ;;  %v4951_v45 = vpop.f32.mrb[43].mxu0  ;;  %v4991_v35 = vmax.f32 %v4980_v46, %v4990_v0 }
 0x4ed   : > { %v4975_v21 = vmax.f32 %v4967_v20, 0.0  ;;  %v4969_v13 = vadd.f32 %v4951_v45, %v2945_v2  ;;  %v5003_v2 = vld [vmem:[%s8132_s7] sm:$0xff] }
 0x4ee   : > { %v4982_v51 = vmax.f32 %v4198_v19, %v4974_v18  ;;  %v4976_v24 = vmax.f32 %v4968_v8, 0.0  ;;  %4992 = vmax.xlane.f32.xlu1 %v4991_v35  ;;  %5520 = vmatprep.mubr.msk.f32.mxu1 %vm5011_vm10, %v5003_v2 }
 0x4ef   : > { %v4983_v55 = vmax.f32 %v4199_v12, %v4975_v21  ;;  %v4977_v50 = vmax.f32 %v4969_v13, 0.0  ;;  %v5010_v12 = vld [vmem:[%s8133_s8 + $0x18] sm:$0xff] }
 0x4f0   : > { %v4984_v5 = vmax.f32 %v4200_v61, %v4976_v24 }
 0x4f1   : > { %v4985_v10 = vmax.f32 %v4201_v62, %v4977_v50  ;;  %v4994_v42 = vsel %vm808_vm6, %v4983_v55, -inf }
 0x4f2   : > { %v4995_v15 = vmax.f32 %v4982_v51, %v4994_v42 }
 0x4f3   : > { %v4998_v44 = vsel %vm808_vm6, %v4985_v10, -inf }
 0x4f4   : > { %4996 = vmax.xlane.f32.xlu0 %v4995_v15  ;;  %v4999_v23 = vmax.f32 %v4984_v5, %v4998_v44 }
 0x4f8   : > { %5000 = vmax.xlane.f32.xlu0 %v4999_v23 }
 0x579   : > { %v4989_v27 = vpop.xlane.xlu0 %4988 }
 0x57b   : > { %v4993_v25 = vpop.xlane.xlu1 %4992 }
 0x57c   : > { %v5577_v41 = vpack.c.bf16 %v4993_v25, %v4989_v27 }
 0x57e   : > { %5578 = vmatprep.subr.bf16.mxu1 %v5577_v41 }
 0x57f   : > { %5580 = vmatpush3.bf16.msra.mxu1 %v5577_v41 }
 0x581   : > { %v4997_v3 = vpop.xlane.xlu0 %4996 }
 0x585   : > { %v5001_v56 = vpop.xlane.xlu0 %5000 }
 0x586   : > { %v5581_v52 = vpack.c.bf16 %v5001_v56, %v4997_v3 }
 0x588   : > { %5582 = vmatprep.subr.bf16.mxu1 %v5581_v52 }
 0x589   : > { %5584 = vmatpush3.bf16.msra.mxu1 %v5581_v52 }
 0x58a   : > { %5518 = vmatprep.subr.msk.mxu1 %vm5024_vm11, %v5002_v63 }
 0x58d   : > { %5519 = vmatpush3.msk.msra.mxu1 %vm5024_vm11, %v5002_v63 }
 0x58e   : > { %5521 = vmatmul.mubr.msk.f32.vlgmr.msra.gmra.mrb[54].mxu1 %vm5011_vm10, %v5004_v60  ;;  %5585 = vmatprep.subr.bf16.mxu1 %v6412_v29 }
 0x58f   : > { %5523 = vmatprep.mubr.msk.f32.mxu1 %vm5011_vm10, %v5005_v34 }
 0x592   : > { %5524 = vmatmul.mubr.msk.f32.gmra.mrb[64].mxu1 %vm5011_vm10, %v5006_v28 }
 0x593   : > { %5534 = vmatprep.mubr.msk.f32.mxu1 %vm6413_vm12, %v6410_v32  ;;  %v5009_v32 = vld [vmem:[%s8133_s8 + $0x10] sm:$0xff] }
 0x661   : > { %v5522_v47 = vpop.f32.mrb[54].mxu1 }
 0x662   : > { %v5100_v19 = vadd.f32 %v5522_v47, %v5008_v57  ;;  %v5094_v14 = vpop.f32.mrb[55].mxu1 }
 0x663   : > { %v5095_v40 = vadd.f32 %v5094_v14, %v5007_v39 }
 0x664   : > { %v5114_v26 = vmax.f32 %v5100_v19, 0.0 }
 0x665   : > { %v5113_v6 = vmax.f32 %v5095_v40, 0.0  ;;  %v5525_v61 = vpop.f32.mrb[64].mxu1 }
 0x666   : > { %v5110_v62 = vadd.f32 %v5525_v61, %v5010_v12  ;;  %v5104_v30 = vpop.f32.mrb[65].mxu1 }
 0x667   : > { %v5586_v7 = vpack.c.bf16 %v5114_v26, %v5113_v6  ;;  %v5105_v31 = vadd.f32 %v5104_v30, %v5009_v32 }
 0x668   : > { %v5116_v16 = vmax.f32 %v5110_v62, 0.0 }
 0x669   : > { %v5115_v54 = vmax.f32 %v5105_v31, 0.0  ;;  %5587 = vmatpush3.bf16.msra.mxu1 %v5586_v7 }
 0x66a   : > { %5588 = vmatprep.subr.bf16.mxu1 %v6412_v29 }
 0x66b   : > { %v5589_v4 = vpack.c.bf16 %v5116_v16, %v5115_v54 }
 0x66d   : > { %5590 = vmatpush3.bf16.msra.mxu1 %v5589_v4 }
 0x670   : > { %5535 = vmatmul.mubr.msk.f32.vlgmr.msra.gmra.mrb[66].mxu1 %vm2225_vm9, %v5117_v43 }
 0x743   : > { %v5188_v9 = vpop.f32.mrb[66].mxu1 }
 0x744   : > { %v5189_v48 = vadd.f32 %v5188_v9, %v5118_v38  ;;  %v5536_v11 = vpop.f32.mrb[67].mxu1 }
 0x746   : > { %5193 = vst.msk [vmem:[%s421_s28] sm:$0xf] %vm5192_vm13, %v5189_v48 }
 0x747 PF: > { %s21_s17 = sadd.s32 1, %s6405_s17  }
 0x748   : > { %p18_p4 = scmp.ge.s32.totalorder %s21_s17, 4  }
 0x74a   :  { %20 = sbr.rel (!%p18_p4) target bundleno = 1 (0x1), region = 123 }

</bundles_post_ra>
